<compile_context>
chip_gen: v7x
topology: tpu7x:2x2x1
jax: 0.10.0
libtpu: 0.0.40
codegen_flags: <defaults>
</compile_context>

<pallas_src>
import functools

import jax
import jax.numpy as jnp
import numpy as np
from jax.experimental import pallas as pl
from jax.experimental.pallas import tpu as pltpu

NUM_FEATURES = 445            # fixed by the module
F_PAD = 512                   # padded feature dim (multiple of 128 lanes)
DIM = 32                      # "dim" hyper-parameter (kept small for the demo)
CAT = 4 * DIM                 # 128 — lane-dense concatenated width
NUM_LAYERS = 4
NUM_CONVS = 4                 # per layer: 1_l, 2_l, 1_g, 2_g (adjacency index 0..3)
CAT_ORDER = (0, 2, 1, 3)      # torch.cat([x_1, x_3, x_2, x_4]) in adjacency-index terms


# ----------------------------------------------------------------------------
# Single fused Pallas kernel for the full forward pass.
# ----------------------------------------------------------------------------
def netgin_kernel(x_ref, adj_ref, pool_ref,
                  w1l0_ref, w1r_ref, b1_ref, eps_ref, w2_ref, b2_ref,
                  mw1_ref, mb1_ref, mw2_ref, mb2_ref,
                  gamma_ref, beta_ref,
                  fw1_ref, fb1_ref, fw2_ref, fb2_ref,
                  fw3_ref, fb3_ref, fw4_ref, fb4_ref,
                  o_ref, feat_ref):
    # bf16 operands, f32 accumulation (native single-pass MXU on all gens).
    def dot(a, b):
        return jnp.dot(a.astype(jnp.bfloat16), b.astype(jnp.bfloat16),
                       preferred_element_type=jnp.float32)

    h_in = x_ref[...]                                       # (N, F_PAD) layer-1 input
    for layer in range(NUM_LAYERS):
        # --- project first: one lane-dense matmul for all four convs ---------
        w1 = w1l0_ref[...] if layer == 0 else w1r_ref[layer - 1]
        h1 = dot(h_in, w1)                                  # (N, 128), cat-ordered slices

        # --- aggregate per adjacency on 32-wide slices (adj already cat-ordered)
        agg = jnp.concatenate(
            [dot(adj_ref[j], h1[:, j * DIM:(j + 1) * DIM]) for j in range(NUM_CONVS)],
            axis=-1)                                        # (N, 128)

        # --- (1+eps)*h1 + agg + b1, ReLU, block-diag W2, b2, ReLU (outer relu)
        t = jnp.maximum(eps_ref[layer:layer + 1] * h1 + agg + b1_ref[layer:layer + 1], 0.0)
        y = jnp.maximum(dot(t, w2_ref[layer]) + b2_ref[layer:layer + 1], 0.0)
        # y IS torch.cat([x_1, x_3, x_2, x_4], dim=-1)

        # --- mlp_k (Linear -> ReLU -> Linear) --------------------------------
        hm = jnp.maximum(dot(y, mw1_ref[layer]) + mb1_ref[layer:layer + 1], 0.0)
        hm = dot(hm, mw2_ref[layer]) + mb2_ref[layer:layer + 1]

        # --- BatchNorm1d, training-mode batch statistics (biased variance) ---
        mean = jnp.mean(hm, axis=0, keepdims=True)
        var = jnp.mean((hm - mean) * (hm - mean), axis=0, keepdims=True)
        h_bn = (gamma_ref[layer:layer + 1] * (hm - mean) * jax.lax.rsqrt(var + 1e-5)
                + beta_ref[layer:layer + 1])

        feat_ref[:, layer * DIM:(layer + 1) * DIM] = h_bn   # persistent (N,128) slab
        h_in = h_bn                                         # input to next layer's convs

    # --- global_mean_pool + fc head ------------------------------------------
    pooled = dot(pool_ref[...], feat_ref[...])              # (G, 128)
    h = jnp.maximum(dot(pooled, fw1_ref[...]) + fb1_ref[...], 0.0)
    h = jnp.maximum(dot(h, fw2_ref[...]) + fb2_ref[...], 0.0)
    h = jnp.maximum(dot(h, fw3_ref[...]) + fb3_ref[...], 0.0)
    o_ref[...] = dot(h, fw4_ref[...]) + fb4_ref[...]


_VMEM = pl.BlockSpec(memory_space=pltpu.MemorySpace.VMEM)


def netgin_pallas(x_pad, adj_cat, pool_mat, kp):
    n = x_pad.shape[0]
    g = pool_mat.shape[0]
    args = (x_pad, adj_cat, pool_mat,
            kp["w1_l0"], kp["w1_rest"], kp["b1_row"], kp["eps_row"],
            kp["w2_bd"], kp["b2_row"],
            kp["mlp_w1"], kp["mlp_b1"], kp["mlp_w2"], kp["mlp_b2"],
            kp["bn_gamma"], kp["bn_beta"],
            kp["fc1_w"], kp["fc1_b"], kp["fc2_w"], kp["fc2_b"],
            kp["fc3_w"], kp["fc3_b"], kp["fc4_w"], kp["fc4_b"])
    return pl.pallas_call(
        netgin_kernel,
        out_shape=jax.ShapeDtypeStruct((g, 1), jnp.float32),
        in_specs=[_VMEM] * len(args),
        out_specs=_VMEM,
        scratch_shapes=[pltpu.VMEM((n, CAT), jnp.float32)],   # per-layer BN feature slab
        compiler_params=pltpu.CompilerParams(vmem_limit_bytes=32 * 1024 * 1024),
    )(*args)


# ----------------------------------------------------------------------------
# Parameters: logical (per-conv, f32) layout; packing for the kernel is below.
# ----------------------------------------------------------------------------
def init_params(key, dim=DIM):
    keys = jax.random.split(key, 64)
    kit = iter(keys)

    def lin(fin, fout):
        kw, kb = jax.random.split(next(kit))
        return (jax.random.normal(kw, (fin, fout), jnp.float32) * 0.1,
                jax.random.normal(kb, (fout,), jnp.float32) * 0.1)

    p = {}
    w1_l0 = None
    w1_rest, b1, w2, b2 = [], [], [], []
    for layer in range(NUM_LAYERS):
        fin = NUM_FEATURES if layer == 0 else dim
        ws1, bs1, ws2, bs2 = [], [], [], []
        for _a in range(NUM_CONVS):
            w1a, b1a = lin(fin, dim)
            w2a, b2a = lin(dim, dim)
            ws1.append(w1a); bs1.append(b1a); ws2.append(w2a); bs2.append(b2a)
        if layer == 0:
            w1_l0 = jnp.stack(ws1)                    # (4, 445, 32)
        else:
            w1_rest.append(jnp.stack(ws1))            # (4, 32, 32)
        b1.append(jnp.stack(bs1)); w2.append(jnp.stack(ws2)); b2.append(jnp.stack(bs2))
    p["conv_w1_l0"] = w1_l0
    p["conv_w1_rest"] = jnp.stack(w1_rest)            # (3, 4, 32, 32)
    p["conv_b1"] = jnp.stack(b1)                      # (4, 4, 32)
    p["conv_w2"] = jnp.stack(w2)                      # (4, 4, 32, 32)
    p["conv_b2"] = jnp.stack(b2)                      # (4, 4, 32)
    p["eps"] = jnp.zeros((NUM_LAYERS, NUM_CONVS), jnp.float32)   # train_eps=True starts at 0

    mw1, mb1, mw2, mb2 = [], [], [], []
    for _layer in range(NUM_LAYERS):
        w, b = lin(4 * dim, dim); mw1.append(w); mb1.append(b)
        w, b = lin(dim, dim); mw2.append(w); mb2.append(b)
    p["mlp_w1"] = jnp.stack(mw1); p["mlp_b1"] = jnp.stack(mb1)
    p["mlp_w2"] = jnp.stack(mw2); p["mlp_b2"] = jnp.stack(mb2)
    p["bn_gamma"] = jnp.ones((NUM_LAYERS, dim), jnp.float32)
    p["bn_beta"] = jnp.zeros((NUM_LAYERS, dim), jnp.float32)

    for name, (fi, fo) in (("fc1", (4 * dim, dim)), ("fc2", (dim, dim)),
                           ("fc3", (dim, dim)), ("fc4", (dim, 1))):
        w, b = lin(fi, fo)
        p[name + "_w"] = w
        p[name + "_b"] = b.reshape(1, fo)
    return p


def pack_params(p):
    """Pack logical params into cat-ordered, lane-dense, bf16 kernel operands."""
    order = list(CAT_ORDER)
    # Layer-0 W1: columns in cat order, contraction dim zero-padded 445 -> 512.
    w1_l0 = jnp.concatenate([p["conv_w1_l0"][c] for c in order], axis=-1)       # (445,128)
    w1_l0 = jnp.pad(w1_l0, ((0, F_PAD - NUM_FEATURES), (0, 0)))                 # (512,128)
    # Layers 1-3 W1: (3, 32, 128) — output columns in cat order.
    w1_rest = jnp.concatenate([p["conv_w1_rest"][:, c] for c in order], axis=-1)
    # W2 block-diagonal (4, 128, 128), block j = conv CAT_ORDER[j].
    w2_bd = jnp.zeros((NUM_LAYERS, CAT, CAT), jnp.float32)
    for layer in range(NUM_LAYERS):
        for j, c in enumerate(order):
            w2_bd = w2_bd.at[layer, j * DIM:(j + 1) * DIM,
                             j * DIM:(j + 1) * DIM].set(p["conv_w2"][layer, c])
    # Lane-dense bias / (1+eps) rows, cat-ordered.
    b1_row = jnp.concatenate([p["conv_b1"][:, c] for c in order], axis=-1)      # (4,128)
    b2_row = jnp.concatenate([p["conv_b2"][:, c] for c in order], axis=-1)      # (4,128)
    eps_row = jnp.repeat(1.0 + p["eps"][:, jnp.asarray(order)], DIM, axis=-1)   # (4,128)

    bf = lambda a: a.astype(jnp.bfloat16)
    return dict(
        w1_l0=bf(w1_l0), w1_rest=bf(w1_rest), b1_row=b1_row, eps_row=eps_row,
        w2_bd=bf(w2_bd), b2_row=b2_row,
        mlp_w1=bf(p["mlp_w1"]), mlp_b1=p["mlp_b1"],
        mlp_w2=bf(p["mlp_w2"]), mlp_b2=p["mlp_b2"],
        bn_gamma=p["bn_gamma"], bn_beta=p["bn_beta"],
        fc1_w=bf(p["fc1_w"]), fc1_b=p["fc1_b"],
        fc2_w=bf(p["fc2_w"]), fc2_b=p["fc2_b"],
        fc3_w=bf(p["fc3_w"]), fc3_b=p["fc3_b"],
        fc4_w=bf(p["fc4_w"]), fc4_b=p["fc4_b"],
    )


# ----------------------------------------------------------------------------
# Forward pass (glue in plain JAX: padding, pool matrix, packing; rest Pallas).
# ----------------------------------------------------------------------------
@functools.partial(jax.jit, static_argnames=("num_graphs",))
def net_gin_forward(params, x, adjs, batch, num_graphs):
    kp = pack_params(params)
    x_pad = jnp.pad(x, ((0, 0), (0, F_PAD - NUM_FEATURES))).astype(jnp.bfloat16)
    adj_cat = adjs[jnp.asarray(CAT_ORDER)].astype(jnp.bfloat16)   # adjacency in cat order
    onehot = (batch[None, :] == jnp.arange(num_graphs)[:, None]).astype(jnp.float32)
    counts = jnp.maximum(onehot.sum(axis=1, keepdims=True), 1.0)
    pool_mat = (onehot / counts).astype(jnp.bfloat16)             # P[g, n] = 1/|V_g|
    out = netgin_pallas(x_pad, adj_cat, pool_mat, kp)             # (G, 1)
    return out.reshape(-1)                                        # x.view(-1)


# ----------------------------------------------------------------------------
# Pure-JAX references.
#   reference_matched: SAME bf16 rounding points / op order as the kernel but
#     built from the UNPACKED per-conv weights — tight check of the fusion,
#     block-diag packing and cat ordering.
#   reference_f32: original (aggregate-then-project) op order, full f32,
#     HIGHEST precision — bounds the total bf16 rounding impact.
# ----------------------------------------------------------------------------
def _head(pool, feats, params, dot):
    relu = lambda v: jnp.maximum(v, 0.0)
    pooled = dot(pool, jnp.concatenate(feats, axis=-1))
    h = relu(dot(pooled, params["fc1_w"]) + params["fc1_b"])
    h = relu(dot(h, params["fc2_w"]) + params["fc2_b"])
    h = relu(dot(h, params["fc3_w"]) + params["fc3_b"])
    return (dot(h, params["fc4_w"]) + params["fc4_b"]).reshape(-1)


def _pool_matrix(batch, num_graphs):
    onehot = (batch[None, :] == jnp.arange(num_graphs)[:, None]).astype(jnp.float32)
    counts = jnp.maximum(onehot.sum(axis=1, keepdims=True), 1.0)
    return onehot / counts


def _mlp_bn(y, params, layer, dot):
    relu = lambda v: jnp.maximum(v, 0.0)
    hm = relu(dot(y, params["mlp_w1"][layer]) + params["mlp_b1"][layer])
    hm = dot(hm, params["mlp_w2"][layer]) + params["mlp_b2"][layer]
    mean = jnp.mean(hm, axis=0, keepdims=True)
    var = jnp.mean((hm - mean) ** 2, axis=0, keepdims=True)
    return (params["bn_gamma"][layer] * (hm - mean) * jax.lax.rsqrt(var + 1e-5)
            + params["bn_beta"][layer])


def reference_matched(params, x, adjs, batch, num_graphs):
    def bdot(a, b):
        return jnp.dot(a.astype(jnp.bfloat16), b.astype(jnp.bfloat16),
                       preferred_element_type=jnp.float32)
    relu = lambda v: jnp.maximum(v, 0.0)
    h_in = jnp.pad(x, ((0, 0), (0, F_PAD - NUM_FEATURES)))
    feats = []
    for layer in range(NUM_LAYERS):
        ys = []
        for c in CAT_ORDER:
            if layer == 0:
                w1 = jnp.pad(params["conv_w1_l0"][c], ((0, F_PAD - NUM_FEATURES), (0, 0)))
            else:
                w1 = params["conv_w1_rest"][layer - 1, c]
            h1 = bdot(h_in, w1)                              # project first (as in kernel)
            agg = bdot(adjs[c], h1)
            t = relu((1.0 + params["eps"][layer, c]) * h1 + agg + params["conv_b1"][layer, c])
            ys.append(relu(bdot(t, params["conv_w2"][layer, c]) + params["conv_b2"][layer, c]))
        h_in = _mlp_bn(jnp.concatenate(ys, axis=-1), params, layer, bdot)
        feats.append(h_in)
    return _head(_pool_matrix(batch, num_graphs), feats, params, bdot)


def reference_f32(params, x, adjs, batch, num_graphs):
    hp = jax.lax.Precision.HIGHEST
    dot = lambda a, b: jnp.dot(a, b, precision=hp)
    relu = lambda v: jnp.maximum(v, 0.0)
    h_in = x
    feats = []
    for layer in range(NUM_LAYERS):
        ys = []
        for c in CAT_ORDER:
            w1 = (params["conv_w1_l0"][c] if layer == 0
                  else params["conv_w1_rest"][layer - 1, c])
            agg = dot(adjs[c], h_in)                         # original GIN op order
            m = (1.0 + params["eps"][layer, c]) * h_in + agg
            t = relu(dot(m, w1) + params["conv_b1"][layer, c])
            ys.append(relu(dot(t, params["conv_w2"][layer, c]) + params["conv_b2"][layer, c]))
        h_in = _mlp_bn(jnp.concatenate(ys, axis=-1), params, layer, dot)
        feats.append(h_in)
    return _head(_pool_matrix(batch, num_graphs), feats, params, dot)


# ----------------------------------------------------------------------------
if __name__ == "__main__":
    key = jax.random.PRNGKey(0)
    k_param, k_x, k_e1, k_e2, k_e3, k_e4 = jax.random.split(key, 6)

    N = 32             # total nodes across the batch (demo scale)
    NUM_GRAPHS = 2
    N_EDGES = 64

    params = init_params(k_param)

    x = jax.random.normal(k_x, (N, NUM_FEATURES), jnp.float32)
    batch = jnp.concatenate(
        [jnp.zeros((N // 2,), jnp.int32), jnp.ones((N - N // 2,), jnp.int32)])

    def edge_index_to_dense(edge_index, n):
        """A[dst, src] += 1 (sum aggregation over incoming messages)."""
        src, dst = edge_index
        return jnp.zeros((n, n), jnp.float32).at[dst, src].add(1.0)

    adjs = jnp.stack([edge_index_to_dense(
        jax.random.randint(k, (2, N_EDGES), 0, N, jnp.int32), N)
        for k in (k_e1, k_e2, k_e3, k_e4)])                     # (4, N, N)

    out = net_gin_forward(params, x, adjs, batch, NUM_GRAPHS)
    jax.block_until_ready(out)
    assert out.shape == (NUM_GRAPHS,)
    assert bool(jnp.all(jnp.isfinite(out)))

    # Tight check: same bf16 rounding points, unfused per-conv weights.
    ref_m = reference_matched(params, x, adjs, batch, NUM_GRAPHS)
    assert np.allclose(np.asarray(out), np.asarray(ref_m), rtol=5e-3, atol=5e-3), (out, ref_m)

    # Loose check: full-f32 module-order reference (bounds bf16 rounding, ~1e-2).
    ref_f = reference_f32(params, x, adjs, batch, NUM_GRAPHS)
    assert np.allclose(np.asarray(out), np.asarray(ref_f), rtol=1e-1, atol=1e-1), (out, ref_f)

    print("KERNEL_OK")
</pallas_src>

<mosaic_0001>
module attributes {stable_mosaic.version = 11 : i64} {
  func.func @netgin_kernel(%arg0: memref<32x512xbf16, #tpu.memory_space<vmem>>, %arg1: memref<4x32x32xbf16, #tpu.memory_space<vmem>>, %arg2: memref<2x32xbf16, #tpu.memory_space<vmem>>, %arg3: memref<512x128xbf16, #tpu.memory_space<vmem>>, %arg4: memref<3x32x128xbf16, #tpu.memory_space<vmem>>, %arg5: memref<4x128xf32, #tpu.memory_space<vmem>>, %arg6: memref<4x128xf32, #tpu.memory_space<vmem>>, %arg7: memref<4x128x128xbf16, #tpu.memory_space<vmem>>, %arg8: memref<4x128xf32, #tpu.memory_space<vmem>>, %arg9: memref<4x128x32xbf16, #tpu.memory_space<vmem>>, %arg10: memref<4x32xf32, #tpu.memory_space<vmem>>, %arg11: memref<4x32x32xbf16, #tpu.memory_space<vmem>>, %arg12: memref<4x32xf32, #tpu.memory_space<vmem>>, %arg13: memref<4x32xf32, #tpu.memory_space<vmem>>, %arg14: memref<4x32xf32, #tpu.memory_space<vmem>>, %arg15: memref<128x32xbf16, #tpu.memory_space<vmem>>, %arg16: memref<1x32xf32, #tpu.memory_space<vmem>>, %arg17: memref<32x32xbf16, #tpu.memory_space<vmem>>, %arg18: memref<1x32xf32, #tpu.memory_space<vmem>>, %arg19: memref<32x32xbf16, #tpu.memory_space<vmem>>, %arg20: memref<1x32xf32, #tpu.memory_space<vmem>>, %arg21: memref<32x1xbf16, #tpu.memory_space<vmem>>, %arg22: memref<1x1xf32, #tpu.memory_space<vmem>>, %arg23: memref<2x1xf32, #tpu.memory_space<vmem>>, %arg24: memref<32x128xf32, #tpu.memory_space<vmem>>) attributes {dimension_semantics = [], scalar_prefetch = 0 : i64, scratch_operands = 1 : i64, tpu.core_type = #tpu.core_type<tc>} {
    %c0 = arith.constant 0 : index
    %c0_0 = arith.constant 0 : index
    %0 = vector.load %arg0[%c0, %c0_0] : memref<32x512xbf16, #tpu.memory_space<vmem>>, vector<32x512xbf16>
    %c0_1 = arith.constant 0 : index
    %c0_2 = arith.constant 0 : index
    %1 = vector.load %arg3[%c0_1, %c0_2] : memref<512x128xbf16, #tpu.memory_space<vmem>>, vector<512x128xbf16>
    %cst = arith.constant dense<0.000000e+00> : vector<32x128xf32>
    %2 = tpu.matmul %0, %1, %cst {dimension_numbers = #tpu.dot_dimension_numbers<[1], [0], [0], [1], [0, 0, 1, 1], [], []>} : vector<32x512xbf16>, vector<512x128xbf16>, vector<32x128xf32> -> vector<32x128xf32>
    %c0_3 = arith.constant 0 : index
    %c0_4 = arith.constant 0 : index
    %c0_5 = arith.constant 0 : index
    %3 = vector.load %arg1[%c0_3, %c0_4, %c0_5] : memref<4x32x32xbf16, #tpu.memory_space<vmem>>, vector<1x32x32xbf16>
    %4 = vector.shape_cast %3 : vector<1x32x32xbf16> to vector<32x32xbf16>
    %5 = vector.extract_strided_slice %2 {offsets = [0, 0], sizes = [32, 32], strides = [1, 1]} : vector<32x128xf32> to vector<32x32xf32>
    %6 = arith.truncf %5 : vector<32x32xf32> to vector<32x32xbf16>
    %cst_6 = arith.constant dense<0.000000e+00> : vector<32x32xf32>
    %7 = tpu.matmul %4, %6, %cst_6 {dimension_numbers = #tpu.dot_dimension_numbers<[1], [0], [0], [1], [0, 0, 1, 1], [], []>} : vector<32x32xbf16>, vector<32x32xbf16>, vector<32x32xf32> -> vector<32x32xf32>
    %c1 = arith.constant 1 : index
    %c0_7 = arith.constant 0 : index
    %c0_8 = arith.constant 0 : index
    %8 = vector.load %arg1[%c1, %c0_7, %c0_8] : memref<4x32x32xbf16, #tpu.memory_space<vmem>>, vector<1x32x32xbf16>
    %9 = vector.shape_cast %8 : vector<1x32x32xbf16> to vector<32x32xbf16>
    %10 = vector.extract_strided_slice %2 {offsets = [0, 32], sizes = [32, 32], strides = [1, 1]} : vector<32x128xf32> to vector<32x32xf32>
    %11 = arith.truncf %10 : vector<32x32xf32> to vector<32x32xbf16>
    %cst_9 = arith.constant dense<0.000000e+00> : vector<32x32xf32>
    %12 = tpu.matmul %9, %11, %cst_9 {dimension_numbers = #tpu.dot_dimension_numbers<[1], [0], [0], [1], [0, 0, 1, 1], [], []>} : vector<32x32xbf16>, vector<32x32xbf16>, vector<32x32xf32> -> vector<32x32xf32>
    %c2 = arith.constant 2 : index
    %c0_10 = arith.constant 0 : index
    %c0_11 = arith.constant 0 : index
    %13 = vector.load %arg1[%c2, %c0_10, %c0_11] : memref<4x32x32xbf16, #tpu.memory_space<vmem>>, vector<1x32x32xbf16>
    %14 = vector.shape_cast %13 : vector<1x32x32xbf16> to vector<32x32xbf16>
    %15 = vector.extract_strided_slice %2 {offsets = [0, 64], sizes = [32, 32], strides = [1, 1]} : vector<32x128xf32> to vector<32x32xf32>
    %16 = arith.truncf %15 : vector<32x32xf32> to vector<32x32xbf16>
    %cst_12 = arith.constant dense<0.000000e+00> : vector<32x32xf32>
    %17 = tpu.matmul %14, %16, %cst_12 {dimension_numbers = #tpu.dot_dimension_numbers<[1], [0], [0], [1], [0, 0, 1, 1], [], []>} : vector<32x32xbf16>, vector<32x32xbf16>, vector<32x32xf32> -> vector<32x32xf32>
    %c3 = arith.constant 3 : index
    %c0_13 = arith.constant 0 : index
    %c0_14 = arith.constant 0 : index
    %18 = vector.load %arg1[%c3, %c0_13, %c0_14] : memref<4x32x32xbf16, #tpu.memory_space<vmem>>, vector<1x32x32xbf16>
    %19 = vector.shape_cast %18 : vector<1x32x32xbf16> to vector<32x32xbf16>
    %20 = vector.extract_strided_slice %2 {offsets = [0, 96], sizes = [32, 32], strides = [1, 1]} : vector<32x128xf32> to vector<32x32xf32>
    %21 = arith.truncf %20 : vector<32x32xf32> to vector<32x32xbf16>
    %cst_15 = arith.constant dense<0.000000e+00> : vector<32x32xf32>
    %22 = tpu.matmul %19, %21, %cst_15 {dimension_numbers = #tpu.dot_dimension_numbers<[1], [0], [0], [1], [0, 0, 1, 1], [], []>} : vector<32x32xbf16>, vector<32x32xbf16>, vector<32x32xf32> -> vector<32x32xf32>
    %23 = tpu.concatenate %7, %12, %17, %22 in 1 : vector<32x32xf32>, vector<32x32xf32>, vector<32x32xf32>, vector<32x32xf32> -> vector<32x128xf32>
    %c0_16 = arith.constant 0 : index
    %c0_17 = arith.constant 0 : index
    %24 = vector.load %arg6[%c0_16, %c0_17] : memref<4x128xf32, #tpu.memory_space<vmem>>, vector<1x128xf32>
    %25 = vector.broadcast %24 : vector<1x128xf32> to vector<32x128xf32>
    %26 = arith.mulf %25, %2 : vector<32x128xf32>
    %27 = arith.addf %26, %23 : vector<32x128xf32>
    %c0_18 = arith.constant 0 : index
    %c0_19 = arith.constant 0 : index
    %28 = vector.load %arg5[%c0_18, %c0_19] : memref<4x128xf32, #tpu.memory_space<vmem>>, vector<1x128xf32>
    %29 = vector.broadcast %28 : vector<1x128xf32> to vector<32x128xf32>
    %30 = arith.addf %27, %29 : vector<32x128xf32>
    %cst_20 = arith.constant 0.000000e+00 : f32
    %31 = vector.broadcast %cst_20 : f32 to vector<32x128xf32>
    %32 = arith.maximumf %30, %31 : vector<32x128xf32>
    %c0_21 = arith.constant 0 : index
    %c0_22 = arith.constant 0 : index
    %c0_23 = arith.constant 0 : index
    %33 = vector.load %arg7[%c0_21, %c0_22, %c0_23] : memref<4x128x128xbf16, #tpu.memory_space<vmem>>, vector<1x128x128xbf16>
    %34 = vector.shape_cast %33 : vector<1x128x128xbf16> to vector<128x128xbf16>
    %35 = arith.truncf %32 : vector<32x128xf32> to vector<32x128xbf16>
    %cst_24 = arith.constant dense<0.000000e+00> : vector<32x128xf32>
    %36 = tpu.matmul %35, %34, %cst_24 {dimension_numbers = #tpu.dot_dimension_numbers<[1], [0], [0], [1], [0, 0, 1, 1], [], []>} : vector<32x128xbf16>, vector<128x128xbf16>, vector<32x128xf32> -> vector<32x128xf32>
    %c0_25 = arith.constant 0 : index
    %c0_26 = arith.constant 0 : index
    %37 = vector.load %arg8[%c0_25, %c0_26] : memref<4x128xf32, #tpu.memory_space<vmem>>, vector<1x128xf32>
    %38 = vector.broadcast %37 : vector<1x128xf32> to vector<32x128xf32>
    %39 = arith.addf %36, %38 : vector<32x128xf32>
    %cst_27 = arith.constant 0.000000e+00 : f32
    %40 = vector.broadcast %cst_27 : f32 to vector<32x128xf32>
    %41 = arith.maximumf %39, %40 : vector<32x128xf32>
    %c0_28 = arith.constant 0 : index
    %c0_29 = arith.constant 0 : index
    %c0_30 = arith.constant 0 : index
    %42 = vector.load %arg9[%c0_28, %c0_29, %c0_30] : memref<4x128x32xbf16, #tpu.memory_space<vmem>>, vector<1x128x32xbf16>
    %43 = vector.shape_cast %42 : vector<1x128x32xbf16> to vector<128x32xbf16>
    %44 = arith.truncf %41 : vector<32x128xf32> to vector<32x128xbf16>
    %cst_31 = arith.constant dense<0.000000e+00> : vector<32x32xf32>
    %45 = tpu.matmul %44, %43, %cst_31 {dimension_numbers = #tpu.dot_dimension_numbers<[1], [0], [0], [1], [0, 0, 1, 1], [], []>} : vector<32x128xbf16>, vector<128x32xbf16>, vector<32x32xf32> -> vector<32x32xf32>
    %c0_32 = arith.constant 0 : index
    %c0_33 = arith.constant 0 : index
    %46 = vector.load %arg10[%c0_32, %c0_33] : memref<4x32xf32, #tpu.memory_space<vmem>>, vector<1x32xf32>
    %47 = vector.broadcast %46 : vector<1x32xf32> to vector<32x32xf32>
    %48 = arith.addf %45, %47 : vector<32x32xf32>
    %cst_34 = arith.constant 0.000000e+00 : f32
    %49 = vector.broadcast %cst_34 : f32 to vector<32x32xf32>
    %50 = arith.maximumf %48, %49 : vector<32x32xf32>
    %c0_35 = arith.constant 0 : index
    %c0_36 = arith.constant 0 : index
    %c0_37 = arith.constant 0 : index
    %51 = vector.load %arg11[%c0_35, %c0_36, %c0_37] : memref<4x32x32xbf16, #tpu.memory_space<vmem>>, vector<1x32x32xbf16>
    %52 = vector.shape_cast %51 : vector<1x32x32xbf16> to vector<32x32xbf16>
    %53 = arith.truncf %50 : vector<32x32xf32> to vector<32x32xbf16>
    %cst_38 = arith.constant dense<0.000000e+00> : vector<32x32xf32>
    %54 = tpu.matmul %53, %52, %cst_38 {dimension_numbers = #tpu.dot_dimension_numbers<[1], [0], [0], [1], [0, 0, 1, 1], [], []>} : vector<32x32xbf16>, vector<32x32xbf16>, vector<32x32xf32> -> vector<32x32xf32>
    %c0_39 = arith.constant 0 : index
    %c0_40 = arith.constant 0 : index
    %55 = vector.load %arg12[%c0_39, %c0_40] : memref<4x32xf32, #tpu.memory_space<vmem>>, vector<1x32xf32>
    %56 = vector.broadcast %55 : vector<1x32xf32> to vector<32x32xf32>
    %57 = arith.addf %54, %56 : vector<32x32xf32>
    %cst_41 = arith.constant dense<0.000000e+00> : vector<32xf32>
    %58 = vector.multi_reduction <add>, %57, %cst_41 [0] : vector<32x32xf32> to vector<32xf32>
    %59 = vector.shape_cast %58 : vector<32xf32> to vector<1x32xf32>
    %cst_42 = arith.constant 3.200000e+01 : f32
    %60 = vector.broadcast %cst_42 : f32 to vector<1x32xf32>
    %61 = arith.divf %59, %60 : vector<1x32xf32>
    %62 = vector.broadcast %61 : vector<1x32xf32> to vector<32x32xf32>
    %63 = arith.subf %57, %62 : vector<32x32xf32>
    %64 = vector.broadcast %61 : vector<1x32xf32> to vector<32x32xf32>
    %65 = arith.subf %57, %64 : vector<32x32xf32>
    %66 = arith.mulf %63, %65 : vector<32x32xf32>
    %cst_43 = arith.constant dense<0.000000e+00> : vector<32xf32>
    %67 = vector.multi_reduction <add>, %66, %cst_43 [0] : vector<32x32xf32> to vector<32xf32>
    %68 = vector.shape_cast %67 : vector<32xf32> to vector<1x32xf32>
    %cst_44 = arith.constant 3.200000e+01 : f32
    %69 = vector.broadcast %cst_44 : f32 to vector<1x32xf32>
    %70 = arith.divf %68, %69 : vector<1x32xf32>
    %c0_45 = arith.constant 0 : index
    %c0_46 = arith.constant 0 : index
    %71 = vector.load %arg13[%c0_45, %c0_46] : memref<4x32xf32, #tpu.memory_space<vmem>>, vector<1x32xf32>
    %72 = vector.broadcast %61 : vector<1x32xf32> to vector<32x32xf32>
    %73 = arith.subf %57, %72 : vector<32x32xf32>
    %74 = vector.broadcast %71 : vector<1x32xf32> to vector<32x32xf32>
    %75 = arith.mulf %74, %73 : vector<32x32xf32>
    %cst_47 = arith.constant 9.99999974E-6 : f32
    %76 = vector.broadcast %cst_47 : f32 to vector<1x32xf32>
    %77 = arith.addf %70, %76 : vector<1x32xf32>
    %78 = math.rsqrt %77 : vector<1x32xf32>
    %79 = vector.broadcast %78 : vector<1x32xf32> to vector<32x32xf32>
    %80 = arith.mulf %75, %79 : vector<32x32xf32>
    %c0_48 = arith.constant 0 : index
    %c0_49 = arith.constant 0 : index
    %81 = vector.load %arg14[%c0_48, %c0_49] : memref<4x32xf32, #tpu.memory_space<vmem>>, vector<1x32xf32>
    %82 = vector.broadcast %81 : vector<1x32xf32> to vector<32x32xf32>
    %83 = arith.addf %80, %82 : vector<32x32xf32>
    %c0_50 = arith.constant 0 : index
    %c0_51 = arith.constant 0 : index
    %84 = vector.load %arg24[%c0_50, %c0_51] : memref<32x128xf32, #tpu.memory_space<vmem>>, vector<32x32xf32>
    tpu.vector_store %arg24[%c0_50, %c0_51], %83 {strides = array<i32>} : memref<32x128xf32, #tpu.memory_space<vmem>>, vector<32x32xf32>,
    %c0_52 = arith.constant 0 : index
    %c0_53 = arith.constant 0 : index
    %c0_54 = arith.constant 0 : index
    %85 = vector.load %arg4[%c0_52, %c0_53, %c0_54] : memref<3x32x128xbf16, #tpu.memory_space<vmem>>, vector<1x32x128xbf16>
    %86 = vector.shape_cast %85 : vector<1x32x128xbf16> to vector<32x128xbf16>
    %87 = arith.truncf %83 : vector<32x32xf32> to vector<32x32xbf16>
    %cst_55 = arith.constant dense<0.000000e+00> : vector<32x128xf32>
    %88 = tpu.matmul %87, %86, %cst_55 {dimension_numbers = #tpu.dot_dimension_numbers<[1], [0], [0], [1], [0, 0, 1, 1], [], []>} : vector<32x32xbf16>, vector<32x128xbf16>, vector<32x128xf32> -> vector<32x128xf32>
    %c0_56 = arith.constant 0 : index
    %c0_57 = arith.constant 0 : index
    %c0_58 = arith.constant 0 : index
    %89 = vector.load %arg1[%c0_56, %c0_57, %c0_58] : memref<4x32x32xbf16, #tpu.memory_space<vmem>>, vector<1x32x32xbf16>
    %90 = vector.shape_cast %89 : vector<1x32x32xbf16> to vector<32x32xbf16>
    %91 = vector.extract_strided_slice %88 {offsets = [0, 0], sizes = [32, 32], strides = [1, 1]} : vector<32x128xf32> to vector<32x32xf32>
    %92 = arith.truncf %91 : vector<32x32xf32> to vector<32x32xbf16>
    %cst_59 = arith.constant dense<0.000000e+00> : vector<32x32xf32>
    %93 = tpu.matmul %90, %92, %cst_59 {dimension_numbers = #tpu.dot_dimension_numbers<[1], [0], [0], [1], [0, 0, 1, 1], [], []>} : vector<32x32xbf16>, vector<32x32xbf16>, vector<32x32xf32> -> vector<32x32xf32>
    %c1_60 = arith.constant 1 : index
    %c0_61 = arith.constant 0 : index
    %c0_62 = arith.constant 0 : index
    %94 = vector.load %arg1[%c1_60, %c0_61, %c0_62] : memref<4x32x32xbf16, #tpu.memory_space<vmem>>, vector<1x32x32xbf16>
    %95 = vector.shape_cast %94 : vector<1x32x32xbf16> to vector<32x32xbf16>
    %96 = vector.extract_strided_slice %88 {offsets = [0, 32], sizes = [32, 32], strides = [1, 1]} : vector<32x128xf32> to vector<32x32xf32>
    %97 = arith.truncf %96 : vector<32x32xf32> to vector<32x32xbf16>
    %cst_63 = arith.constant dense<0.000000e+00> : vector<32x32xf32>
    %98 = tpu.matmul %95, %97, %cst_63 {dimension_numbers = #tpu.dot_dimension_numbers<[1], [0], [0], [1], [0, 0, 1, 1], [], []>} : vector<32x32xbf16>, vector<32x32xbf16>, vector<32x32xf32> -> vector<32x32xf32>
    %c2_64 = arith.constant 2 : index
    %c0_65 = arith.constant 0 : index
    %c0_66 = arith.constant 0 : index
    %99 = vector.load %arg1[%c2_64, %c0_65, %c0_66] : memref<4x32x32xbf16, #tpu.memory_space<vmem>>, vector<1x32x32xbf16>
    %100 = vector.shape_cast %99 : vector<1x32x32xbf16> to vector<32x32xbf16>
    %101 = vector.extract_strided_slice %88 {offsets = [0, 64], sizes = [32, 32], strides = [1, 1]} : vector<32x128xf32> to vector<32x32xf32>
    %102 = arith.truncf %101 : vector<32x32xf32> to vector<32x32xbf16>
    %cst_67 = arith.constant dense<0.000000e+00> : vector<32x32xf32>
    %103 = tpu.matmul %100, %102, %cst_67 {dimension_numbers = #tpu.dot_dimension_numbers<[1], [0], [0], [1], [0, 0, 1, 1], [], []>} : vector<32x32xbf16>, vector<32x32xbf16>, vector<32x32xf32> -> vector<32x32xf32>
    %c3_68 = arith.constant 3 : index
    %c0_69 = arith.constant 0 : index
    %c0_70 = arith.constant 0 : index
    %104 = vector.load %arg1[%c3_68, %c0_69, %c0_70] : memref<4x32x32xbf16, #tpu.memory_space<vmem>>, vector<1x32x32xbf16>
    %105 = vector.shape_cast %104 : vector<1x32x32xbf16> to vector<32x32xbf16>
    %106 = vector.extract_strided_slice %88 {offsets = [0, 96], sizes = [32, 32], strides = [1, 1]} : vector<32x128xf32> to vector<32x32xf32>
    %107 = arith.truncf %106 : vector<32x32xf32> to vector<32x32xbf16>
    %cst_71 = arith.constant dense<0.000000e+00> : vector<32x32xf32>
    %108 = tpu.matmul %105, %107, %cst_71 {dimension_numbers = #tpu.dot_dimension_numbers<[1], [0], [0], [1], [0, 0, 1, 1], [], []>} : vector<32x32xbf16>, vector<32x32xbf16>, vector<32x32xf32> -> vector<32x32xf32>
    %109 = tpu.concatenate %93, %98, %103, %108 in 1 : vector<32x32xf32>, vector<32x32xf32>, vector<32x32xf32>, vector<32x32xf32> -> vector<32x128xf32>
    %c1_72 = arith.constant 1 : index
    %c0_73 = arith.constant 0 : index
    %110 = vector.load %arg6[%c1_72, %c0_73] : memref<4x128xf32, #tpu.memory_space<vmem>>, vector<1x128xf32>
    %111 = vector.broadcast %110 : vector<1x128xf32> to vector<32x128xf32>
    %112 = arith.mulf %111, %88 : vector<32x128xf32>
    %113 = arith.addf %112, %109 : vector<32x128xf32>
    %c1_74 = arith.constant 1 : index
    %c0_75 = arith.constant 0 : index
    %114 = vector.load %arg5[%c1_74, %c0_75] : memref<4x128xf32, #tpu.memory_space<vmem>>, vector<1x128xf32>
    %115 = vector.broadcast %114 : vector<1x128xf32> to vector<32x128xf32>
    %116 = arith.addf %113, %115 : vector<32x128xf32>
    %cst_76 = arith.constant 0.000000e+00 : f32
    %117 = vector.broadcast %cst_76 : f32 to vector<32x128xf32>
    %118 = arith.maximumf %116, %117 : vector<32x128xf32>
    %c1_77 = arith.constant 1 : index
    %c0_78 = arith.constant 0 : index
    %c0_79 = arith.constant 0 : index
    %119 = vector.load %arg7[%c1_77, %c0_78, %c0_79] : memref<4x128x128xbf16, #tpu.memory_space<vmem>>, vector<1x128x128xbf16>
    %120 = vector.shape_cast %119 : vector<1x128x128xbf16> to vector<128x128xbf16>
    %121 = arith.truncf %118 : vector<32x128xf32> to vector<32x128xbf16>
    %cst_80 = arith.constant dense<0.000000e+00> : vector<32x128xf32>
    %122 = tpu.matmul %121, %120, %cst_80 {dimension_numbers = #tpu.dot_dimension_numbers<[1], [0], [0], [1], [0, 0, 1, 1], [], []>} : vector<32x128xbf16>, vector<128x128xbf16>, vector<32x128xf32> -> vector<32x128xf32>
    %c1_81 = arith.constant 1 : index
    %c0_82 = arith.constant 0 : index
    %123 = vector.load %arg8[%c1_81, %c0_82] : memref<4x128xf32, #tpu.memory_space<vmem>>, vector<1x128xf32>
    %124 = vector.broadcast %123 : vector<1x128xf32> to vector<32x128xf32>
    %125 = arith.addf %122, %124 : vector<32x128xf32>
    %cst_83 = arith.constant 0.000000e+00 : f32
    %126 = vector.broadcast %cst_83 : f32 to vector<32x128xf32>
    %127 = arith.maximumf %125, %126 : vector<32x128xf32>
    %c1_84 = arith.constant 1 : index
    %c0_85 = arith.constant 0 : index
    %c0_86 = arith.constant 0 : index
    %128 = vector.load %arg9[%c1_84, %c0_85, %c0_86] : memref<4x128x32xbf16, #tpu.memory_space<vmem>>, vector<1x128x32xbf16>
    %129 = vector.shape_cast %128 : vector<1x128x32xbf16> to vector<128x32xbf16>
    %130 = arith.truncf %127 : vector<32x128xf32> to vector<32x128xbf16>
    %cst_87 = arith.constant dense<0.000000e+00> : vector<32x32xf32>
    %131 = tpu.matmul %130, %129, %cst_87 {dimension_numbers = #tpu.dot_dimension_numbers<[1], [0], [0], [1], [0, 0, 1, 1], [], []>} : vector<32x128xbf16>, vector<128x32xbf16>, vector<32x32xf32> -> vector<32x32xf32>
    %c1_88 = arith.constant 1 : index
    %c0_89 = arith.constant 0 : index
    %132 = vector.load %arg10[%c1_88, %c0_89] : memref<4x32xf32, #tpu.memory_space<vmem>>, vector<1x32xf32>
    %133 = vector.broadcast %132 : vector<1x32xf32> to vector<32x32xf32>
    %134 = arith.addf %131, %133 : vector<32x32xf32>
    %cst_90 = arith.constant 0.000000e+00 : f32
    %135 = vector.broadcast %cst_90 : f32 to vector<32x32xf32>
    %136 = arith.maximumf %134, %135 : vector<32x32xf32>
    %c1_91 = arith.constant 1 : index
    %c0_92 = arith.constant 0 : index
    %c0_93 = arith.constant 0 : index
    %137 = vector.load %arg11[%c1_91, %c0_92, %c0_93] : memref<4x32x32xbf16, #tpu.memory_space<vmem>>, vector<1x32x32xbf16>
    %138 = vector.shape_cast %137 : vector<1x32x32xbf16> to vector<32x32xbf16>
    %139 = arith.truncf %136 : vector<32x32xf32> to vector<32x32xbf16>
    %cst_94 = arith.constant dense<0.000000e+00> : vector<32x32xf32>
    %140 = tpu.matmul %139, %138, %cst_94 {dimension_numbers = #tpu.dot_dimension_numbers<[1], [0], [0], [1], [0, 0, 1, 1], [], []>} : vector<32x32xbf16>, vector<32x32xbf16>, vector<32x32xf32> -> vector<32x32xf32>
    %c1_95 = arith.constant 1 : index
    %c0_96 = arith.constant 0 : index
    %141 = vector.load %arg12[%c1_95, %c0_96] : memref<4x32xf32, #tpu.memory_space<vmem>>, vector<1x32xf32>
    %142 = vector.broadcast %141 : vector<1x32xf32> to vector<32x32xf32>
    %143 = arith.addf %140, %142 : vector<32x32xf32>
    %cst_97 = arith.constant dense<0.000000e+00> : vector<32xf32>
    %144 = vector.multi_reduction <add>, %143, %cst_97 [0] : vector<32x32xf32> to vector<32xf32>
    %145 = vector.shape_cast %144 : vector<32xf32> to vector<1x32xf32>
    %cst_98 = arith.constant 3.200000e+01 : f32
    %146 = vector.broadcast %cst_98 : f32 to vector<1x32xf32>
    %147 = arith.divf %145, %146 : vector<1x32xf32>
    %148 = vector.broadcast %147 : vector<1x32xf32> to vector<32x32xf32>
    %149 = arith.subf %143, %148 : vector<32x32xf32>
    %150 = vector.broadcast %147 : vector<1x32xf32> to vector<32x32xf32>
    %151 = arith.subf %143, %150 : vector<32x32xf32>
    %152 = arith.mulf %149, %151 : vector<32x32xf32>
    %cst_99 = arith.constant dense<0.000000e+00> : vector<32xf32>
    %153 = vector.multi_reduction <add>, %152, %cst_99 [0] : vector<32x32xf32> to vector<32xf32>
    %154 = vector.shape_cast %153 : vector<32xf32> to vector<1x32xf32>
    %cst_100 = arith.constant 3.200000e+01 : f32
    %155 = vector.broadcast %cst_100 : f32 to vector<1x32xf32>
    %156 = arith.divf %154, %155 : vector<1x32xf32>
    %c1_101 = arith.constant 1 : index
    %c0_102 = arith.constant 0 : index
    %157 = vector.load %arg13[%c1_101, %c0_102] : memref<4x32xf32, #tpu.memory_space<vmem>>, vector<1x32xf32>
    %158 = vector.broadcast %147 : vector<1x32xf32> to vector<32x32xf32>
    %159 = arith.subf %143, %158 : vector<32x32xf32>
    %160 = vector.broadcast %157 : vector<1x32xf32> to vector<32x32xf32>
    %161 = arith.mulf %160, %159 : vector<32x32xf32>
    %cst_103 = arith.constant 9.99999974E-6 : f32
    %162 = vector.broadcast %cst_103 : f32 to vector<1x32xf32>
    %163 = arith.addf %156, %162 : vector<1x32xf32>
    %164 = math.rsqrt %163 : vector<1x32xf32>
    %165 = vector.broadcast %164 : vector<1x32xf32> to vector<32x32xf32>
    %166 = arith.mulf %161, %165 : vector<32x32xf32>
    %c1_104 = arith.constant 1 : index
    %c0_105 = arith.constant 0 : index
    %167 = vector.load %arg14[%c1_104, %c0_105] : memref<4x32xf32, #tpu.memory_space<vmem>>, vector<1x32xf32>
    %168 = vector.broadcast %167 : vector<1x32xf32> to vector<32x32xf32>
    %169 = arith.addf %166, %168 : vector<32x32xf32>
    %c0_106 = arith.constant 0 : index
    %c32 = arith.constant 32 : index
    %170 = vector.load %arg24[%c0_106, %c32] : memref<32x128xf32, #tpu.memory_space<vmem>>, vector<32x32xf32>
    tpu.vector_store %arg24[%c0_106, %c32], %169 {strides = array<i32>} : memref<32x128xf32, #tpu.memory_space<vmem>>, vector<32x32xf32>,
    %c1_107 = arith.constant 1 : index
    %c0_108 = arith.constant 0 : index
    %c0_109 = arith.constant 0 : index
    %171 = vector.load %arg4[%c1_107, %c0_108, %c0_109] : memref<3x32x128xbf16, #tpu.memory_space<vmem>>, vector<1x32x128xbf16>
    %172 = vector.shape_cast %171 : vector<1x32x128xbf16> to vector<32x128xbf16>
    %173 = arith.truncf %169 : vector<32x32xf32> to vector<32x32xbf16>
    %cst_110 = arith.constant dense<0.000000e+00> : vector<32x128xf32>
    %174 = tpu.matmul %173, %172, %cst_110 {dimension_numbers = #tpu.dot_dimension_numbers<[1], [0], [0], [1], [0, 0, 1, 1], [], []>} : vector<32x32xbf16>, vector<32x128xbf16>, vector<32x128xf32> -> vector<32x128xf32>
    %c0_111 = arith.constant 0 : index
    %c0_112 = arith.constant 0 : index
    %c0_113 = arith.constant 0 : index
    %175 = vector.load %arg1[%c0_111, %c0_112, %c0_113] : memref<4x32x32xbf16, #tpu.memory_space<vmem>>, vector<1x32x32xbf16>
    %176 = vector.shape_cast %175 : vector<1x32x32xbf16> to vector<32x32xbf16>
    %177 = vector.extract_strided_slice %174 {offsets = [0, 0], sizes = [32, 32], strides = [1, 1]} : vector<32x128xf32> to vector<32x32xf32>
    %178 = arith.truncf %177 : vector<32x32xf32> to vector<32x32xbf16>
    %cst_114 = arith.constant dense<0.000000e+00> : vector<32x32xf32>
    %179 = tpu.matmul %176, %178, %cst_114 {dimension_numbers = #tpu.dot_dimension_numbers<[1], [0], [0], [1], [0, 0, 1, 1], [], []>} : vector<32x32xbf16>, vector<32x32xbf16>, vector<32x32xf32> -> vector<32x32xf32>
    %c1_115 = arith.constant 1 : index
    %c0_116 = arith.constant 0 : index
    %c0_117 = arith.constant 0 : index
    %180 = vector.load %arg1[%c1_115, %c0_116, %c0_117] : memref<4x32x32xbf16, #tpu.memory_space<vmem>>, vector<1x32x32xbf16>
    %181 = vector.shape_cast %180 : vector<1x32x32xbf16> to vector<32x32xbf16>
    %182 = vector.extract_strided_slice %174 {offsets = [0, 32], sizes = [32, 32], strides = [1, 1]} : vector<32x128xf32> to vector<32x32xf32>
    %183 = arith.truncf %182 : vector<32x32xf32> to vector<32x32xbf16>
    %cst_118 = arith.constant dense<0.000000e+00> : vector<32x32xf32>
    %184 = tpu.matmul %181, %183, %cst_118 {dimension_numbers = #tpu.dot_dimension_numbers<[1], [0], [0], [1], [0, 0, 1, 1], [], []>} : vector<32x32xbf16>, vector<32x32xbf16>, vector<32x32xf32> -> vector<32x32xf32>
    %c2_119 = arith.constant 2 : index
    %c0_120 = arith.constant 0 : index
    %c0_121 = arith.constant 0 : index
    %185 = vector.load %arg1[%c2_119, %c0_120, %c0_121] : memref<4x32x32xbf16, #tpu.memory_space<vmem>>, vector<1x32x32xbf16>
    %186 = vector.shape_cast %185 : vector<1x32x32xbf16> to vector<32x32xbf16>
    %187 = vector.extract_strided_slice %174 {offsets = [0, 64], sizes = [32, 32], strides = [1, 1]} : vector<32x128xf32> to vector<32x32xf32>
    %188 = arith.truncf %187 : vector<32x32xf32> to vector<32x32xbf16>
    %cst_122 = arith.constant dense<0.000000e+00> : vector<32x32xf32>
    %189 = tpu.matmul %186, %188, %cst_122 {dimension_numbers = #tpu.dot_dimension_numbers<[1], [0], [0], [1], [0, 0, 1, 1], [], []>} : vector<32x32xbf16>, vector<32x32xbf16>, vector<32x32xf32> -> vector<32x32xf32>
    %c3_123 = arith.constant 3 : index
    %c0_124 = arith.constant 0 : index
    %c0_125 = arith.constant 0 : index
    %190 = vector.load %arg1[%c3_123, %c0_124, %c0_125] : memref<4x32x32xbf16, #tpu.memory_space<vmem>>, vector<1x32x32xbf16>
    %191 = vector.shape_cast %190 : vector<1x32x32xbf16> to vector<32x32xbf16>
    %192 = vector.extract_strided_slice %174 {offsets = [0, 96], sizes = [32, 32], strides = [1, 1]} : vector<32x128xf32> to vector<32x32xf32>
    %193 = arith.truncf %192 : vector<32x32xf32> to vector<32x32xbf16>
    %cst_126 = arith.constant dense<0.000000e+00> : vector<32x32xf32>
    %194 = tpu.matmul %191, %193, %cst_126 {dimension_numbers = #tpu.dot_dimension_numbers<[1], [0], [0], [1], [0, 0, 1, 1], [], []>} : vector<32x32xbf16>, vector<32x32xbf16>, vector<32x32xf32> -> vector<32x32xf32>
    %195 = tpu.concatenate %179, %184, %189, %194 in 1 : vector<32x32xf32>, vector<32x32xf32>, vector<32x32xf32>, vector<32x32xf32> -> vector<32x128xf32>
    %c2_127 = arith.constant 2 : index
    %c0_128 = arith.constant 0 : index
    %196 = vector.load %arg6[%c2_127, %c0_128] : memref<4x128xf32, #tpu.memory_space<vmem>>, vector<1x128xf32>
    %197 = vector.broadcast %196 : vector<1x128xf32> to vector<32x128xf32>
    %198 = arith.mulf %197, %174 : vector<32x128xf32>
    %199 = arith.addf %198, %195 : vector<32x128xf32>
    %c2_129 = arith.constant 2 : index
    %c0_130 = arith.constant 0 : index
    %200 = vector.load %arg5[%c2_129, %c0_130] : memref<4x128xf32, #tpu.memory_space<vmem>>, vector<1x128xf32>
    %201 = vector.broadcast %200 : vector<1x128xf32> to vector<32x128xf32>
    %202 = arith.addf %199, %201 : vector<32x128xf32>
    %cst_131 = arith.constant 0.000000e+00 : f32
    %203 = vector.broadcast %cst_131 : f32 to vector<32x128xf32>
    %204 = arith.maximumf %202, %203 : vector<32x128xf32>
    %c2_132 = arith.constant 2 : index
    %c0_133 = arith.constant 0 : index
    %c0_134 = arith.constant 0 : index
    %205 = vector.load %arg7[%c2_132, %c0_133, %c0_134] : memref<4x128x128xbf16, #tpu.memory_space<vmem>>, vector<1x128x128xbf16>
    %206 = vector.shape_cast %205 : vector<1x128x128xbf16> to vector<128x128xbf16>
    %207 = arith.truncf %204 : vector<32x128xf32> to vector<32x128xbf16>
    %cst_135 = arith.constant dense<0.000000e+00> : vector<32x128xf32>
    %208 = tpu.matmul %207, %206, %cst_135 {dimension_numbers = #tpu.dot_dimension_numbers<[1], [0], [0], [1], [0, 0, 1, 1], [], []>} : vector<32x128xbf16>, vector<128x128xbf16>, vector<32x128xf32> -> vector<32x128xf32>
    %c2_136 = arith.constant 2 : index
    %c0_137 = arith.constant 0 : index
    %209 = vector.load %arg8[%c2_136, %c0_137] : memref<4x128xf32, #tpu.memory_space<vmem>>, vector<1x128xf32>
    %210 = vector.broadcast %209 : vector<1x128xf32> to vector<32x128xf32>
    %211 = arith.addf %208, %210 : vector<32x128xf32>
    %cst_138 = arith.constant 0.000000e+00 : f32
    %212 = vector.broadcast %cst_138 : f32 to vector<32x128xf32>
    %213 = arith.maximumf %211, %212 : vector<32x128xf32>
    %c2_139 = arith.constant 2 : index
    %c0_140 = arith.constant 0 : index
    %c0_141 = arith.constant 0 : index
    %214 = vector.load %arg9[%c2_139, %c0_140, %c0_141] : memref<4x128x32xbf16, #tpu.memory_space<vmem>>, vector<1x128x32xbf16>
    %215 = vector.shape_cast %214 : vector<1x128x32xbf16> to vector<128x32xbf16>
    %216 = arith.truncf %213 : vector<32x128xf32> to vector<32x128xbf16>
    %cst_142 = arith.constant dense<0.000000e+00> : vector<32x32xf32>
    %217 = tpu.matmul %216, %215, %cst_142 {dimension_numbers = #tpu.dot_dimension_numbers<[1], [0], [0], [1], [0, 0, 1, 1], [], []>} : vector<32x128xbf16>, vector<128x32xbf16>, vector<32x32xf32> -> vector<32x32xf32>
    %c2_143 = arith.constant 2 : index
    %c0_144 = arith.constant 0 : index
    %218 = vector.load %arg10[%c2_143, %c0_144] : memref<4x32xf32, #tpu.memory_space<vmem>>, vector<1x32xf32>
    %219 = vector.broadcast %218 : vector<1x32xf32> to vector<32x32xf32>
    %220 = arith.addf %217, %219 : vector<32x32xf32>
    %cst_145 = arith.constant 0.000000e+00 : f32
    %221 = vector.broadcast %cst_145 : f32 to vector<32x32xf32>
    %222 = arith.maximumf %220, %221 : vector<32x32xf32>
    %c2_146 = arith.constant 2 : index
    %c0_147 = arith.constant 0 : index
    %c0_148 = arith.constant 0 : index
    %223 = vector.load %arg11[%c2_146, %c0_147, %c0_148] : memref<4x32x32xbf16, #tpu.memory_space<vmem>>, vector<1x32x32xbf16>
    %224 = vector.shape_cast %223 : vector<1x32x32xbf16> to vector<32x32xbf16>
    %225 = arith.truncf %222 : vector<32x32xf32> to vector<32x32xbf16>
    %cst_149 = arith.constant dense<0.000000e+00> : vector<32x32xf32>
    %226 = tpu.matmul %225, %224, %cst_149 {dimension_numbers = #tpu.dot_dimension_numbers<[1], [0], [0], [1], [0, 0, 1, 1], [], []>} : vector<32x32xbf16>, vector<32x32xbf16>, vector<32x32xf32> -> vector<32x32xf32>
    %c2_150 = arith.constant 2 : index
    %c0_151 = arith.constant 0 : index
    %227 = vector.load %arg12[%c2_150, %c0_151] : memref<4x32xf32, #tpu.memory_space<vmem>>, vector<1x32xf32>
    %228 = vector.broadcast %227 : vector<1x32xf32> to vector<32x32xf32>
    %229 = arith.addf %226, %228 : vector<32x32xf32>
    %cst_152 = arith.constant dense<0.000000e+00> : vector<32xf32>
    %230 = vector.multi_reduction <add>, %229, %cst_152 [0] : vector<32x32xf32> to vector<32xf32>
    %231 = vector.shape_cast %230 : vector<32xf32> to vector<1x32xf32>
    %cst_153 = arith.constant 3.200000e+01 : f32
    %232 = vector.broadcast %cst_153 : f32 to vector<1x32xf32>
    %233 = arith.divf %231, %232 : vector<1x32xf32>
    %234 = vector.broadcast %233 : vector<1x32xf32> to vector<32x32xf32>
    %235 = arith.subf %229, %234 : vector<32x32xf32>
    %236 = vector.broadcast %233 : vector<1x32xf32> to vector<32x32xf32>
    %237 = arith.subf %229, %236 : vector<32x32xf32>
    %238 = arith.mulf %235, %237 : vector<32x32xf32>
    %cst_154 = arith.constant dense<0.000000e+00> : vector<32xf32>
    %239 = vector.multi_reduction <add>, %238, %cst_154 [0] : vector<32x32xf32> to vector<32xf32>
    %240 = vector.shape_cast %239 : vector<32xf32> to vector<1x32xf32>
    %cst_155 = arith.constant 3.200000e+01 : f32
    %241 = vector.broadcast %cst_155 : f32 to vector<1x32xf32>
    %242 = arith.divf %240, %241 : vector<1x32xf32>
    %c2_156 = arith.constant 2 : index
    %c0_157 = arith.constant 0 : index
    %243 = vector.load %arg13[%c2_156, %c0_157] : memref<4x32xf32, #tpu.memory_space<vmem>>, vector<1x32xf32>
    %244 = vector.broadcast %233 : vector<1x32xf32> to vector<32x32xf32>
    %245 = arith.subf %229, %244 : vector<32x32xf32>
    %246 = vector.broadcast %243 : vector<1x32xf32> to vector<32x32xf32>
    %247 = arith.mulf %246, %245 : vector<32x32xf32>
    %cst_158 = arith.constant 9.99999974E-6 : f32
    %248 = vector.broadcast %cst_158 : f32 to vector<1x32xf32>
    %249 = arith.addf %242, %248 : vector<1x32xf32>
    %250 = math.rsqrt %249 : vector<1x32xf32>
    %251 = vector.broadcast %250 : vector<1x32xf32> to vector<32x32xf32>
    %252 = arith.mulf %247, %251 : vector<32x32xf32>
    %c2_159 = arith.constant 2 : index
    %c0_160 = arith.constant 0 : index
    %253 = vector.load %arg14[%c2_159, %c0_160] : memref<4x32xf32, #tpu.memory_space<vmem>>, vector<1x32xf32>
    %254 = vector.broadcast %253 : vector<1x32xf32> to vector<32x32xf32>
    %255 = arith.addf %252, %254 : vector<32x32xf32>
    %c0_161 = arith.constant 0 : index
    %c64 = arith.constant 64 : index
    %256 = vector.load %arg24[%c0_161, %c64] : memref<32x128xf32, #tpu.memory_space<vmem>>, vector<32x32xf32>
    tpu.vector_store %arg24[%c0_161, %c64], %255 {strides = array<i32>} : memref<32x128xf32, #tpu.memory_space<vmem>>, vector<32x32xf32>,
    %c2_162 = arith.constant 2 : index
    %c0_163 = arith.constant 0 : index
    %c0_164 = arith.constant 0 : index
    %257 = vector.load %arg4[%c2_162, %c0_163, %c0_164] : memref<3x32x128xbf16, #tpu.memory_space<vmem>>, vector<1x32x128xbf16>
    %258 = vector.shape_cast %257 : vector<1x32x128xbf16> to vector<32x128xbf16>
    %259 = arith.truncf %255 : vector<32x32xf32> to vector<32x32xbf16>
    %cst_165 = arith.constant dense<0.000000e+00> : vector<32x128xf32>
    %260 = tpu.matmul %259, %258, %cst_165 {dimension_numbers = #tpu.dot_dimension_numbers<[1], [0], [0], [1], [0, 0, 1, 1], [], []>} : vector<32x32xbf16>, vector<32x128xbf16>, vector<32x128xf32> -> vector<32x128xf32>
    %c0_166 = arith.constant 0 : index
    %c0_167 = arith.constant 0 : index
    %c0_168 = arith.constant 0 : index
    %261 = vector.load %arg1[%c0_166, %c0_167, %c0_168] : memref<4x32x32xbf16, #tpu.memory_space<vmem>>, vector<1x32x32xbf16>
    %262 = vector.shape_cast %261 : vector<1x32x32xbf16> to vector<32x32xbf16>
    %263 = vector.extract_strided_slice %260 {offsets = [0, 0], sizes = [32, 32], strides = [1, 1]} : vector<32x128xf32> to vector<32x32xf32>
    %264 = arith.truncf %263 : vector<32x32xf32> to vector<32x32xbf16>
    %cst_169 = arith.constant dense<0.000000e+00> : vector<32x32xf32>
    %265 = tpu.matmul %262, %264, %cst_169 {dimension_numbers = #tpu.dot_dimension_numbers<[1], [0], [0], [1], [0, 0, 1, 1], [], []>} : vector<32x32xbf16>, vector<32x32xbf16>, vector<32x32xf32> -> vector<32x32xf32>
    %c1_170 = arith.constant 1 : index
    %c0_171 = arith.constant 0 : index
    %c0_172 = arith.constant 0 : index
    %266 = vector.load %arg1[%c1_170, %c0_171, %c0_172] : memref<4x32x32xbf16, #tpu.memory_space<vmem>>, vector<1x32x32xbf16>
    %267 = vector.shape_cast %266 : vector<1x32x32xbf16> to vector<32x32xbf16>
    %268 = vector.extract_strided_slice %260 {offsets = [0, 32], sizes = [32, 32], strides = [1, 1]} : vector<32x128xf32> to vector<32x32xf32>
    %269 = arith.truncf %268 : vector<32x32xf32> to vector<32x32xbf16>
    %cst_173 = arith.constant dense<0.000000e+00> : vector<32x32xf32>
    %270 = tpu.matmul %267, %269, %cst_173 {dimension_numbers = #tpu.dot_dimension_numbers<[1], [0], [0], [1], [0, 0, 1, 1], [], []>} : vector<32x32xbf16>, vector<32x32xbf16>, vector<32x32xf32> -> vector<32x32xf32>
    %c2_174 = arith.constant 2 : index
    %c0_175 = arith.constant 0 : index
    %c0_176 = arith.constant 0 : index
    %271 = vector.load %arg1[%c2_174, %c0_175, %c0_176] : memref<4x32x32xbf16, #tpu.memory_space<vmem>>, vector<1x32x32xbf16>
    %272 = vector.shape_cast %271 : vector<1x32x32xbf16> to vector<32x32xbf16>
    %273 = vector.extract_strided_slice %260 {offsets = [0, 64], sizes = [32, 32], strides = [1, 1]} : vector<32x128xf32> to vector<32x32xf32>
    %274 = arith.truncf %273 : vector<32x32xf32> to vector<32x32xbf16>
    %cst_177 = arith.constant dense<0.000000e+00> : vector<32x32xf32>
    %275 = tpu.matmul %272, %274, %cst_177 {dimension_numbers = #tpu.dot_dimension_numbers<[1], [0], [0], [1], [0, 0, 1, 1], [], []>} : vector<32x32xbf16>, vector<32x32xbf16>, vector<32x32xf32> -> vector<32x32xf32>
    %c3_178 = arith.constant 3 : index
    %c0_179 = arith.constant 0 : index
    %c0_180 = arith.constant 0 : index
    %276 = vector.load %arg1[%c3_178, %c0_179, %c0_180] : memref<4x32x32xbf16, #tpu.memory_space<vmem>>, vector<1x32x32xbf16>
    %277 = vector.shape_cast %276 : vector<1x32x32xbf16> to vector<32x32xbf16>
    %278 = vector.extract_strided_slice %260 {offsets = [0, 96], sizes = [32, 32], strides = [1, 1]} : vector<32x128xf32> to vector<32x32xf32>
    %279 = arith.truncf %278 : vector<32x32xf32> to vector<32x32xbf16>
    %cst_181 = arith.constant dense<0.000000e+00> : vector<32x32xf32>
    %280 = tpu.matmul %277, %279, %cst_181 {dimension_numbers = #tpu.dot_dimension_numbers<[1], [0], [0], [1], [0, 0, 1, 1], [], []>} : vector<32x32xbf16>, vector<32x32xbf16>, vector<32x32xf32> -> vector<32x32xf32>
    %281 = tpu.concatenate %265, %270, %275, %280 in 1 : vector<32x32xf32>, vector<32x32xf32>, vector<32x32xf32>, vector<32x32xf32> -> vector<32x128xf32>
    %c3_182 = arith.constant 3 : index
    %c0_183 = arith.constant 0 : index
    %282 = vector.load %arg6[%c3_182, %c0_183] : memref<4x128xf32, #tpu.memory_space<vmem>>, vector<1x128xf32>
    %283 = vector.broadcast %282 : vector<1x128xf32> to vector<32x128xf32>
    %284 = arith.mulf %283, %260 : vector<32x128xf32>
    %285 = arith.addf %284, %281 : vector<32x128xf32>
    %c3_184 = arith.constant 3 : index
    %c0_185 = arith.constant 0 : index
    %286 = vector.load %arg5[%c3_184, %c0_185] : memref<4x128xf32, #tpu.memory_space<vmem>>, vector<1x128xf32>
    %287 = vector.broadcast %286 : vector<1x128xf32> to vector<32x128xf32>
    %288 = arith.addf %285, %287 : vector<32x128xf32>
    %cst_186 = arith.constant 0.000000e+00 : f32
    %289 = vector.broadcast %cst_186 : f32 to vector<32x128xf32>
    %290 = arith.maximumf %288, %289 : vector<32x128xf32>
    %c3_187 = arith.constant 3 : index
    %c0_188 = arith.constant 0 : index
    %c0_189 = arith.constant 0 : index
    %291 = vector.load %arg7[%c3_187, %c0_188, %c0_189] : memref<4x128x128xbf16, #tpu.memory_space<vmem>>, vector<1x128x128xbf16>
    %292 = vector.shape_cast %291 : vector<1x128x128xbf16> to vector<128x128xbf16>
    %293 = arith.truncf %290 : vector<32x128xf32> to vector<32x128xbf16>
    %cst_190 = arith.constant dense<0.000000e+00> : vector<32x128xf32>
    %294 = tpu.matmul %293, %292, %cst_190 {dimension_numbers = #tpu.dot_dimension_numbers<[1], [0], [0], [1], [0, 0, 1, 1], [], []>} : vector<32x128xbf16>, vector<128x128xbf16>, vector<32x128xf32> -> vector<32x128xf32>
    %c3_191 = arith.constant 3 : index
    %c0_192 = arith.constant 0 : index
    %295 = vector.load %arg8[%c3_191, %c0_192] : memref<4x128xf32, #tpu.memory_space<vmem>>, vector<1x128xf32>
    %296 = vector.broadcast %295 : vector<1x128xf32> to vector<32x128xf32>
    %297 = arith.addf %294, %296 : vector<32x128xf32>
    %cst_193 = arith.constant 0.000000e+00 : f32
    %298 = vector.broadcast %cst_193 : f32 to vector<32x128xf32>
    %299 = arith.maximumf %297, %298 : vector<32x128xf32>
    %c3_194 = arith.constant 3 : index
    %c0_195 = arith.constant 0 : index
    %c0_196 = arith.constant 0 : index
    %300 = vector.load %arg9[%c3_194, %c0_195, %c0_196] : memref<4x128x32xbf16, #tpu.memory_space<vmem>>, vector<1x128x32xbf16>
    %301 = vector.shape_cast %300 : vector<1x128x32xbf16> to vector<128x32xbf16>
    %302 = arith.truncf %299 : vector<32x128xf32> to vector<32x128xbf16>
    %cst_197 = arith.constant dense<0.000000e+00> : vector<32x32xf32>
    %303 = tpu.matmul %302, %301, %cst_197 {dimension_numbers = #tpu.dot_dimension_numbers<[1], [0], [0], [1], [0, 0, 1, 1], [], []>} : vector<32x128xbf16>, vector<128x32xbf16>, vector<32x32xf32> -> vector<32x32xf32>
    %c3_198 = arith.constant 3 : index
    %c0_199 = arith.constant 0 : index
    %304 = vector.load %arg10[%c3_198, %c0_199] : memref<4x32xf32, #tpu.memory_space<vmem>>, vector<1x32xf32>
    %305 = vector.broadcast %304 : vector<1x32xf32> to vector<32x32xf32>
    %306 = arith.addf %303, %305 : vector<32x32xf32>
    %cst_200 = arith.constant 0.000000e+00 : f32
    %307 = vector.broadcast %cst_200 : f32 to vector<32x32xf32>
    %308 = arith.maximumf %306, %307 : vector<32x32xf32>
    %c3_201 = arith.constant 3 : index
    %c0_202 = arith.constant 0 : index
    %c0_203 = arith.constant 0 : index
    %309 = vector.load %arg11[%c3_201, %c0_202, %c0_203] : memref<4x32x32xbf16, #tpu.memory_space<vmem>>, vector<1x32x32xbf16>
    %310 = vector.shape_cast %309 : vector<1x32x32xbf16> to vector<32x32xbf16>
    %311 = arith.truncf %308 : vector<32x32xf32> to vector<32x32xbf16>
    %cst_204 = arith.constant dense<0.000000e+00> : vector<32x32xf32>
    %312 = tpu.matmul %311, %310, %cst_204 {dimension_numbers = #tpu.dot_dimension_numbers<[1], [0], [0], [1], [0, 0, 1, 1], [], []>} : vector<32x32xbf16>, vector<32x32xbf16>, vector<32x32xf32> -> vector<32x32xf32>
    %c3_205 = arith.constant 3 : index
    %c0_206 = arith.constant 0 : index
    %313 = vector.load %arg12[%c3_205, %c0_206] : memref<4x32xf32, #tpu.memory_space<vmem>>, vector<1x32xf32>
    %314 = vector.broadcast %313 : vector<1x32xf32> to vector<32x32xf32>
    %315 = arith.addf %312, %314 : vector<32x32xf32>
    %cst_207 = arith.constant dense<0.000000e+00> : vector<32xf32>
    %316 = vector.multi_reduction <add>, %315, %cst_207 [0] : vector<32x32xf32> to vector<32xf32>
    %317 = vector.shape_cast %316 : vector<32xf32> to vector<1x32xf32>
    %cst_208 = arith.constant 3.200000e+01 : f32
    %318 = vector.broadcast %cst_208 : f32 to vector<1x32xf32>
    %319 = arith.divf %317, %318 : vector<1x32xf32>
    %320 = vector.broadcast %319 : vector<1x32xf32> to vector<32x32xf32>
    %321 = arith.subf %315, %320 : vector<32x32xf32>
    %322 = vector.broadcast %319 : vector<1x32xf32> to vector<32x32xf32>
    %323 = arith.subf %315, %322 : vector<32x32xf32>
    %324 = arith.mulf %321, %323 : vector<32x32xf32>
    %cst_209 = arith.constant dense<0.000000e+00> : vector<32xf32>
    %325 = vector.multi_reduction <add>, %324, %cst_209 [0] : vector<32x32xf32> to vector<32xf32>
    %326 = vector.shape_cast %325 : vector<32xf32> to vector<1x32xf32>
    %cst_210 = arith.constant 3.200000e+01 : f32
    %327 = vector.broadcast %cst_210 : f32 to vector<1x32xf32>
    %328 = arith.divf %326, %327 : vector<1x32xf32>
    %c3_211 = arith.constant 3 : index
    %c0_212 = arith.constant 0 : index
    %329 = vector.load %arg13[%c3_211, %c0_212] : memref<4x32xf32, #tpu.memory_space<vmem>>, vector<1x32xf32>
    %330 = vector.broadcast %319 : vector<1x32xf32> to vector<32x32xf32>
    %331 = arith.subf %315, %330 : vector<32x32xf32>
    %332 = vector.broadcast %329 : vector<1x32xf32> to vector<32x32xf32>
    %333 = arith.mulf %332, %331 : vector<32x32xf32>
    %cst_213 = arith.constant 9.99999974E-6 : f32
    %334 = vector.broadcast %cst_213 : f32 to vector<1x32xf32>
    %335 = arith.addf %328, %334 : vector<1x32xf32>
    %336 = math.rsqrt %335 : vector<1x32xf32>
    %337 = vector.broadcast %336 : vector<1x32xf32> to vector<32x32xf32>
    %338 = arith.mulf %333, %337 : vector<32x32xf32>
    %c3_214 = arith.constant 3 : index
    %c0_215 = arith.constant 0 : index
    %339 = vector.load %arg14[%c3_214, %c0_215] : memref<4x32xf32, #tpu.memory_space<vmem>>, vector<1x32xf32>
    %340 = vector.broadcast %339 : vector<1x32xf32> to vector<32x32xf32>
    %341 = arith.addf %338, %340 : vector<32x32xf32>
    %c0_216 = arith.constant 0 : index
    %c96 = arith.constant 96 : index
    %342 = vector.load %arg24[%c0_216, %c96] : memref<32x128xf32, #tpu.memory_space<vmem>>, vector<32x32xf32>
    tpu.vector_store %arg24[%c0_216, %c96], %341 {strides = array<i32>} : memref<32x128xf32, #tpu.memory_space<vmem>>, vector<32x32xf32>,
    %c0_217 = arith.constant 0 : index
    %c0_218 = arith.constant 0 : index
    %343 = vector.load %arg2[%c0_217, %c0_218] : memref<2x32xbf16, #tpu.memory_space<vmem>>, vector<2x32xbf16>
    %c0_219 = arith.constant 0 : index
    %c0_220 = arith.constant 0 : index
    %344 = vector.load %arg24[%c0_219, %c0_220] : memref<32x128xf32, #tpu.memory_space<vmem>>, vector<32x128xf32>
    %345 = arith.truncf %344 : vector<32x128xf32> to vector<32x128xbf16>
    %cst_221 = arith.constant dense<0.000000e+00> : vector<2x128xf32>
    %346 = tpu.matmul %343, %345, %cst_221 {dimension_numbers = #tpu.dot_dimension_numbers<[1], [0], [0], [1], [0, 0, 1, 1], [], []>} : vector<2x32xbf16>, vector<32x128xbf16>, vector<2x128xf32> -> vector<2x128xf32>
    %c0_222 = arith.constant 0 : index
    %c0_223 = arith.constant 0 : index
    %347 = vector.load %arg15[%c0_222, %c0_223] : memref<128x32xbf16, #tpu.memory_space<vmem>>, vector<128x32xbf16>
    %348 = arith.truncf %346 : vector<2x128xf32> to vector<2x128xbf16>
    %cst_224 = arith.constant dense<0.000000e+00> : vector<2x32xf32>
    %349 = tpu.matmul %348, %347, %cst_224 {dimension_numbers = #tpu.dot_dimension_numbers<[1], [0], [0], [1], [0, 0, 1, 1], [], []>} : vector<2x128xbf16>, vector<128x32xbf16>, vector<2x32xf32> -> vector<2x32xf32>
    %c0_225 = arith.constant 0 : index
    %c0_226 = arith.constant 0 : index
    %350 = vector.load %arg16[%c0_225, %c0_226] : memref<1x32xf32, #tpu.memory_space<vmem>>, vector<1x32xf32>
    %351 = vector.broadcast %350 : vector<1x32xf32> to vector<2x32xf32>
    %352 = arith.addf %349, %351 : vector<2x32xf32>
    %cst_227 = arith.constant 0.000000e+00 : f32
    %353 = vector.broadcast %cst_227 : f32 to vector<2x32xf32>
    %354 = arith.maximumf %352, %353 : vector<2x32xf32>
    %c0_228 = arith.constant 0 : index
    %c0_229 = arith.constant 0 : index
    %355 = vector.load %arg17[%c0_228, %c0_229] : memref<32x32xbf16, #tpu.memory_space<vmem>>, vector<32x32xbf16>
    %356 = arith.truncf %354 : vector<2x32xf32> to vector<2x32xbf16>
    %cst_230 = arith.constant dense<0.000000e+00> : vector<2x32xf32>
    %357 = tpu.matmul %356, %355, %cst_230 {dimension_numbers = #tpu.dot_dimension_numbers<[1], [0], [0], [1], [0, 0, 1, 1], [], []>} : vector<2x32xbf16>, vector<32x32xbf16>, vector<2x32xf32> -> vector<2x32xf32>
    %c0_231 = arith.constant 0 : index
    %c0_232 = arith.constant 0 : index
    %358 = vector.load %arg18[%c0_231, %c0_232] : memref<1x32xf32, #tpu.memory_space<vmem>>, vector<1x32xf32>
    %359 = vector.broadcast %358 : vector<1x32xf32> to vector<2x32xf32>
    %360 = arith.addf %357, %359 : vector<2x32xf32>
    %cst_233 = arith.constant 0.000000e+00 : f32
    %361 = vector.broadcast %cst_233 : f32 to vector<2x32xf32>
    %362 = arith.maximumf %360, %361 : vector<2x32xf32>
    %c0_234 = arith.constant 0 : index
    %c0_235 = arith.constant 0 : index
    %363 = vector.load %arg19[%c0_234, %c0_235] : memref<32x32xbf16, #tpu.memory_space<vmem>>, vector<32x32xbf16>
    %364 = arith.truncf %362 : vector<2x32xf32> to vector<2x32xbf16>
    %cst_236 = arith.constant dense<0.000000e+00> : vector<2x32xf32>
    %365 = tpu.matmul %364, %363, %cst_236 {dimension_numbers = #tpu.dot_dimension_numbers<[1], [0], [0], [1], [0, 0, 1, 1], [], []>} : vector<2x32xbf16>, vector<32x32xbf16>, vector<2x32xf32> -> vector<2x32xf32>
    %c0_237 = arith.constant 0 : index
    %c0_238 = arith.constant 0 : index
    %366 = vector.load %arg20[%c0_237, %c0_238] : memref<1x32xf32, #tpu.memory_space<vmem>>, vector<1x32xf32>
    %367 = vector.broadcast %366 : vector<1x32xf32> to vector<2x32xf32>
    %368 = arith.addf %365, %367 : vector<2x32xf32>
    %cst_239 = arith.constant 0.000000e+00 : f32
    %369 = vector.broadcast %cst_239 : f32 to vector<2x32xf32>
    %370 = arith.maximumf %368, %369 : vector<2x32xf32>
    %c0_240 = arith.constant 0 : index
    %c0_241 = arith.constant 0 : index
    %371 = vector.load %arg21[%c0_240, %c0_241] : memref<32x1xbf16, #tpu.memory_space<vmem>>, vector<32x1xbf16>
    %372 = arith.truncf %370 : vector<2x32xf32> to vector<2x32xbf16>
    %cst_242 = arith.constant dense<0.000000e+00> : vector<2x1xf32>
    %373 = tpu.matmul %372, %371, %cst_242 {dimension_numbers = #tpu.dot_dimension_numbers<[1], [0], [0], [1], [0, 0, 1, 1], [], []>} : vector<2x32xbf16>, vector<32x1xbf16>, vector<2x1xf32> -> vector<2x1xf32>
    %c0_243 = arith.constant 0 : index
    %c0_244 = arith.constant 0 : index
    %374 = vector.load %arg22[%c0_243, %c0_244] : memref<1x1xf32, #tpu.memory_space<vmem>>, vector<1x1xf32>
    %375 = vector.broadcast %374 : vector<1x1xf32> to vector<2x1xf32>
    %376 = arith.addf %373, %375 : vector<2x1xf32>
    %c0_245 = arith.constant 0 : index
    %c0_246 = arith.constant 0 : index
    %377 = vector.load %arg23[%c0_245, %c0_246] : memref<2x1xf32, #tpu.memory_space<vmem>>, vector<2x1xf32>
    tpu.vector_store %arg23[%c0_245, %c0_246], %376 {strides = array<i32>} : memref<2x1xf32, #tpu.memory_space<vmem>>, vector<2x1xf32>,
    return
  }
}

</mosaic_0001>

<bundles_post_ra>
// kernel: net_gin_forward.1
= control target key start
LH: loop header
LB: loop body
LE: loop exit
PB: predicated region body
PF: predicated region fallthrough
CT: control target
= control target key end

     0   :  { %vm495_vm0 = vcmask 261120   ;;  %s6620_s30 = smov 64   ;;  %s6618_s25 = smov 96   ;;  %vm838_vm1 = vcmask 785408   ;;  %vm833_vm2 = vcmask 523264   ;;  %vm2122_vm3 = vcmask 523520   ;;  %s6586_s3 = inlined_call_operand.vmem [shape: bf16[512,128], index: 3, kind: input, shape index: {}]   ;;  %s6587_s0 = inlined_call_operand.vmem [shape: bf16[32,512], index: 0, kind: input, shape index: {}]   ;;  %s6588_s1 = inlined_call_operand.vmem [shape: bf16[4,32,32], index: 1, kind: input, shape index: {}]   ;;  %s6589_s7 = inlined_call_operand.vmem [shape: bf16[4,128,128], index: 7, kind: input, shape index: {}]   ;;  %s6590_s9 = inlined_call_operand.vmem [shape: bf16[4,128,32], index: 9, kind: input, shape index: {}]   ;;  %s6591_s6 = inlined_call_operand.vmem [shape: f32[4,128], index: 6, kind: input, shape index: {}]   ;;  %s6592_s5 = inlined_call_operand.vmem [shape: f32[4,128], index: 5, kind: input, shape index: {}]   ;;  %s6593_s8 = inlined_call_operand.vmem [shape: f32[4,128], index: 8, kind: input, shape index: {}]   ;;  %s6594_s11 = inlined_call_operand.vmem [shape: bf16[4,32,32], index: 11, kind: input, shape index: {}]   ;;  %s6595_s10 = inlined_call_operand.vmem [shape: f32[4,32], index: 10, kind: input, shape index: {}]   ;;  %s6596_s4 = inlined_call_operand.vmem [shape: bf16[3,32,128], index: 4, kind: input, shape index: {}]   ;;  %s6597_s12 = inlined_call_operand.vmem [shape: f32[4,32], index: 12, kind: input, shape index: {}]   ;;  %s6598_s13 = inlined_call_operand.vmem [shape: f32[4,32], index: 13, kind: input, shape index: {}]   ;;  %s6599_s14 = inlined_call_operand.vmem [shape: f32[4,32], index: 14, kind: input, shape index: {}]   ;;  %s6600_s15 = inlined_call_operand.vmem [shape: bf16[128,32], index: 15, kind: input, shape index: {}]   ;;  %s6601_s2 = inlined_call_operand.vmem [shape: bf16[2,32], index: 2, kind: input, shape index: {}]   ;;  %s6602_s17 = inlined_call_operand.vmem [shape: bf16[32,32], index: 17, kind: input, shape index: {}]   ;;  %s6603_s16 = inlined_call_operand.vmem [shape: f32[1,32], index: 16, kind: input, shape index: {}]   ;;  %s6604_s19 = inlined_call_operand.vmem [shape: bf16[32,32], index: 19, kind: input, shape index: {}]   ;;  %s6605_s18 = inlined_call_operand.vmem [shape: f32[1,32], index: 18, kind: input, shape index: {}]   ;;  %s6606_s21 = inlined_call_operand.vmem [shape: bf16[32,1], index: 21, kind: input, shape index: {}]   ;;  %s6607_s22 = inlined_call_operand.<no memory space> [shape: f32[1,1], index: 22, kind: input, shape index: {}]   ;;  %s6608_s20 = inlined_call_operand.vmem [shape: f32[1,32], index: 20, kind: input, shape index: {}]   ;;  %s6609_s23 = inlined_call_operand.vmem [shape: f32[2,1], index: 23, kind: output, shape index: {}]  }
   0x1   :  { %6624 = sst [smem:[#allocation4_spill]] %s6586_s3  ;;  %s6642_s26 = smov 64   ;;  %vm2990_vm4 = vcmask 785920   ;;  %vm5475_vm5 = vmmov 0   ;;  %vm3858_vm6 = vcmask 1048320   ;;  %vm4229_vm7 = vcmask 1024  }
   0x2   :  { %6625 = sst [smem:[#allocation5_spill]] %s6587_s0  ;;  %s6634_s24 = sld [smem:[#allocation4_spill]] }
   0x3   :  { %6626 = sst [smem:[#allocation6_spill]] %s6588_s1  ;;  %s6635_s28 = sld [smem:[#allocation5_spill]] }
   0x4   :  { %6627 = sst [smem:[#allocation7_spill]] %s6589_s7  ;;  %s6636_s3 = sld [smem:[#allocation6_spill]] }
   0x5   :  { %6628 = sst [smem:[#allocation8_spill]] %s6590_s9  ;;  %s6637_s1 = sld [smem:[#allocation7_spill]] }
   0x6   :  { %6629 = sst [smem:[#allocation9_spill]] %s6591_s6  ;;  %s6638_s9 = sld [smem:[#allocation8_spill]] }
   0x7   :  { %6630 = sst [smem:[#allocation10_spill]] %s6592_s5  ;;  %s6639_s5 = sld [smem:[#allocation9_spill]] }
   0x8   :  { %6631 = sst [smem:[#allocation11_spill]] %s6593_s8  ;;  %v5295_v0 = vld [vmem:[%s6634_s24 + $0x40] sm:$0xff]   ;;  %v5299_v4 = vld [vmem:[%s6634_s24 + $0x48] sm:$0xff]   ;;  %v5303_v8 = vld [vmem:[%s6634_s24 + $0x50] sm:$0xff]   ;;  %s6640_s29 = sld [smem:[#allocation10_spill]] }
   0x9   :  { %6632 = sst [smem:[#allocation12_spill]] %s6608_s20  ;;  %v5296_v1 = vld [vmem:[%s6634_s24 + $0xc0] sm:$0xff]   ;;  %4645 = vmatprep.subr.bf16.mxu0 %v5295_v0  ;;  %v5300_v5 = vld [vmem:[%s6634_s24 + $0xc8] sm:$0xff]   ;;  %v5304_v9 = vld [vmem:[%s6634_s24 + $0xd0] sm:$0xff]   ;;  %s6641_s8 = sld [smem:[#allocation11_spill]] }
   0xa   :  { %6633 = sst [smem:[#allocation13_spill]] %s6609_s23  ;;  %v5297_v2 = vld [vmem:[%s6634_s24] sm:$0xff]   ;;  %4673 = vmatprep.subr.bf16.mxu1 %v5296_v1  ;;  %v5301_v6 = vld [vmem:[%s6634_s24 + $0x8] sm:$0xff]   ;;  %v5305_v10 = vld [vmem:[%s6634_s24 + $0x10] sm:$0xff]   ;;  %s6643_s0 = smov 96  }
   0xb   :  { %v5298_v3 = vld [vmem:[%s6634_s24 + $0x80] sm:$0xff]   ;;  %4646 = vmatpush3.bf16.msra.mxu0 %v5297_v2  ;;  %v5302_v7 = vld [vmem:[%s6634_s24 + $0x88] sm:$0xff]   ;;  %v5306_v11 = vld [vmem:[%s6634_s24 + $0x90] sm:$0xff]   ;;  %s6644_s27 = smov 32   ;;  %s6645_s7 = sld [smem:[#allocation12_spill]] }
   0xc   :  { %4674 = vmatpush3.bf16.msra.mxu1 %v5298_v3  ;;  %4647 = vmatprep.subr.bf16.mxu0 %v5299_v4  ;;  %v5307_v12 = vld [vmem:[%s6634_s24 + $0x58] sm:$0xff]   ;;  %v5311_v16 = vld [vmem:[%s6634_s24 + $0x60] sm:$0xff]   ;;  %v5315_v20 = vld [vmem:[%s6634_s24 + $0x68] sm:$0xff]  }
   0xd   :  { %4675 = vmatprep.subr.bf16.mxu1 %v5300_v5  ;;  %v5308_v13 = vld [vmem:[%s6634_s24 + $0xd8] sm:$0xff]   ;;  %v5312_v17 = vld [vmem:[%s6634_s24 + $0xe0] sm:$0xff]   ;;  %v5316_v21 = vld [vmem:[%s6634_s24 + $0xe8] sm:$0xff]  }
   0xe   :  { %v5309_v14 = vld [vmem:[%s6634_s24 + $0x18] sm:$0xff]   ;;  %v5313_v18 = vld [vmem:[%s6634_s24 + $0x20] sm:$0xff]   ;;  %v5317_v22 = vld [vmem:[%s6634_s24 + $0x28] sm:$0xff]  }
   0xf   :  { %4648 = vmatpush3.bf16.msra.mxu0 %v5301_v6  ;;  %v5310_v15 = vld [vmem:[%s6634_s24 + $0x98] sm:$0xff]   ;;  %v5314_v19 = vld [vmem:[%s6634_s24 + $0xa0] sm:$0xff]   ;;  %v5318_v23 = vld [vmem:[%s6634_s24 + $0xa8] sm:$0xff]  }
  0x10   :  { %4676 = vmatpush3.bf16.msra.mxu1 %v5302_v7  ;;  %4649 = vmatprep.subr.bf16.mxu0 %v5303_v8  ;;  %v5319_v24 = vld [vmem:[%s6634_s24 + $0x70] sm:$0xff]   ;;  %v5323_v28 = vld [vmem:[%s6634_s24 + $0x78] sm:$0xff]   ;;  %v5339_v40 = vld [vmem:[%s6636_s3] sm:$0xff]  }
  0x11   :  { %4677 = vmatprep.subr.bf16.mxu1 %v5304_v9  ;;  %v5320_v25 = vld [vmem:[%s6634_s24 + $0xf0] sm:$0xff]   ;;  %v5324_v29 = vld [vmem:[%s6634_s24 + $0xf8] sm:$0xff]   ;;  %v5340_v8 = vld [vmem:[%s6636_s3 + $0x8] sm:$0xff]  }
  0x12   :  { %v5321_v26 = vld [vmem:[%s6634_s24 + $0x30] sm:$0xff]   ;;  %v5325_v30 = vld [vmem:[%s6634_s24 + $0x38] sm:$0xff]   ;;  %v5343_v9 = vld [vmem:[%s6636_s3 + $0x20] sm:$0xff]  }
  0x13   :  { %4650 = vmatpush3.bf16.msra.mxu0 %v5305_v10  ;;  %v5322_v27 = vld [vmem:[%s6634_s24 + $0xb0] sm:$0xff]   ;;  %v5326_v31 = vld [vmem:[%s6634_s24 + $0xb8] sm:$0xff]   ;;  %s6622_s24 = smov 32  }
  0x14   :  { %4678 = vmatpush3.bf16.msra.mxu1 %v5306_v11  ;;  %4651 = vmatprep.subr.bf16.mxu0 %v5307_v12  ;;  %v5327_v32 = vld [vmem:[%s6635_s28] ss:$16 sps:$4 sm:$0xff]   ;;  %v5329_v33 = vld [vmem:[%s6635_s28 + $0x4] ss:$16 sps:$4 sm:$0xff]   ;;  %v5330_v34 = vld [vmem:[%s6635_s28 + $0x8] ss:$16 sps:$4 sm:$0xff]  }
  0x15   :  { %4679 = vmatprep.subr.bf16.mxu1 %v5308_v13  ;;  %v5332_v35 = vld [vmem:[%s6635_s28 + $0xc] ss:$16 sps:$4 sm:$0xff]   ;;  %413 = vmatprep.mubr.bf16.mxu0 %v5329_v33  ;;  %v5333_v36 = vld [vmem:[%s6635_s28 + $0x24] ss:$16 sps:$4 sm:$0xff]   ;;  %v5337_v38 = vld [vmem:[%s6635_s28 + $0x20] ss:$16 sps:$4 sm:$0xff]  }
  0x16   :  { %462 = vmatprep.mubr.bf16.mxu1 %v5332_v35  ;;  %v5335_v37 = vld [vmem:[%s6635_s28 + $0x2c] ss:$16 sps:$4 sm:$0xff]   ;;  %v5338_v39 = vld [vmem:[%s6635_s28 + $0x28] ss:$16 sps:$4 sm:$0xff]   ;;  %v5341_v56 = vld [vmem:[%s6636_s3 + $0x10] sm:$0xff]  }
  0x17   :  { %4652 = vmatpush3.bf16.msra.mxu0 %v5309_v14  ;;  %v5342_v14 = vld [vmem:[%s6636_s3 + $0x18] sm:$0xff]  }
  0x18   :  { %4680 = vmatpush3.bf16.msra.mxu1 %v5310_v15  ;;  %4653 = vmatprep.subr.bf16.mxu0 %v5311_v16  ;;  %v5345_v15 = vld [vmem:[%s6636_s3 + $0x30] sm:$0xff]  }
  0x19   :  { %4681 = vmatprep.subr.bf16.mxu1 %v5312_v17  ;;  %v5344_v17 = vld [vmem:[%s6636_s3 + $0x28] sm:$0xff]  }
  0x1b   :  { %4654 = vmatpush3.bf16.msra.mxu0 %v5313_v18 }
  0x1c   :  { %4682 = vmatpush3.bf16.msra.mxu1 %v5314_v19  ;;  %4655 = vmatprep.subr.bf16.mxu0 %v5315_v20  ;;  %v5346_v19 = vld [vmem:[%s6636_s3 + $0x38] sm:$0xff]  }
  0x1d   :  { %4683 = vmatprep.subr.bf16.mxu1 %v5316_v21 }
  0x1f   :  { %4656 = vmatpush3.bf16.msra.mxu0 %v5317_v22 }
  0x20   :  { %4684 = vmatpush3.bf16.msra.mxu1 %v5318_v23  ;;  %4657 = vmatprep.subr.bf16.mxu0 %v5319_v24  ;;  %v5347_v24 = vld [vmem:[%s6637_s1] sm:$0xff]  }
  0x21   :  { %4685 = vmatprep.subr.bf16.mxu1 %v5320_v25  ;;  %v5348_v25 = vld [vmem:[%s6637_s1 + $0x8] sm:$0xff]  }
  0x23   :  { %4658 = vmatpush3.bf16.msra.mxu0 %v5321_v26  ;;  %v5349_v26 = vld [vmem:[%s6637_s1 + $0x10] sm:$0xff]  }
  0x24   :  { %4686 = vmatpush3.bf16.msra.mxu1 %v5322_v27  ;;  %4659 = vmatprep.subr.bf16.mxu0 %v5323_v28  ;;  %v5350_v27 = vld [vmem:[%s6637_s1 + $0x18] sm:$0xff]  }
  0x25   :  { %4687 = vmatprep.subr.bf16.mxu1 %v5324_v29 }
  0x27   :  { %4660 = vmatpush3.bf16.msra.mxu0 %v5325_v30 }
  0x28   :  { %4688 = vmatpush3.bf16.msra.mxu1 %v5326_v31  ;;  %v5351_v31 = vld [vmem:[%s6637_s1 + $0x20] sm:$0xff]  }
  0x2a   :  { %414 = vmatmul.mubr.bf16.vlgmr.msra.gmra.mrb[0].mxu0 %v5327_v32 }
  0x2b   :  { %463 = vmatmul.mubr.bf16.vlgmr.msra.gmra.mrb[0].mxu1 %v5330_v34  ;;  %421 = vmatprep.mubr.bf16.mxu0 %v5333_v36  ;;  %v5352_v36 = vld [vmem:[%s6637_s1 + $0x28] sm:$0xff]  }
  0x2c   :  { %470 = vmatprep.mubr.bf16.mxu1 %v5335_v37 }
  0x32   :  { %422 = vmatmul.mubr.bf16.gmra.mrb[4].mxu0 %v5337_v38 }
  0x33   :  { %471 = vmatmul.mubr.bf16.gmra.mrb[4].mxu1 %v5338_v39  ;;  %4898 = vmatprep.mubr.msk.bf16.mxu0 %vm495_vm0, %v5339_v40 }
  0x34   :  { %4906 = vmatprep.mubr.msk.bf16.mxu1 %vm495_vm0, %v5341_v56 }
  0xfd   :  { %v4661_v41 = vpop.f32.mrb[0].mxu0 }
  0xfe   :  { %v4689_v42 = vpop.f32.mrb[0].mxu1  ;;  %v4662_v43 = vpop.f32.mrb[1].mxu0 }
  0xff   :  { %v4663_v44 = vadd.f32 %v4662_v43, %v4661_v41  ;;  %v4690_v45 = vpop.f32.mrb[1].mxu1  ;;  %v4664_v46 = vpop.f32.mrb[2].mxu0  ;;  %v5353_v41 = vld [vmem:[%s6637_s1 + $0x30] sm:$0xff]   ;;  %v5354_v43 = vld [vmem:[%s6637_s1 + $0x38] sm:$0xff]  }
 0x100   :  { %v4691_v47 = vadd.f32 %v4690_v45, %v4689_v42  ;;  %v4692_v48 = vpop.f32.mrb[2].mxu1  ;;  %v4665_v49 = vpop.f32.mrb[3].mxu0  ;;  %v5356_v45 = vld [vmem:[%s6638_s9 + $0x8] sm:$0xff]  }
 0x101   :  { %v4666_v50 = vadd.f32 %v4665_v49, %v4664_v46  ;;  %v4693_v51 = vpop.f32.mrb[3].mxu1  ;;  %v5357_v46 = vld [vmem:[%s6638_s9 + $0x10] sm:$0xff]   ;;  %v5360_v49 = vld [vmem:[%s6638_s9 + $0x28] sm:$0xff]  }
 0x102   :  { %v5720_v52 = vadd.f32 %v4691_v47, %v4663_v44  ;;  %v4694_v53 = vadd.f32 %v4693_v51, %v4692_v48  ;;  %v5355_v44 = vld [vmem:[%s6638_s9] sm:$0xff]   ;;  %v5358_v47 = vld [vmem:[%s6638_s9 + $0x18] sm:$0xff]  }
 0x103   :  { %v5359_v48 = vld [vmem:[%s6638_s9 + $0x20] sm:$0xff]  }
 0x104   :  { %v5722_v54 = vadd.f32 %v4694_v53, %v4666_v50 }
 0x105   :  { %v4667_v55 = vpop.f32.mrb[4].mxu0 }
 0x106   :  { %v483_v57 = vpack.c.bf16 %v5722_v54, %v5720_v52  ;;  %v4695_v58 = vpop.f32.mrb[4].mxu1  ;;  %v4668_v59 = vpop.f32.mrb[5].mxu0 }
 0x107   :  { %v4669_v60 = vadd.f32 %v4668_v59, %v4667_v55  ;;  %v4696_v61 = vpop.f32.mrb[5].mxu1  ;;  %v4670_v62 = vpop.f32.mrb[6].mxu0  ;;  %v4303_v59 = vld [vmem:[%s6639_s5] ss:$0 sm:$0xff] }
 0x108   :  { %v4697_v63 = vadd.f32 %v4696_v61, %v4695_v58  ;;  %v4698_v0 = vpop.f32.mrb[6].mxu1  ;;  %644 = vrot.lane.b32.xlu1 %v483_v57, %s6620_s30  ;;  %568 = vrot.lane.b32.xlu0 %v483_v57, %s6618_s25  ;;  %v4671_v1 = vpop.f32.mrb[7].mxu0 }
 0x109   :  { %4894 = vmatprep.subr.bf16.mxu0 %v483_v57  ;;  %v4672_v2 = vadd.f32 %v4671_v1, %v4670_v62  ;;  %v4699_v3 = vpop.f32.mrb[7].mxu1  ;;  %v848_v62 = vmul.f32 %v4303_v59, %v5720_v52 }
 0x10a   :  { %v5732_v4 = vadd.f32 %v4697_v63, %v4669_v60  ;;  %v4700_v5 = vadd.f32 %v4699_v3, %v4698_v0  ;;  %4895 = vmatpush3.bf16.msra.mxu0 %v483_v57 }
 0x10c   :  { %v5734_v6 = vadd.f32 %v4700_v5, %v4672_v2  ;;  %720 = vrot.lane.b32.xlu1 %v483_v57, %s6622_s24  ;;  %v4304_v2 = vld [vmem:[%s6640_s29] ss:$0 sm:$0xff]  ;;  %v849_v5 = vmul.f32 %v4303_v59, %v5722_v54 }
 0x10e   :  { %v484_v7 = vpack.c.bf16 %v5734_v6, %v5732_v4 }
 0x110   :  { %722 = vrot.lane.b32.xlu1 %v484_v7, %s6622_s24  ;;  %570 = vrot.lane.b32.xlu0 %v484_v7, %s6618_s25 }
 0x111   :  { %4896 = vmatprep.subr.bf16.mxu0 %v484_v7 }
 0x112   :  { %4897 = vmatpush3.bf16.msra.mxu0 %v484_v7 }
 0x114   :  { %646 = vrot.lane.b32.xlu0 %v484_v7, %s6620_s30 }
 0x115   :  { %4899 = vmatmul.mubr.msk.bf16.vlgmr.msra.gmra.mrb[8].mxu0 %vm495_vm0, %v5340_v8 }
 0x116   :  { %4914 = vmatprep.mubr.msk.bf16.mxu0 %vm495_vm0, %v5343_v9 }
 0x17a   :  { %v645_v10 = vpop.permute.xlu1 %644  ;;  %v569_v11 = vpop.permute.xlu0 %568 }
 0x17b   :  { %4902 = vmatprep.subr.bf16.mxu1 %v569_v11  ;;  %4910 = vmatprep.subr.bf16.mxu0 %v645_v10 }
 0x17c   :  { %4903 = vmatpush3.bf16.msra.mxu1 %v569_v11  ;;  %4911 = vmatpush3.bf16.msra.mxu0 %v645_v10  ;;  %v850_v11 = vmul.f32 %v4303_v59, %v5732_v4 }
 0x17e   :  { %v721_v12 = vpop.permute.xlu1 %720 }
 0x182   :  { %v571_v13 = vpop.permute.xlu0 %570  ;;  %v723_v18 = vpop.permute.xlu1 %722 }
 0x183   :  { %4904 = vmatprep.subr.bf16.mxu1 %v571_v13 }
 0x184   :  { %4905 = vmatpush3.bf16.msra.mxu1 %v571_v13 }
 0x185   :  { %4918 = vmatprep.subr.bf16.mxu1 %v721_v12 }
 0x186   :  { %v647_v16 = vpop.permute.xlu0 %646 }
 0x187   :  { %4907 = vmatmul.mubr.msk.bf16.vlgmr.msra.gmra.mrb[8].mxu1 %vm495_vm0, %v5342_v14  ;;  %4912 = vmatprep.subr.bf16.mxu0 %v647_v16 }
 0x188   :  { %4913 = vmatpush3.bf16.msra.mxu0 %v647_v16  ;;  %4919 = vmatpush3.bf16.msra.mxu1 %v721_v12 }
 0x189   :  { %4920 = vmatprep.subr.bf16.mxu1 %v723_v18  ;;  %4922 = vmatprep.mubr.msk.bf16.mxu1 %vm495_vm0, %v5345_v15 }
 0x18a   :  { %4926 = vmatprep.subr.bf16.mxu0 %v5347_v24 }
 0x18b   :  { %4915 = vmatmul.mubr.msk.bf16.vlgmr.msra.gmra.mrb[12].mxu0 %vm495_vm0, %v5344_v17  ;;  %v851_v17 = vmul.f32 %v4303_v59, %v5734_v6  ;;  %v5361_v6 = vld [vmem:[%s6638_s9 + $0x30] sm:$0xff]  }
 0x18c   :  { %4921 = vmatpush3.bf16.msra.mxu1 %v723_v18  ;;  %4927 = vmatpush3.bf16.msra.mxu0 %v5347_v24 }
 0x18d   :  { %4928 = vmatprep.subr.bf16.mxu0 %v5348_v25  ;;  %4946 = vmatprep.subr.bf16.mxu1 %v5355_v44 }
 0x18f   :  { %4923 = vmatmul.mubr.msk.bf16.vlgmr.msra.gmra.mrb[12].mxu1 %vm495_vm0, %v5346_v19 }
 0x190   :  { %4929 = vmatpush3.bf16.msra.mxu0 %v5348_v25  ;;  %4947 = vmatpush3.bf16.msra.mxu1 %v5355_v44 }
 0x191   :  { %4930 = vmatprep.subr.bf16.mxu0 %v5349_v26  ;;  %4948 = vmatprep.subr.bf16.mxu1 %v5356_v45 }
 0x194   :  { %4931 = vmatpush3.bf16.msra.mxu0 %v5349_v26  ;;  %4949 = vmatpush3.bf16.msra.mxu1 %v5356_v45 }
 0x195   :  { %4932 = vmatprep.subr.bf16.mxu0 %v5350_v27  ;;  %4950 = vmatprep.subr.bf16.mxu1 %v5357_v46 }
 0x198   :  { %4933 = vmatpush3.bf16.msra.mxu0 %v5350_v27  ;;  %4951 = vmatpush3.bf16.msra.mxu1 %v5357_v46 }
 0x199   :  { %4934 = vmatprep.subr.bf16.mxu0 %v5351_v31  ;;  %4952 = vmatprep.subr.bf16.mxu1 %v5358_v47 }
 0x19c   :  { %4935 = vmatpush3.bf16.msra.mxu0 %v5351_v31  ;;  %4953 = vmatpush3.bf16.msra.mxu1 %v5358_v47  ;;  %v5362_v31 = vld [vmem:[%s6638_s9 + $0x38] sm:$0xff]   ;;  %v5363_v47 = vld [vmem:[%s6594_s11] sm:$0xff]  }
 0x19d   :  { %4936 = vmatprep.subr.bf16.mxu0 %v5352_v36  ;;  %4954 = vmatprep.subr.bf16.mxu1 %v5359_v48 }
 0x1a0   :  { %4937 = vmatpush3.bf16.msra.mxu0 %v5352_v36  ;;  %4955 = vmatpush3.bf16.msra.mxu1 %v5359_v48  ;;  %v5364_v48 = vld [vmem:[%s6594_s11 + $0x8] sm:$0xff]  }
 0x1a1   :  { %4938 = vmatprep.subr.bf16.mxu0 %v5353_v41  ;;  %4956 = vmatprep.subr.bf16.mxu1 %v5360_v49 }
 0x1a4   :  { %4939 = vmatpush3.bf16.msra.mxu0 %v5353_v41  ;;  %4957 = vmatpush3.bf16.msra.mxu1 %v5360_v49  ;;  %v4314_v49 = vld [vmem:[%s6595_s10] ss:$0 sm:$0xff] }
 0x1a5   :  { %4940 = vmatprep.subr.bf16.mxu0 %v5354_v43  ;;  %4958 = vmatprep.subr.bf16.mxu1 %v5361_v6 }
 0x1a8   :  { %4941 = vmatpush3.bf16.msra.mxu0 %v5354_v43  ;;  %4959 = vmatpush3.bf16.msra.mxu1 %v5361_v6 }
 0x1a9   :  { %4960 = vmatprep.subr.bf16.mxu1 %v5362_v31  ;;  %4966 = vmatprep.subr.bf16.mxu0 %v5363_v47 }
 0x1ac   :  { %4961 = vmatpush3.bf16.msra.mxu1 %v5362_v31 }
 0x1e8   :  { %v5766_v20 = vpop.f32.mrb[8].mxu0 }
 0x1e9   :  { %v5768_v21 = vpop.f32.mrb[9].mxu0 }
 0x1ea   :  { %v5770_v22 = vpop.f32.mrb[10].mxu0 }
 0x1eb   :  { %v5772_v23 = vpop.f32.mrb[11].mxu0 }
 0x25a   :  { %v4908_v28 = vpop.f32.mrb[8].mxu1 }
 0x25b   :  { %789 = vrot.lane.b32.xlu0 %v4908_v28, %s6622_s24  ;;  %v614_v29 = vpop.f32.mrb[9].mxu1 }
 0x25c   :  { %v4909_v30 = vpop.f32.mrb[10].mxu1 }
 0x25d   :  { %791 = vrot.lane.b32.xlu1 %v4909_v30, %s6622_s24  ;;  %v617_v32 = vpop.f32.mrb[11].mxu1 }
 0x25e   :  { %v4916_v33 = vpop.f32.mrb[12].mxu0 }
 0x25f   :  { %805 = vrot.lane.b32.xlu0 %v4916_v33, %s6620_s30  ;;  %v690_v34 = vpop.f32.mrb[13].mxu0 }
 0x260   :  { %v4917_v35 = vpop.f32.mrb[14].mxu0 }
 0x261   :  { %807 = vrot.lane.b32.xlu1 %v4917_v35, %s6620_s30  ;;  %v693_v37 = vpop.f32.mrb[15].mxu0 }
 0x262   :  { %v4924_v38 = vpop.f32.mrb[12].mxu1 }
 0x263   :  { %785 = vrot.lane.b32.xlu0 %v614_v29, %s6622_s24  ;;  %v766_v39 = vpop.f32.mrb[13].mxu1 }
 0x264   :  { %v4925_v40 = vpop.f32.mrb[14].mxu1 }
 0x265   :  { %787 = vrot.lane.b32.xlu1 %v617_v32, %s6622_s24  ;;  %v769_v42 = vpop.f32.mrb[15].mxu1  ;;  %v4305_v32 = vld [vmem:[%s6641_s8] ss:$0 sm:$0xff] }
 0x267   :  { %801 = vrot.lane.b32.xlu0 %v690_v34, %s6620_s30 }
 0x269   :  { %803 = vrot.lane.b32.xlu1 %v693_v37, %s6620_s30 }
 0x26b   :  { %817 = vrot.lane.b32.xlu0 %v766_v39, %s6618_s25 }
 0x26d   :  { %819 = vrot.lane.b32.xlu1 %v769_v42, %s6618_s25 }
 0x26f   :  { %821 = vrot.lane.b32.xlu0 %v4924_v38, %s6618_s25 }
 0x271   :  { %823 = vrot.lane.b32.xlu1 %v4925_v40, %s6618_s25 }
 0x2cd   :  { %v790_v50 = vpop.permute.xlu0 %789 }
 0x2ce   :  { %v831_v52 = vsel %vm495_vm0, %v5766_v20, %v790_v50 }
 0x2cf   :  { %v792_v51 = vpop.permute.xlu1 %791 }
 0x2d0   :  { %v832_v16 = vsel %vm495_vm0, %v5770_v22, %v792_v51 }
 0x2d1   :  { %v806_v53 = vpop.permute.xlu0 %805 }
 0x2d2   :  { %v836_v12 = vsel %vm833_vm2, %v831_v52, %v806_v53 }
 0x2d3   :  { %v808_v55 = vpop.permute.xlu1 %807 }
 0x2d4   :  { %v837_v18 = vsel %vm833_vm2, %v832_v16, %v808_v55 }
 0x2d5   :  { %v786_v56 = vpop.permute.xlu0 %785 }
 0x2d6   :  { %v829_v61 = vsel %vm495_vm0, %v5768_v21, %v786_v56 }
 0x2d7   :  { %v788_v57 = vpop.permute.xlu1 %787 }
 0x2d8   :  { %v830_v1 = vsel %vm495_vm0, %v5772_v23, %v788_v57 }
 0x2d9   :  { %v802_v58 = vpop.permute.xlu0 %801 }
 0x2da   :  { %v834_v63 = vsel %vm833_vm2, %v829_v61, %v802_v58 }
 0x2db   :  { %v804_v60 = vpop.permute.xlu1 %803 }
 0x2dc   :  { %v835_v7 = vsel %vm833_vm2, %v830_v1, %v804_v60 }
 0x2dd   :  { %v818_v0 = vpop.permute.xlu0 %817 }
 0x2de   :  { %v839_v3 = vsel %vm838_vm1, %v834_v63, %v818_v0 }
 0x2df   :  { %v852_v8 = vadd.f32 %v848_v62, %v839_v3  ;;  %v820_v9 = vpop.permute.xlu1 %819  ;;  %v5366_v3 = vld [vmem:[%s6596_s4 + $0x8] sm:$0xff]  }
 0x2e0   :  { %v840_v10 = vsel %vm838_vm1, %v835_v7, %v820_v9 }
 0x2e1   :  { %v861_v13 = vadd.f32 %v4304_v2, %v852_v8  ;;  %v853_v14 = vadd.f32 %v849_v5, %v840_v10  ;;  %v822_v15 = vpop.permute.xlu0 %821  ;;  %v4323_v5 = vld [vmem:[%s6597_s12] ss:$0 sm:$0xff] }
 0x2e2   :  { %v841_v54 = vsel %vm838_vm1, %v836_v12, %v822_v15 }
 0x2e3   :  { %v862_v19 = vadd.f32 %v4304_v2, %v853_v14  ;;  %v854_v20 = vadd.f32 %v850_v11, %v841_v54  ;;  %v824_v21 = vpop.permute.xlu1 %823  ;;  %v865_v4 = vmax.f32 %v861_v13, 0.0 }
 0x2e4   :  { %v842_v23 = vsel %vm838_vm1, %v837_v18, %v824_v21 }
 0x2e5   :  { %v866_v24 = vmax.f32 %v862_v19, 0.0  ;;  %v863_v25 = vadd.f32 %v4304_v2, %v854_v20  ;;  %v855_v26 = vadd.f32 %v851_v17, %v842_v23 }
 0x2e7   :  { %v864_v27 = vadd.f32 %v4304_v2, %v855_v26  ;;  %v885_v28 = vpack.c.bf16 %v866_v24, %v865_v4  ;;  %v867_v29 = vmax.f32 %v863_v25, 0.0  ;;  %v5365_v2 = vld [vmem:[%s6596_s4] sm:$0xff]  }
 0x2e8   :  { %4974 = vmatprep.subr.bf16.mxu1 %v5365_v2 }
 0x2e9   :  { %v868_v30 = vmax.f32 %v864_v27, 0.0  ;;  %4942 = vmatprep.mubr.bf16.mxu0 %v885_v28 }
 0x2eb   :  { %v886_v22 = vpack.c.bf16 %v868_v30, %v867_v29 }
 0x2ed   :  { %4943 = vmatmul.mubr.bf16.vlgmr.msra.gmra.mrb[16].mxu0 %v886_v22 }
 0x2ee   :  { %4967 = vmatpush3.bf16.msra.mxu0 %v5363_v47 }
 0x2ef   :  { %4968 = vmatprep.subr.bf16.mxu0 %v5364_v48 }
 0x2f2   :  { %4969 = vmatpush3.bf16.msra.mxu0 %v5364_v48  ;;  %v4328_v48 = vld [vmem:[%s6598_s13] ss:$0 sm:$0xff] }
 0x3c0   :  { %v4944_v33 = vpop.f32.mrb[16].mxu0 }
 0x3c1   :  { %v983_v34 = vadd.f32 %v4944_v33, %v4305_v32  ;;  %v974_v35 = vpop.f32.mrb[17].mxu0 }
 0x3c2   :  { %v975_v36 = vadd.f32 %v4305_v32, %v974_v35  ;;  %v4945_v37 = vpop.f32.mrb[18].mxu0 }
 0x3c3   :  { %v986_v38 = vadd.f32 %v4945_v37, %v4305_v32  ;;  %v977_v39 = vpop.f32.mrb[19].mxu0  ;;  %v991_v41 = vmax.f32 %v983_v34, 0.0 }
 0x3c4   :  { %v978_v40 = vadd.f32 %v4305_v32, %v977_v39  ;;  %v989_v43 = vmax.f32 %v975_v36, 0.0 }
 0x3c5   :  { %v992_v42 = vmax.f32 %v986_v38, 0.0 }
 0x3c6   :  { %v990_v44 = vmax.f32 %v978_v40, 0.0 }
 0x3c7   :  { %v1010_v45 = vpack.c.bf16 %v992_v42, %v991_v41 }
 0x3c8   :  { %v1009_v46 = vpack.c.bf16 %v990_v44, %v989_v43 }
 0x3ca   :  { %4962 = vmatprep.mubr.bf16.mxu1 %v1009_v46 }
 0x3cb   :  { %4963 = vmatmul.mubr.bf16.vlgmr.msra.gmra.mrb[16].mxu1 %v1010_v45 }
 0x3cc   :  { %4975 = vmatpush3.bf16.msra.mxu1 %v5365_v2 }
 0x3cd   :  { %4976 = vmatprep.subr.bf16.mxu1 %v5366_v3 }
 0x3d0   :  { %4977 = vmatpush3.bf16.msra.mxu1 %v5366_v3  ;;  %v5367_v3 = vld [vmem:[%s6636_s3] sm:$0xff]  }
 0x49e   :  { %v4964_v50 = vpop.f32.mrb[16].mxu1 }
 0x49f   :  { %v1107_v51 = vadd.f32 %v4964_v50, %v4314_v49  ;;  %v1098_v53 = vpop.f32.mrb[17].mxu1 }
 0x4a0   :  { %v1099_v55 = vadd.f32 %v4314_v49, %v1098_v53  ;;  %v4965_v56 = vpop.f32.mrb[18].mxu1 }
 0x4a1   :  { %v1110_v57 = vadd.f32 %v4965_v56, %v4314_v49  ;;  %v1101_v58 = vpop.f32.mrb[19].mxu1  ;;  %v1115_v60 = vmax.f32 %v1107_v51, 0.0  ;;  %v4329_v56 = vld [vmem:[%s6599_s14] ss:$0 sm:$0xff] }
 0x4a2   :  { %v1102_v59 = vadd.f32 %v4314_v49, %v1101_v58  ;;  %v1113_v62 = vmax.f32 %v1099_v55, 0.0 }
 0x4a3   :  { %v1116_v61 = vmax.f32 %v1110_v57, 0.0 }
 0x4a4   :  { %v1114_v63 = vmax.f32 %v1102_v59, 0.0 }
 0x4a5   :  { %v1122_v0 = vpack.c.bf16 %v1116_v61, %v1115_v60 }
 0x4a6   :  { %v1121_v1 = vpack.c.bf16 %v1114_v63, %v1113_v62 }
 0x4a8   :  { %4970 = vmatprep.mubr.msk.bf16.mxu0 %vm495_vm0, %v1121_v1 }
 0x4a9   :  { %4971 = vmatmul.mubr.msk.bf16.vlgmr.msra.gmra.mrb[20].mxu0 %vm495_vm0, %v1122_v0 }
 0x4aa   :  { %4986 = vmatprep.mubr.msk.bf16.mxu0 %vm495_vm0, %v5367_v3  ;;  %v4363_v3 = vld [vmem:[%s6640_s29 + $0x1] ss:$0 sm:$0xff] }
 0x57c   :  { %v4972_v7 = vpop.f32.mrb[20].mxu0 }
 0x57d   :  { %v1180_v8 = vpop.f32.mrb[21].mxu0  ;;  %v1189_v11 = vadd.f32 %v4972_v7, %v4323_v5 }
 0x57e   :  { %v1181_v9 = vadd.f32 %v4323_v5, %v1180_v8  ;;  %v4973_v52 = vpop.f32.mrb[22].mxu0 }
 0x57f   :  { %v1183_v10 = vpop.f32.mrb[23].mxu0  ;;  %v1192_v14 = vadd.f32 %v4973_v52, %v4323_v5  ;;  %v1198_v54 = vsel %vm495_vm0, %v1189_v11, 0.0 }
 0x580   :  { %v1184_v12 = vadd.f32 %v4323_v5, %v1183_v10  ;;  %v1195_v13 = vsel %vm495_vm0, %v1181_v9, 0.0  ;;  %v5369_v5 = vld [vmem:[%s6636_s3 + $0x10] sm:$0xff]  }
 0x581   :  { %v1200_v18 = vsel %vm495_vm0, %v1192_v14, 0.0 }
 0x582   :  { %v1196_v15 = vsel %vm495_vm0, %v1184_v12, 0.0 }
 0x583   :  { %v1197_v16 = vadd.f32 %v1196_v15, %v1195_v13  ;;  %v5371_v13 = vld [vmem:[%s6636_s3 + $0x20] sm:$0xff]  }
 0x585   :  { %v1199_v17 = vadd.f32 %v1198_v54, %v1197_v16 }
 0x587   :  { %v1201_v19 = vadd.f32 %v1200_v18, %v1199_v17  ;;  %v5370_v17 = vld [vmem:[%s6636_s3 + $0x18] sm:$0xff]   ;;  %v5373_v18 = vld [vmem:[%s6636_s3 + $0x30] sm:$0xff]  }
 0x589   :  { %v1202_v20 = vrot.slane %v1201_v19, 4 }
 0x58b   :  { %v1203_v21 = vadd.f32 %v1202_v20, %v1201_v19  ;;  %v5372_v20 = vld [vmem:[%s6636_s3 + $0x28] sm:$0xff]  }
 0x58d   :  { %v1204_v23 = vrot.slane %v1203_v21, 2 }
 0x58f   :  { %v1205_v4 = vadd.f32 %v1204_v23, %v1203_v21  ;;  %v5374_v23 = vld [vmem:[%s6636_s3 + $0x38] sm:$0xff]  }
 0x591   :  { %v1206_v24 = vrot.slane %v1205_v4, 1 }
 0x593   :  { %v1207_v25 = vadd.f32 %v1206_v24, %v1205_v4 }
 0x595   :  { %v1209_v26 = vmul.f32 0.03125, %v1207_v25 }
 0x597   :  { %v1210_v27 = vsub.f32 %v1181_v9, %v1209_v26  ;;  %v1211_v28 = vsub.f32 %v1184_v12, %v1209_v26  ;;  %v1212_v29 = vsub.f32 %v1189_v11, %v1209_v26  ;;  %v1213_v30 = vsub.f32 %v1192_v14, %v1209_v26  ;;  %v5368_v12 = vld [vmem:[%s6636_s3 + $0x8] sm:$0xff]  }
 0x599   :  { %v1214_v22 = vmul.f32 %v1210_v27, %v1210_v27  ;;  %v1215_v6 = vmul.f32 %v1211_v28, %v1211_v28  ;;  %v1216_v31 = vmul.f32 %v1212_v29, %v1212_v29  ;;  %v1217_v32 = vmul.f32 %v1213_v30, %v1213_v30 }
 0x59a   :  { %v1237_v49 = vmul.f32 %v4328_v48, %v1210_v27  ;;  %v1238_v50 = vmul.f32 %v4328_v48, %v1211_v28  ;;  %v1239_v51 = vmul.f32 %v4328_v48, %v1212_v29  ;;  %v1240_v53 = vmul.f32 %v4328_v48, %v1213_v30  ;;  %v5375_v27 = vld [vmem:[%s6637_s1 + $0x40] sm:$0xff]   ;;  %v5376_v28 = vld [vmem:[%s6637_s1 + $0x48] sm:$0xff]   ;;  %v5377_v29 = vld [vmem:[%s6637_s1 + $0x50] sm:$0xff]  }
 0x59b   :  { %v1218_v33 = vsel %vm495_vm0, %v1214_v22, 0.0  ;;  %v1219_v34 = vsel %vm495_vm0, %v1215_v6, 0.0  ;;  %v1221_v36 = vsel %vm495_vm0, %v1216_v31, 0.0  ;;  %v1223_v38 = vsel %vm495_vm0, %v1217_v32, 0.0  ;;  %v5378_v30 = vld [vmem:[%s6637_s1 + $0x58] sm:$0xff]   ;;  %v5379_v32 = vld [vmem:[%s6637_s1 + $0x60] sm:$0xff]  }
 0x59c   :  { %v1220_v35 = vadd.f32 %v1219_v34, %v1218_v33  ;;  %v5386_v48 = vld [vmem:[%s6638_s9 + $0x58] sm:$0xff]  }
 0x59e   :  { %v1222_v37 = vadd.f32 %v1221_v36, %v1220_v35 }
 0x5a0   :  { %v1224_v39 = vadd.f32 %v1223_v38, %v1222_v37  ;;  %v5380_v37 = vld [vmem:[%s6637_s1 + $0x68] sm:$0xff]  }
 0x5a2   :  { %v1225_v40 = vrot.slane %v1224_v39, 4 }
 0x5a4   :  { %v1226_v41 = vadd.f32 %v1225_v40, %v1224_v39 }
 0x5a6   :  { %v1227_v42 = vrot.slane %v1226_v41, 2 }
 0x5a8   :  { %v1228_v43 = vadd.f32 %v1227_v42, %v1226_v41  ;;  %v5381_v42 = vld [vmem:[%s6637_s1 + $0x70] sm:$0xff]  }
 0x5aa   :  { %v1229_v44 = vrot.slane %v1228_v43, 1 }
 0x5ac   :  { %v1230_v45 = vadd.f32 %v1229_v44, %v1228_v43  ;;  %v5382_v44 = vld [vmem:[%s6637_s1 + $0x78] sm:$0xff]  }
 0x5ae   :  { %v1231_v46 = vmul.f32 0.03125, %v1230_v45  ;;  %v5383_v45 = vld [vmem:[%s6638_s9 + $0x40] sm:$0xff]  }
 0x5b0   :  { %v1241_v47 = vadd.f32 1e-05, %v1231_v46  ;;  %v5384_v46 = vld [vmem:[%s6638_s9 + $0x48] sm:$0xff]  }
 0x5b2   :  { %5463 = vrsqrt.f32 %v1241_v47  ;;  %v5385_v47 = vld [vmem:[%s6638_s9 + $0x50] sm:$0xff]  }
 0x5bc   :  { %v5464_v55 = vpop.eup %5463 }
 0x5bd   :  { %v1244_v57 = vmul.f32 %v5464_v55, %v1238_v50  ;;  %v1245_v58 = vmul.f32 %v5464_v55, %v1239_v51  ;;  %v1246_v59 = vmul.f32 %v5464_v55, %v1240_v53  ;;  %v1243_v60 = vmul.f32 %v5464_v55, %v1237_v49  ;;  %v5387_v49 = vld [vmem:[%s6638_s9 + $0x60] sm:$0xff]   ;;  %v5388_v50 = vld [vmem:[%s6638_s9 + $0x68] sm:$0xff]  }
 0x5bf   :  { %v1253_v61 = vadd.f32 %v4329_v56, %v1244_v57  ;;  %v1252_v62 = vadd.f32 %v4329_v56, %v1243_v60  ;;  %v1254_v63 = vadd.f32 %v4329_v56, %v1245_v58  ;;  %v1255_v0 = vadd.f32 %v4329_v56, %v1246_v59  ;;  %v4362_v60 = vld [vmem:[%s6639_s5 + $0x1] ss:$0 sm:$0xff] }
 0x5c1   :  { %1257 = vst.msk [vmem:[#allocation2 + $0x8] sm:$0xff] %vm495_vm0, %v1253_v61  ;;  %v1264_v1 = vpack.c.bf16 %v1253_v61, %v1252_v62  ;;  %1256 = vst.msk [vmem:[#allocation2] sm:$0xff] %vm495_vm0, %v1252_v62  ;;  %v1265_v2 = vpack.c.bf16 %v1255_v0, %v1254_v63 }
 0x5c2   :  { %1258 = vst.msk [vmem:[#allocation2 + $0x10] sm:$0xff] %vm495_vm0, %v1254_v63  ;;  %1259 = vst.msk [vmem:[#allocation2 + $0x18] sm:$0xff] %vm495_vm0, %v1255_v0 }
 0x5c3   :  { %4978 = vmatprep.mubr.msk.bf16.mxu1 %vm495_vm0, %v1264_v1 }
 0x5c4   :  { %4979 = vmatmul.mubr.msk.bf16.vlgmr.msra.gmra.mrb[20].mxu1 %vm495_vm0, %v1265_v2 }
 0x5c5   :  { %4994 = vmatprep.mubr.msk.bf16.mxu1 %vm495_vm0, %v5369_v5 }
 0x697   :  { %v5910_v7 = vpop.f32.mrb[20].mxu1 }
 0x698   :  { %v5912_v8 = vpop.f32.mrb[21].mxu1 }
 0x699   :  { %v5915_v9 = vpop.f32.mrb[22].mxu1  ;;  %v1696_v63 = vmul.f32 %v4362_v60, %v5912_v8 }
 0x69a   :  { %v1338_v52 = vpack.c.bf16 %v5915_v9, %v5910_v7  ;;  %v5919_v10 = vpop.f32.mrb[23].mxu1 }
 0x69b   :  { %v1337_v11 = vpack.c.bf16 %v5919_v10, %v5912_v8 }
 0x69c   :  { %1422 = vrot.lane.b32.xlu1 %v1338_v52, %s6618_s25 }
 0x69d   :  { %1420 = vrot.lane.b32.xlu0 %v1337_v11, %s6618_s25  ;;  %4982 = vmatprep.subr.bf16.mxu0 %v1337_v11 }
 0x69e   :  { %4983 = vmatpush3.bf16.msra.mxu0 %v1337_v11 }
 0x69f   :  { %4984 = vmatprep.subr.bf16.mxu0 %v1338_v52 }
 0x6a0   :  { %1570 = vrot.lane.b32.xlu1 %v1337_v11, %s6622_s24 }
 0x6a1   :  { %1495 = vrot.lane.b32.xlu0 %v1337_v11, %s6620_s30 }
 0x6a2   :  { %4985 = vmatpush3.bf16.msra.mxu0 %v1338_v52 }
 0x6a4   :  { %1572 = vrot.lane.b32.xlu1 %v1338_v52, %s6622_s24 }
 0x6a5   :  { %1497 = vrot.lane.b32.xlu0 %v1338_v52, %s6620_s30  ;;  %4987 = vmatmul.mubr.msk.bf16.vlgmr.msra.gmra.mrb[24].mxu0 %vm495_vm0, %v5368_v12  ;;  %v1697_v52 = vmul.f32 %v4362_v60, %v5919_v10 }
 0x6a6   :  { %5002 = vmatprep.mubr.msk.bf16.mxu0 %vm495_vm0, %v5371_v13 }
 0x70e   :  { %v1423_v14 = vpop.permute.xlu1 %1422 }
 0x70f   :  { %v1421_v15 = vpop.permute.xlu0 %1420 }
 0x710   :  { %4990 = vmatprep.subr.bf16.mxu1 %v1421_v15 }
 0x711   :  { %4991 = vmatpush3.bf16.msra.mxu1 %v1421_v15  ;;  %v1698_v15 = vmul.f32 %v5910_v7, %v4362_v60 }
 0x712   :  { %4992 = vmatprep.subr.bf16.mxu1 %v1423_v14  ;;  %v1571_v16 = vpop.permute.xlu1 %1570 }
 0x713   :  { %v1496_v54 = vpop.permute.xlu0 %1495 }
 0x714   :  { %4998 = vmatprep.subr.bf16.mxu0 %v1496_v54 }
 0x715   :  { %4993 = vmatpush3.bf16.msra.mxu1 %v1423_v14  ;;  %4999 = vmatpush3.bf16.msra.mxu0 %v1496_v54 }
 0x716   :  { %5006 = vmatprep.subr.bf16.mxu1 %v1571_v16  ;;  %v1573_v21 = vpop.permute.xlu1 %1572 }
 0x717   :  { %v1498_v19 = vpop.permute.xlu0 %1497 }
 0x718   :  { %4995 = vmatmul.mubr.msk.bf16.vlgmr.msra.gmra.mrb[24].mxu1 %vm495_vm0, %v5370_v17  ;;  %5000 = vmatprep.subr.bf16.mxu0 %v1498_v19 }
 0x719   :  { %5001 = vmatpush3.bf16.msra.mxu0 %v1498_v19  ;;  %5007 = vmatpush3.bf16.msra.mxu1 %v1571_v16 }
 0x71a   :  { %5008 = vmatprep.subr.bf16.mxu1 %v1573_v21  ;;  %5010 = vmatprep.mubr.msk.bf16.mxu1 %vm495_vm0, %v5373_v18 }
 0x71b   :  { %5014 = vmatprep.subr.bf16.mxu0 %v5375_v27 }
 0x71c   :  { %5003 = vmatmul.mubr.msk.bf16.vlgmr.msra.gmra.mrb[28].mxu0 %vm495_vm0, %v5372_v20  ;;  %v1699_v20 = vmul.f32 %v5915_v9, %v4362_v60  ;;  %v5389_v9 = vld [vmem:[%s6638_s9 + $0x70] sm:$0xff]  }
 0x71d   :  { %5009 = vmatpush3.bf16.msra.mxu1 %v1573_v21  ;;  %5015 = vmatpush3.bf16.msra.mxu0 %v5375_v27 }
 0x71e   :  { %5016 = vmatprep.subr.bf16.mxu0 %v5376_v28  ;;  %5034 = vmatprep.subr.bf16.mxu1 %v5383_v45 }
 0x720   :  { %5011 = vmatmul.mubr.msk.bf16.vlgmr.msra.gmra.mrb[28].mxu1 %vm495_vm0, %v5374_v23 }
 0x721   :  { %5017 = vmatpush3.bf16.msra.mxu0 %v5376_v28  ;;  %5035 = vmatpush3.bf16.msra.mxu1 %v5383_v45 }
 0x722   :  { %5018 = vmatprep.subr.bf16.mxu0 %v5377_v29  ;;  %5036 = vmatprep.subr.bf16.mxu1 %v5384_v46 }
 0x725   :  { %5019 = vmatpush3.bf16.msra.mxu0 %v5377_v29  ;;  %5037 = vmatpush3.bf16.msra.mxu1 %v5384_v46 }
 0x726   :  { %5020 = vmatprep.subr.bf16.mxu0 %v5378_v30  ;;  %5038 = vmatprep.subr.bf16.mxu1 %v5385_v47 }
 0x729   :  { %5021 = vmatpush3.bf16.msra.mxu0 %v5378_v30  ;;  %5039 = vmatpush3.bf16.msra.mxu1 %v5385_v47 }
 0x72a   :  { %5022 = vmatprep.subr.bf16.mxu0 %v5379_v32  ;;  %5040 = vmatprep.subr.bf16.mxu1 %v5386_v48 }
 0x72d   :  { %5023 = vmatpush3.bf16.msra.mxu0 %v5379_v32  ;;  %5041 = vmatpush3.bf16.msra.mxu1 %v5386_v48  ;;  %v5390_v32 = vld [vmem:[%s6638_s9 + $0x78] sm:$0xff]   ;;  %v5391_v48 = vld [vmem:[%s6594_s11 + $0x10] sm:$0xff]  }
 0x72e   :  { %5024 = vmatprep.subr.bf16.mxu0 %v5380_v37  ;;  %5042 = vmatprep.subr.bf16.mxu1 %v5387_v49 }
 0x731   :  { %5025 = vmatpush3.bf16.msra.mxu0 %v5380_v37  ;;  %5043 = vmatpush3.bf16.msra.mxu1 %v5387_v49  ;;  %v5392_v49 = vld [vmem:[%s6594_s11 + $0x18] sm:$0xff]  }
 0x732   :  { %5026 = vmatprep.subr.bf16.mxu0 %v5381_v42  ;;  %5044 = vmatprep.subr.bf16.mxu1 %v5388_v50 }
 0x735   :  { %5027 = vmatpush3.bf16.msra.mxu0 %v5381_v42  ;;  %5045 = vmatpush3.bf16.msra.mxu1 %v5388_v50  ;;  %v4405_v50 = vld [vmem:[%s6595_s10 + $0x1] ss:$0 sm:$0xff] }
 0x736   :  { %5028 = vmatprep.subr.bf16.mxu0 %v5382_v44  ;;  %5046 = vmatprep.subr.bf16.mxu1 %v5389_v9 }
 0x739   :  { %5029 = vmatpush3.bf16.msra.mxu0 %v5382_v44  ;;  %5047 = vmatpush3.bf16.msra.mxu1 %v5389_v9 }
 0x73a   :  { %5048 = vmatprep.subr.bf16.mxu1 %v5390_v32  ;;  %5054 = vmatprep.subr.bf16.mxu0 %v5391_v48 }
 0x73d   :  { %5049 = vmatpush3.bf16.msra.mxu1 %v5390_v32 }
 0x778   :  { %v5953_v4 = vpop.f32.mrb[24].mxu0 }
 0x779   :  { %v5955_v24 = vpop.f32.mrb[25].mxu0 }
 0x77a   :  { %v5957_v25 = vpop.f32.mrb[26].mxu0 }
 0x77b   :  { %v5959_v26 = vpop.f32.mrb[27].mxu0 }
 0x7eb   :  { %v4996_v22 = vpop.f32.mrb[24].mxu1 }
 0x7ec   :  { %1639 = vrot.lane.b32.xlu0 %v4996_v22, %s6622_s24  ;;  %v1466_v6 = vpop.f32.mrb[25].mxu1 }
 0x7ed   :  { %v4997_v31 = vpop.f32.mrb[26].mxu1 }
 0x7ee   :  { %1641 = vrot.lane.b32.xlu1 %v4997_v31, %s6622_s24  ;;  %v1469_v33 = vpop.f32.mrb[27].mxu1 }
 0x7ef   :  { %v5004_v34 = vpop.f32.mrb[28].mxu0 }
 0x7f0   :  { %1655 = vrot.lane.b32.xlu0 %v5004_v34, %s6642_s26  ;;  %v1541_v35 = vpop.f32.mrb[29].mxu0 }
 0x7f1   :  { %v5005_v36 = vpop.f32.mrb[30].mxu0 }
 0x7f2   :  { %1657 = vrot.lane.b32.xlu1 %v5005_v36, %s6642_s26  ;;  %v1544_v38 = vpop.f32.mrb[31].mxu0 }
 0x7f3   :  { %v5012_v39 = vpop.f32.mrb[28].mxu1 }
 0x7f4   :  { %1635 = vrot.lane.b32.xlu0 %v1466_v6, %s6622_s24  ;;  %v1616_v40 = vpop.f32.mrb[29].mxu1 }
 0x7f5   :  { %v5013_v41 = vpop.f32.mrb[30].mxu1 }
 0x7f6   :  { %1637 = vrot.lane.b32.xlu1 %v1469_v33, %s6622_s24  ;;  %v1619_v43 = vpop.f32.mrb[31].mxu1  ;;  %v4380_v33 = vld [vmem:[%s6641_s8 + $0x1] ss:$0 sm:$0xff]  ;;  %s6646_s24 = sld [smem:[#allocation13_spill]] }
 0x7f8   :  { %1651 = vrot.lane.b32.xlu0 %v1541_v35, %s6642_s26 }
 0x7fa   :  { %1653 = vrot.lane.b32.xlu1 %v1544_v38, %s6642_s26 }
 0x7fc   :  { %1667 = vrot.lane.b32.xlu0 %v1616_v40, %s6643_s0 }
 0x7fe   :  { %1669 = vrot.lane.b32.xlu1 %v1619_v43, %s6643_s0 }
 0x800   :  { %1671 = vrot.lane.b32.xlu0 %v5012_v39, %s6643_s0 }
 0x802   :  { %1673 = vrot.lane.b32.xlu1 %v5013_v41, %s6643_s0 }
 0x85e   :  { %v1640_v51 = vpop.permute.xlu0 %1639 }
 0x85f   :  { %v1681_v8 = vsel %vm495_vm0, %v5953_v4, %v1640_v51 }
 0x860   :  { %v1642_v53 = vpop.permute.xlu1 %1641 }
 0x861   :  { %v1682_v19 = vsel %vm495_vm0, %v5957_v25, %v1642_v53 }
 0x862   :  { %v1656_v55 = vpop.permute.xlu0 %1655 }
 0x863   :  { %v1685_v16 = vsel %vm833_vm2, %v1681_v8, %v1656_v55 }
 0x864   :  { %v1658_v56 = vpop.permute.xlu1 %1657 }
 0x865   :  { %v1686_v21 = vsel %vm833_vm2, %v1682_v19, %v1658_v56 }
 0x866   :  { %v1636_v57 = vpop.permute.xlu0 %1635 }
 0x867   :  { %v1679_v62 = vsel %vm495_vm0, %v5955_v24, %v1636_v57 }
 0x868   :  { %v1638_v58 = vpop.permute.xlu1 %1637 }
 0x869   :  { %v1680_v2 = vsel %vm495_vm0, %v5959_v26, %v1638_v58 }
 0x86a   :  { %v1652_v59 = vpop.permute.xlu0 %1651 }
 0x86b   :  { %v1683_v0 = vsel %vm833_vm2, %v1679_v62, %v1652_v59 }
 0x86c   :  { %v1654_v61 = vpop.permute.xlu1 %1653 }
 0x86d   :  { %v1684_v11 = vsel %vm833_vm2, %v1680_v2, %v1654_v61 }
 0x86e   :  { %v1668_v1 = vpop.permute.xlu0 %1667 }
 0x86f   :  { %v1687_v5 = vsel %vm838_vm1, %v1683_v0, %v1668_v1 }
 0x870   :  { %v1700_v12 = vadd.f32 %v1696_v63, %v1687_v5  ;;  %v1670_v13 = vpop.permute.xlu1 %1669  ;;  %v5394_v5 = vld [vmem:[%s6596_s4 + $0x18] sm:$0xff]  }
 0x871   :  { %v1688_v14 = vsel %vm838_vm1, %v1684_v11, %v1670_v13 }
 0x872   :  { %v1709_v54 = vadd.f32 %v4363_v3, %v1700_v12  ;;  %v1701_v17 = vadd.f32 %v1697_v52, %v1688_v14  ;;  %v1672_v18 = vpop.permute.xlu0 %1671  ;;  %v4418_v52 = vld [vmem:[%s6597_s12 + $0x1] ss:$0 sm:$0xff] }
 0x873   :  { %v1689_v10 = vsel %vm838_vm1, %v1685_v16, %v1672_v18 }
 0x874   :  { %v1710_v23 = vadd.f32 %v4363_v3, %v1701_v17  ;;  %v1702_v4 = vadd.f32 %v1698_v15, %v1689_v10  ;;  %v1674_v24 = vpop.permute.xlu1 %1673  ;;  %v1713_v7 = vmax.f32 %v1709_v54, 0.0 }
 0x875   :  { %v1690_v26 = vsel %vm838_vm1, %v1686_v21, %v1674_v24 }
 0x876   :  { %v1714_v27 = vmax.f32 %v1710_v23, 0.0  ;;  %v1711_v28 = vadd.f32 %v4363_v3, %v1702_v4  ;;  %v1703_v29 = vadd.f32 %v1699_v20, %v1690_v26 }
 0x878   :  { %v1712_v30 = vadd.f32 %v4363_v3, %v1703_v29  ;;  %v1734_v22 = vpack.c.bf16 %v1714_v27, %v1713_v7  ;;  %v1715_v6 = vmax.f32 %v1711_v28, 0.0  ;;  %v5393_v3 = vld [vmem:[%s6596_s4 + $0x10] sm:$0xff]  }
 0x879   :  { %5062 = vmatprep.subr.bf16.mxu1 %v5393_v3 }
 0x87a   :  { %v1716_v31 = vmax.f32 %v1712_v30, 0.0  ;;  %5030 = vmatprep.mubr.bf16.mxu0 %v1734_v22 }
 0x87c   :  { %v1735_v25 = vpack.c.bf16 %v1716_v31, %v1715_v6 }
 0x87e   :  { %5031 = vmatmul.mubr.bf16.vlgmr.msra.gmra.mrb[32].mxu0 %v1735_v25 }
 0x87f   :  { %5055 = vmatpush3.bf16.msra.mxu0 %v5391_v48 }
 0x880   :  { %5056 = vmatprep.subr.bf16.mxu0 %v5392_v49 }
 0x883   :  { %5057 = vmatpush3.bf16.msra.mxu0 %v5392_v49  ;;  %v4423_v49 = vld [vmem:[%s6598_s13 + $0x1] ss:$0 sm:$0xff] }
 0x951   :  { %v5032_v34 = vpop.f32.mrb[32].mxu0 }
 0x952   :  { %v1832_v35 = vadd.f32 %v5032_v34, %v4380_v33  ;;  %v1823_v36 = vpop.f32.mrb[33].mxu0 }
 0x953   :  { %v1824_v37 = vadd.f32 %v4380_v33, %v1823_v36  ;;  %v5033_v38 = vpop.f32.mrb[34].mxu0 }
 0x954   :  { %v1835_v39 = vadd.f32 %v5033_v38, %v4380_v33  ;;  %v1826_v40 = vpop.f32.mrb[35].mxu0  ;;  %v1840_v42 = vmax.f32 %v1832_v35, 0.0 }
 0x955   :  { %v1827_v41 = vadd.f32 %v4380_v33, %v1826_v40  ;;  %v1838_v44 = vmax.f32 %v1824_v37, 0.0 }
 0x956   :  { %v1841_v43 = vmax.f32 %v1835_v39, 0.0 }
 0x957   :  { %v1839_v45 = vmax.f32 %v1827_v41, 0.0 }
 0x958   :  { %v1860_v46 = vpack.c.bf16 %v1841_v43, %v1840_v42 }
 0x959   :  { %v1859_v47 = vpack.c.bf16 %v1839_v45, %v1838_v44 }
 0x95b   :  { %5050 = vmatprep.mubr.bf16.mxu1 %v1859_v47 }
 0x95c   :  { %5051 = vmatmul.mubr.bf16.vlgmr.msra.gmra.mrb[32].mxu1 %v1860_v46 }
 0x95d   :  { %5063 = vmatpush3.bf16.msra.mxu1 %v5393_v3 }
 0x95e   :  { %5064 = vmatprep.subr.bf16.mxu1 %v5394_v5 }
 0x961   :  { %5065 = vmatpush3.bf16.msra.mxu1 %v5394_v5  ;;  %v5395_v5 = vld [vmem:[%s6636_s3] sm:$0xff]  }
 0xa2f   :  { %v5052_v51 = vpop.f32.mrb[32].mxu1 }
 0xa30   :  { %v1957_v53 = vadd.f32 %v5052_v51, %v4405_v50  ;;  %v1948_v55 = vpop.f32.mrb[33].mxu1 }
 0xa31   :  { %v1949_v56 = vadd.f32 %v4405_v50, %v1948_v55  ;;  %v5053_v57 = vpop.f32.mrb[34].mxu1 }
 0xa32   :  { %v1960_v58 = vadd.f32 %v5053_v57, %v4405_v50  ;;  %v1951_v59 = vpop.f32.mrb[35].mxu1  ;;  %v1965_v61 = vmax.f32 %v1957_v53, 0.0  ;;  %v4424_v57 = vld [vmem:[%s6599_s14 + $0x1] ss:$0 sm:$0xff] }
 0xa33   :  { %v1952_v60 = vadd.f32 %v4405_v50, %v1951_v59  ;;  %v1963_v63 = vmax.f32 %v1949_v56, 0.0 }
 0xa34   :  { %v1966_v62 = vmax.f32 %v1960_v58, 0.0 }
 0xa35   :  { %v1964_v0 = vmax.f32 %v1952_v60, 0.0 }
 0xa36   :  { %v1973_v1 = vpack.c.bf16 %v1966_v62, %v1965_v61 }
 0xa37   :  { %v1972_v2 = vpack.c.bf16 %v1964_v0, %v1963_v63 }
 0xa39   :  { %5058 = vmatprep.mubr.msk.bf16.mxu0 %vm495_vm0, %v1972_v2 }
 0xa3a   :  { %5059 = vmatmul.mubr.msk.bf16.vlgmr.msra.gmra.mrb[36].mxu0 %vm495_vm0, %v1973_v1 }
 0xa3b   :  { %5074 = vmatprep.mubr.msk.bf16.mxu0 %vm495_vm0, %v5395_v5 }
 0xb0d   :  { %v5060_v11 = vpop.f32.mrb[36].mxu0 }
 0xb0e   :  { %v2031_v12 = vpop.f32.mrb[37].mxu0  ;;  %v2040_v15 = vadd.f32 %v5060_v11, %v4418_v52 }
 0xb0f   :  { %v2032_v13 = vadd.f32 %v4418_v52, %v2031_v12  ;;  %v5061_v8 = vpop.f32.mrb[38].mxu0 }
 0xb10   :  { %v2034_v14 = vpop.f32.mrb[39].mxu0  ;;  %v2043_v17 = vadd.f32 %v5061_v8, %v4418_v52  ;;  %v2049_v10 = vsel %vm495_vm0, %v2040_v15, 0.0 }
 0xb11   :  { %v2035_v16 = vadd.f32 %v4418_v52, %v2034_v14  ;;  %v2046_v54 = vsel %vm495_vm0, %v2032_v13, 0.0  ;;  %v5397_v52 = vld [vmem:[%s6636_s3 + $0x10] sm:$0xff]  }
 0xb12   :  { %v2051_v21 = vsel %vm495_vm0, %v2043_v17, 0.0 }
 0xb13   :  { %v2047_v18 = vsel %vm495_vm0, %v2035_v16, 0.0 }
 0xb14   :  { %v2048_v19 = vadd.f32 %v2047_v18, %v2046_v54  ;;  %v5399_v54 = vld [vmem:[%s6636_s3 + $0x20] sm:$0xff]  }
 0xb16   :  { %v2050_v20 = vadd.f32 %v2049_v10, %v2048_v19 }
 0xb18   :  { %v2052_v23 = vadd.f32 %v2051_v21, %v2050_v20  ;;  %v5398_v20 = vld [vmem:[%s6636_s3 + $0x18] sm:$0xff]   ;;  %v5401_v21 = vld [vmem:[%s6636_s3 + $0x30] sm:$0xff]  }
 0xb1a   :  { %v2053_v4 = vrot.slane %v2052_v23, 4 }
 0xb1c   :  { %v2054_v24 = vadd.f32 %v2053_v4, %v2052_v23  ;;  %v5400_v4 = vld [vmem:[%s6636_s3 + $0x28] sm:$0xff]  }
 0xb1e   :  { %v2055_v26 = vrot.slane %v2054_v24, 2 }
 0xb20   :  { %v2056_v7 = vadd.f32 %v2055_v26, %v2054_v24  ;;  %v5402_v26 = vld [vmem:[%s6636_s3 + $0x38] sm:$0xff]  }
 0xb22   :  { %v2057_v27 = vrot.slane %v2056_v7, 1 }
 0xb24   :  { %v2058_v28 = vadd.f32 %v2057_v27, %v2056_v7 }
 0xb26   :  { %v2059_v29 = vmul.f32 0.03125, %v2058_v28 }
 0xb28   :  { %v2060_v30 = vsub.f32 %v2032_v13, %v2059_v29  ;;  %v2061_v22 = vsub.f32 %v2035_v16, %v2059_v29  ;;  %v2062_v6 = vsub.f32 %v2040_v15, %v2059_v29  ;;  %v2063_v31 = vsub.f32 %v2043_v17, %v2059_v29  ;;  %v5396_v16 = vld [vmem:[%s6636_s3 + $0x8] sm:$0xff]  }
 0xb2a   :  { %v2064_v25 = vmul.f32 %v2060_v30, %v2060_v30  ;;  %v2065_v9 = vmul.f32 %v2061_v22, %v2061_v22  ;;  %v2066_v32 = vmul.f32 %v2062_v6, %v2062_v6  ;;  %v2067_v33 = vmul.f32 %v2063_v31, %v2063_v31 }
 0xb2b   :  { %v2087_v50 = vmul.f32 %v4423_v49, %v2060_v30  ;;  %v2088_v51 = vmul.f32 %v4423_v49, %v2061_v22  ;;  %v2089_v53 = vmul.f32 %v4423_v49, %v2062_v6  ;;  %v2090_v55 = vmul.f32 %v4423_v49, %v2063_v31  ;;  %v5403_v30 = vld [vmem:[%s6637_s1 + $0x80] sm:$0xff]   ;;  %v5404_v22 = vld [vmem:[%s6637_s1 + $0x88] sm:$0xff]   ;;  %v5405_v6 = vld [vmem:[%s6637_s1 + $0x90] sm:$0xff]  }
 0xb2c   :  { %v2068_v34 = vsel %vm495_vm0, %v2064_v25, 0.0  ;;  %v2069_v35 = vsel %vm495_vm0, %v2065_v9, 0.0  ;;  %v2071_v37 = vsel %vm495_vm0, %v2066_v32, 0.0  ;;  %v2073_v39 = vsel %vm495_vm0, %v2067_v33, 0.0  ;;  %v5406_v31 = vld [vmem:[%s6637_s1 + $0x98] sm:$0xff]   ;;  %v5407_v33 = vld [vmem:[%s6637_s1 + $0xa0] sm:$0xff]  }
 0xb2d   :  { %v2070_v36 = vadd.f32 %v2069_v35, %v2068_v34  ;;  %v5414_v49 = vld [vmem:[%s6638_s9 + $0x98] sm:$0xff]  }
 0xb2f   :  { %v2072_v38 = vadd.f32 %v2071_v37, %v2070_v36 }
 0xb31   :  { %v2074_v40 = vadd.f32 %v2073_v39, %v2072_v38  ;;  %v5408_v38 = vld [vmem:[%s6637_s1 + $0xa8] sm:$0xff]  }
 0xb33   :  { %v2075_v41 = vrot.slane %v2074_v40, 4 }
 0xb35   :  { %v2076_v42 = vadd.f32 %v2075_v41, %v2074_v40 }
 0xb37   :  { %v2077_v43 = vrot.slane %v2076_v42, 2 }
 0xb39   :  { %v2078_v44 = vadd.f32 %v2077_v43, %v2076_v42  ;;  %v5409_v43 = vld [vmem:[%s6637_s1 + $0xb0] sm:$0xff]  }
 0xb3b   :  { %v2079_v45 = vrot.slane %v2078_v44, 1 }
 0xb3d   :  { %v2080_v46 = vadd.f32 %v2079_v45, %v2078_v44  ;;  %v5410_v45 = vld [vmem:[%s6637_s1 + $0xb8] sm:$0xff]  }
 0xb3f   :  { %v2081_v47 = vmul.f32 0.03125, %v2080_v46  ;;  %v5411_v46 = vld [vmem:[%s6638_s9 + $0x80] sm:$0xff]  }
 0xb41   :  { %v2091_v48 = vadd.f32 1e-05, %v2081_v47  ;;  %v5412_v47 = vld [vmem:[%s6638_s9 + $0x88] sm:$0xff]  }
 0xb43   :  { %5465 = vrsqrt.f32 %v2091_v48  ;;  %v5413_v48 = vld [vmem:[%s6638_s9 + $0x90] sm:$0xff]  }
 0xb4d   :  { %v5466_v56 = vpop.eup %5465 }
 0xb4e   :  { %v2094_v58 = vmul.f32 %v5466_v56, %v2088_v51  ;;  %v2095_v59 = vmul.f32 %v5466_v56, %v2089_v53  ;;  %v2096_v60 = vmul.f32 %v5466_v56, %v2090_v55  ;;  %v2093_v61 = vmul.f32 %v5466_v56, %v2087_v50  ;;  %v5415_v50 = vld [vmem:[%s6638_s9 + $0xa0] sm:$0xff]   ;;  %v5416_v51 = vld [vmem:[%s6638_s9 + $0xa8] sm:$0xff]  }
 0xb50   :  { %v6084_v62 = vadd.f32 %v4424_v57, %v2094_v58  ;;  %v6086_v63 = vadd.f32 %v4424_v57, %v2093_v61  ;;  %v6088_v0 = vadd.f32 %v4424_v57, %v2095_v59  ;;  %v6090_v1 = vadd.f32 %v4424_v57, %v2096_v60  ;;  %v4461_v61 = vld [vmem:[%s6639_s5 + $0x2] ss:$0 sm:$0xff] }
 0xb52   :  { %v2132_v2 = vpack.c.bf16 %v6084_v62, %v6086_v63  ;;  %v2133_v3 = vpack.c.bf16 %v6090_v1, %v6088_v0 }
 0xb54   :  { %5066 = vmatprep.mubr.msk.bf16.mxu1 %vm495_vm0, %v2132_v2 }
 0xb55   :  { %5067 = vmatmul.mubr.msk.bf16.vlgmr.msra.gmra.mrb[36].mxu1 %vm495_vm0, %v2133_v3 }
 0xb56   :  { %5082 = vmatprep.mubr.msk.bf16.mxu1 %vm495_vm0, %v5397_v52 }
 0xc28   :  { %v6105_v11 = vpop.f32.mrb[36].mxu1 }
 0xc29   :  { %v6107_v12 = vpop.f32.mrb[37].mxu1 }
 0xc2a   :  { %v6110_v13 = vpop.f32.mrb[38].mxu1  ;;  %v2564_v5 = vmul.f32 %v4461_v61, %v6107_v12 }
 0xc2b   :  { %v2206_v8 = vpack.c.bf16 %v6110_v13, %v6105_v11  ;;  %v6114_v14 = vpop.f32.mrb[39].mxu1 }
 0xc2c   :  { %v2205_v15 = vpack.c.bf16 %v6114_v14, %v6107_v12 }
 0xc2d   :  { %2290 = vrot.lane.b32.xlu1 %v2206_v8, %s6643_s0 }
 0xc2e   :  { %2288 = vrot.lane.b32.xlu0 %v2205_v15, %s6643_s0  ;;  %5070 = vmatprep.subr.bf16.mxu0 %v2205_v15 }
 0xc2f   :  { %5071 = vmatpush3.bf16.msra.mxu0 %v2205_v15 }
 0xc30   :  { %5072 = vmatprep.subr.bf16.mxu0 %v2206_v8 }
 0xc31   :  { %2438 = vrot.lane.b32.xlu1 %v2205_v15, %s6644_s27 }
 0xc32   :  { %2363 = vrot.lane.b32.xlu0 %v2205_v15, %s6642_s26 }
 0xc33   :  { %5073 = vmatpush3.bf16.msra.mxu0 %v2206_v8 }
 0xc35   :  { %2440 = vrot.lane.b32.xlu1 %v2206_v8, %s6644_s27 }
 0xc36   :  { %2365 = vrot.lane.b32.xlu0 %v2206_v8, %s6642_s26  ;;  %5075 = vmatmul.mubr.msk.bf16.vlgmr.msra.gmra.mrb[40].mxu0 %vm495_vm0, %v5396_v16  ;;  %v4462_v16 = vld [vmem:[%s6640_s29 + $0x2] ss:$0 sm:$0xff] }
 0xc37   :  { %5090 = vmatprep.mubr.msk.bf16.mxu0 %vm495_vm0, %v5399_v54 }
 0xc9f   :  { %v2291_v17 = vpop.permute.xlu1 %2290 }
 0xca0   :  { %v2289_v18 = vpop.permute.xlu0 %2288 }
 0xca1   :  { %5078 = vmatprep.subr.bf16.mxu1 %v2289_v18 }
 0xca2   :  { %5079 = vmatpush3.bf16.msra.mxu1 %v2289_v18 }
 0xca3   :  { %5080 = vmatprep.subr.bf16.mxu1 %v2291_v17  ;;  %v2439_v19 = vpop.permute.xlu1 %2438 }
 0xca4   :  { %v2364_v10 = vpop.permute.xlu0 %2363 }
 0xca5   :  { %5086 = vmatprep.subr.bf16.mxu0 %v2364_v10 }
 0xca6   :  { %5081 = vmatpush3.bf16.msra.mxu1 %v2291_v17  ;;  %5087 = vmatpush3.bf16.msra.mxu0 %v2364_v10  ;;  %v2565_v17 = vmul.f32 %v4461_v61, %v6114_v14 }
 0xca7   :  { %5094 = vmatprep.subr.bf16.mxu1 %v2439_v19  ;;  %v2441_v24 = vpop.permute.xlu1 %2440 }
 0xca8   :  { %v2366_v23 = vpop.permute.xlu0 %2365 }
 0xca9   :  { %5083 = vmatmul.mubr.msk.bf16.vlgmr.msra.gmra.mrb[40].mxu1 %vm495_vm0, %v5398_v20  ;;  %5088 = vmatprep.subr.bf16.mxu0 %v2366_v23 }
 0xcaa   :  { %5089 = vmatpush3.bf16.msra.mxu0 %v2366_v23  ;;  %5095 = vmatpush3.bf16.msra.mxu1 %v2439_v19 }
 0xcab   :  { %5096 = vmatprep.subr.bf16.mxu1 %v2441_v24  ;;  %5098 = vmatprep.mubr.msk.bf16.mxu1 %vm495_vm0, %v5401_v21  ;;  %v2566_v21 = vmul.f32 %v6105_v11, %v4461_v61 }
 0xcac   :  { %5102 = vmatprep.subr.bf16.mxu0 %v5403_v30 }
 0xcad   :  { %5091 = vmatmul.mubr.msk.bf16.vlgmr.msra.gmra.mrb[44].mxu0 %vm495_vm0, %v5400_v4 }
 0xcae   :  { %5097 = vmatpush3.bf16.msra.mxu1 %v2441_v24  ;;  %5103 = vmatpush3.bf16.msra.mxu0 %v5403_v30 }
 0xcaf   :  { %5104 = vmatprep.subr.bf16.mxu0 %v5404_v22  ;;  %5122 = vmatprep.subr.bf16.mxu1 %v5411_v46 }
 0xcb1   :  { %5099 = vmatmul.mubr.msk.bf16.vlgmr.msra.gmra.mrb[44].mxu1 %vm495_vm0, %v5402_v26 }
 0xcb2   :  { %5105 = vmatpush3.bf16.msra.mxu0 %v5404_v22  ;;  %5123 = vmatpush3.bf16.msra.mxu1 %v5411_v46 }
 0xcb3   :  { %5106 = vmatprep.subr.bf16.mxu0 %v5405_v6  ;;  %5124 = vmatprep.subr.bf16.mxu1 %v5412_v47 }
 0xcb6   :  { %5107 = vmatpush3.bf16.msra.mxu0 %v5405_v6  ;;  %5125 = vmatpush3.bf16.msra.mxu1 %v5412_v47 }
 0xcb7   :  { %5108 = vmatprep.subr.bf16.mxu0 %v5406_v31  ;;  %5126 = vmatprep.subr.bf16.mxu1 %v5413_v48 }
 0xcba   :  { %5109 = vmatpush3.bf16.msra.mxu0 %v5406_v31  ;;  %5127 = vmatpush3.bf16.msra.mxu1 %v5413_v48 }
 0xcbb   :  { %5110 = vmatprep.subr.bf16.mxu0 %v5407_v33  ;;  %5128 = vmatprep.subr.bf16.mxu1 %v5414_v49 }
 0xcbe   :  { %5111 = vmatpush3.bf16.msra.mxu0 %v5407_v33  ;;  %5129 = vmatpush3.bf16.msra.mxu1 %v5414_v49 }
 0xcbf   :  { %5112 = vmatprep.subr.bf16.mxu0 %v5408_v38  ;;  %5130 = vmatprep.subr.bf16.mxu1 %v5415_v50 }
 0xcc2   :  { %5113 = vmatpush3.bf16.msra.mxu0 %v5408_v38  ;;  %5131 = vmatpush3.bf16.msra.mxu1 %v5415_v50  ;;  %v4479_v38 = vld [vmem:[%s6641_s8 + $0x2] ss:$0 sm:$0xff] }
 0xcc3   :  { %5114 = vmatprep.subr.bf16.mxu0 %v5409_v43  ;;  %5132 = vmatprep.subr.bf16.mxu1 %v5416_v51 }
 0xcc6   :  { %5115 = vmatpush3.bf16.msra.mxu0 %v5409_v43  ;;  %5133 = vmatpush3.bf16.msra.mxu1 %v5416_v51 }
 0xcc7   :  { %5116 = vmatprep.subr.bf16.mxu0 %v5410_v45 }
 0xcca   :  { %5117 = vmatpush3.bf16.msra.mxu0 %v5410_v45 }
 0xd09   :  { %v6148_v7 = vpop.f32.mrb[40].mxu0 }
 0xd0a   :  { %v6150_v27 = vpop.f32.mrb[41].mxu0 }
 0xd0b   :  { %v6152_v28 = vpop.f32.mrb[42].mxu0 }
 0xd0c   :  { %v6154_v29 = vpop.f32.mrb[43].mxu0 }
 0xd7c   :  { %v5084_v25 = vpop.f32.mrb[40].mxu1 }
 0xd7d   :  { %2507 = vrot.lane.b32.xlu0 %v5084_v25, %s6644_s27  ;;  %v2334_v9 = vpop.f32.mrb[41].mxu1 }
 0xd7e   :  { %v5085_v32 = vpop.f32.mrb[42].mxu1 }
 0xd7f   :  { %2509 = vrot.lane.b32.xlu1 %v5085_v32, %s6644_s27  ;;  %v2337_v34 = vpop.f32.mrb[43].mxu1 }
 0xd80   :  { %v5092_v35 = vpop.f32.mrb[44].mxu0 }
 0xd81   :  { %2523 = vrot.lane.b32.xlu0 %v5092_v35, %s6642_s26  ;;  %v2409_v36 = vpop.f32.mrb[45].mxu0 }
 0xd82   :  { %v5093_v37 = vpop.f32.mrb[46].mxu0 }
 0xd83   :  { %2525 = vrot.lane.b32.xlu1 %v5093_v37, %s6642_s26  ;;  %v2412_v39 = vpop.f32.mrb[47].mxu0  ;;  %v5418_v37 = vld [vmem:[%s6638_s9 + $0xb8] sm:$0xff]  }
 0xd84   :  { %v5100_v40 = vpop.f32.mrb[44].mxu1 }
 0xd85   :  { %2503 = vrot.lane.b32.xlu0 %v2334_v9, %s6644_s27  ;;  %v2484_v41 = vpop.f32.mrb[45].mxu1 }
 0xd86   :  { %v5101_v42 = vpop.f32.mrb[46].mxu1 }
 0xd87   :  { %2505 = vrot.lane.b32.xlu1 %v2337_v34, %s6644_s27  ;;  %v2487_v44 = vpop.f32.mrb[47].mxu1 }
 0xd89   :  { %2519 = vrot.lane.b32.xlu0 %v2409_v36, %s6642_s26 }
 0xd8b   :  { %2521 = vrot.lane.b32.xlu1 %v2412_v39, %s6642_s26 }
 0xd8d   :  { %2535 = vrot.lane.b32.xlu0 %v2484_v41, %s6643_s0 }
 0xd8f   :  { %2537 = vrot.lane.b32.xlu1 %v2487_v44, %s6643_s0 }
 0xd91   :  { %2539 = vrot.lane.b32.xlu0 %v5100_v40, %s6643_s0 }
 0xd93   :  { %2541 = vrot.lane.b32.xlu1 %v5101_v42, %s6643_s0 }
 0xdef   :  { %v2508_v53 = vpop.permute.xlu0 %2507 }
 0xdf0   :  { %v2549_v12 = vsel %vm495_vm0, %v6148_v7, %v2508_v53 }
 0xdf1   :  { %v2510_v55 = vpop.permute.xlu1 %2509 }
 0xdf3   :  { %v2524_v56 = vpop.permute.xlu0 %2523 }
 0xdf4   :  { %v2553_v23 = vsel %vm833_vm2, %v2549_v12, %v2524_v56  ;;  %v5420_v56 = vld [vmem:[%s6594_s11 + $0x28] sm:$0xff]   ;;  %v4517_v12 = vld [vmem:[%s6597_s12 + $0x2] ss:$0 sm:$0xff] }
 0xdf5   :  { %v2526_v57 = vpop.permute.xlu1 %2525 }
 0xdf7   :  { %v2504_v58 = vpop.permute.xlu0 %2503 }
 0xdf8   :  { %v2547_v3 = vsel %vm495_vm0, %v6150_v27, %v2504_v58  ;;  %v2550_v27 = vsel %vm495_vm0, %v6152_v28, %v2510_v55  ;;  %v5419_v55 = vld [vmem:[%s6594_s11 + $0x20] sm:$0xff]  }
 0xdf9   :  { %v2506_v59 = vpop.permute.xlu1 %2505  ;;  %v2554_v30 = vsel %vm833_vm2, %v2550_v27, %v2526_v57  ;;  %5142 = vmatprep.subr.bf16.mxu0 %v5419_v55  ;;  %v4504_v57 = vld [vmem:[%s6595_s10 + $0x2] ss:$0 sm:$0xff] }
 0xdfa   :  { %v2548_v15 = vsel %vm495_vm0, %v6154_v29, %v2506_v59  ;;  %v2567_v29 = vmul.f32 %v6110_v13, %v4461_v61  ;;  %v5417_v13 = vld [vmem:[%s6638_s9 + $0xb0] sm:$0xff]  }
 0xdfb   :  { %v2520_v60 = vpop.permute.xlu0 %2519  ;;  %5134 = vmatprep.subr.bf16.mxu1 %v5417_v13 }
 0xdfc   :  { %v2551_v52 = vsel %vm833_vm2, %v2547_v3, %v2520_v60  ;;  %5135 = vmatpush3.bf16.msra.mxu1 %v5417_v13 }
 0xdfd   :  { %v2522_v2 = vpop.permute.xlu1 %2521  ;;  %5136 = vmatprep.subr.bf16.mxu1 %v5418_v37 }
 0xdfe   :  { %v2552_v18 = vsel %vm833_vm2, %v2548_v15, %v2522_v2 }
 0xdff   :  { %v2536_v8 = vpop.permute.xlu0 %2535 }
 0xe00   :  { %v2555_v54 = vsel %vm838_vm1, %v2551_v52, %v2536_v8  ;;  %5137 = vmatpush3.bf16.msra.mxu1 %v5418_v37 }
 0xe01   :  { %v2568_v19 = vadd.f32 %v2564_v5, %v2555_v54  ;;  %v2538_v10 = vpop.permute.xlu1 %2537 }
 0xe02   :  { %v2556_v20 = vsel %vm838_vm1, %v2552_v18, %v2538_v10  ;;  %v5422_v10 = vld [vmem:[%s6596_s4 + $0x28] sm:$0xff]  }
 0xe03   :  { %v2577_v4 = vadd.f32 %v4462_v16, %v2568_v19  ;;  %v2569_v24 = vadd.f32 %v2565_v17, %v2556_v20  ;;  %v2540_v26 = vpop.permute.xlu0 %2539  ;;  %v5421_v19 = vld [vmem:[%s6596_s4 + $0x20] sm:$0xff]  }
 0xe04   :  { %v2557_v14 = vsel %vm838_vm1, %v2553_v23, %v2540_v26  ;;  %5150 = vmatprep.subr.bf16.mxu1 %v5421_v19 }
 0xe05   :  { %v2578_v22 = vadd.f32 %v4462_v16, %v2569_v24  ;;  %v2570_v7 = vadd.f32 %v2566_v21, %v2557_v14  ;;  %v2542_v6 = vpop.permute.xlu1 %2541  ;;  %v2581_v11 = vmax.f32 %v2577_v4, 0.0 }
 0xe06   :  { %v2558_v31 = vsel %vm838_vm1, %v2554_v30, %v2542_v6 }
 0xe07   :  { %v2582_v25 = vmax.f32 %v2578_v22, 0.0  ;;  %v2579_v9 = vadd.f32 %v4462_v16, %v2570_v7  ;;  %v2571_v32 = vadd.f32 %v2567_v29, %v2558_v31 }
 0xe09   :  { %v2580_v33 = vadd.f32 %v4462_v16, %v2571_v32  ;;  %v2602_v34 = vpack.c.bf16 %v2582_v25, %v2581_v11  ;;  %v2583_v35 = vmax.f32 %v2579_v9, 0.0 }
 0xe0b   :  { %v2584_v36 = vmax.f32 %v2580_v33, 0.0  ;;  %5118 = vmatprep.mubr.bf16.mxu0 %v2602_v34 }
 0xe0d   :  { %v2603_v28 = vpack.c.bf16 %v2584_v36, %v2583_v35 }
 0xe0f   :  { %5119 = vmatmul.mubr.bf16.vlgmr.msra.gmra.mrb[48].mxu0 %v2603_v28 }
 0xe10   :  { %5143 = vmatpush3.bf16.msra.mxu0 %v5419_v55 }
 0xe11   :  { %5144 = vmatprep.subr.bf16.mxu0 %v5420_v56 }
 0xe14   :  { %5145 = vmatpush3.bf16.msra.mxu0 %v5420_v56 }
 0xee2   :  { %v5120_v39 = vpop.f32.mrb[48].mxu0 }
 0xee3   :  { %v2700_v40 = vadd.f32 %v5120_v39, %v4479_v38  ;;  %v2691_v41 = vpop.f32.mrb[49].mxu0 }
 0xee4   :  { %v2692_v42 = vadd.f32 %v4479_v38, %v2691_v41  ;;  %v5121_v43 = vpop.f32.mrb[50].mxu0 }
 0xee5   :  { %v2703_v44 = vadd.f32 %v5121_v43, %v4479_v38  ;;  %v2694_v45 = vpop.f32.mrb[51].mxu0  ;;  %v2708_v47 = vmax.f32 %v2700_v40, 0.0 }
 0xee6   :  { %v2695_v46 = vadd.f32 %v4479_v38, %v2694_v45  ;;  %v2706_v49 = vmax.f32 %v2692_v42, 0.0 }
 0xee7   :  { %v2709_v48 = vmax.f32 %v2703_v44, 0.0 }
 0xee8   :  { %v2707_v50 = vmax.f32 %v2695_v46, 0.0 }
 0xee9   :  { %v2728_v51 = vpack.c.bf16 %v2709_v48, %v2708_v47 }
 0xeea   :  { %v2727_v53 = vpack.c.bf16 %v2707_v50, %v2706_v49 }
 0xeec   :  { %5138 = vmatprep.mubr.bf16.mxu1 %v2727_v53 }
 0xeed   :  { %5139 = vmatmul.mubr.bf16.vlgmr.msra.gmra.mrb[48].mxu1 %v2728_v51 }
 0xeee   :  { %5151 = vmatpush3.bf16.msra.mxu1 %v5421_v19 }
 0xeef   :  { %5152 = vmatprep.subr.bf16.mxu1 %v5422_v10 }
 0xef2   :  { %5153 = vmatpush3.bf16.msra.mxu1 %v5422_v10 }
 0xfc0   :  { %v5140_v58 = vpop.f32.mrb[48].mxu1 }
 0xfc1   :  { %v2825_v59 = vadd.f32 %v5140_v58, %v4504_v57  ;;  %v2816_v60 = vpop.f32.mrb[49].mxu1 }
 0xfc2   :  { %v2817_v61 = vadd.f32 %v4504_v57, %v2816_v60  ;;  %v5141_v2 = vpop.f32.mrb[50].mxu1  ;;  %v4522_v60 = vld [vmem:[%s6598_s13 + $0x2] ss:$0 sm:$0xff] }
 0xfc3   :  { %v2828_v3 = vadd.f32 %v5141_v2, %v4504_v57  ;;  %v2819_v5 = vpop.f32.mrb[51].mxu1  ;;  %v2833_v8 = vmax.f32 %v2825_v59, 0.0 }
 0xfc4   :  { %v2820_v52 = vadd.f32 %v4504_v57, %v2819_v5  ;;  %v2831_v16 = vmax.f32 %v2817_v61, 0.0 }
 0xfc5   :  { %v2834_v15 = vmax.f32 %v2828_v3, 0.0 }
 0xfc6   :  { %v2832_v54 = vmax.f32 %v2820_v52, 0.0 }
 0xfc7   :  { %v2841_v17 = vpack.c.bf16 %v2834_v15, %v2833_v8  ;;  %v4523_v8 = vld [vmem:[%s6599_s14 + $0x2] ss:$0 sm:$0xff] }
 0xfc8   :  { %v2840_v18 = vpack.c.bf16 %v2832_v54, %v2831_v16 }
 0xfca   :  { %5146 = vmatprep.mubr.msk.bf16.mxu0 %vm495_vm0, %v2840_v18 }
 0xfcb   :  { %5147 = vmatmul.mubr.msk.bf16.vlgmr.msra.gmra.mrb[52].mxu0 %vm495_vm0, %v2841_v17 }
0x109e   :  { %v5148_v20 = vpop.f32.mrb[52].mxu0 }
0x109f   :  { %v2899_v21 = vpop.f32.mrb[53].mxu0  ;;  %v2908_v26 = vadd.f32 %v5148_v20, %v4517_v12 }
0x10a0   :  { %v2900_v23 = vadd.f32 %v4517_v12, %v2899_v21  ;;  %v5149_v4 = vpop.f32.mrb[54].mxu0 }
0x10a1   :  { %v2902_v24 = vpop.f32.mrb[55].mxu0  ;;  %v2911_v29 = vadd.f32 %v5149_v4, %v4517_v12  ;;  %v2917_v7 = vsel %vm495_vm0, %v2908_v26, 0.0  ;;  %v5425_v4 = vld [vmem:[%s6636_s3 + $0x10] sm:$0xff]  }
0x10a2   :  { %v2903_v27 = vadd.f32 %v4517_v12, %v2902_v24  ;;  %v2914_v14 = vsel %vm495_vm0, %v2900_v23, 0.0 }
0x10a3   :  { %v2919_v31 = vsel %vm495_vm0, %v2911_v29, 0.0 }
0x10a4   :  { %v2915_v30 = vsel %vm495_vm0, %v2903_v27, 0.0 }
0x10a5   :  { %v2916_v22 = vadd.f32 %v2915_v30, %v2914_v14 }
0x10a7   :  { %v2918_v6 = vadd.f32 %v2917_v7, %v2916_v22  ;;  %v5424_v22 = vld [vmem:[%s6636_s3 + $0x8] sm:$0xff]   ;;  %v5427_v7 = vld [vmem:[%s6636_s3 + $0x20] sm:$0xff]  }
0x10a9   :  { %v2920_v11 = vadd.f32 %v2919_v31, %v2918_v6 }
0x10ab   :  { %v2921_v25 = vrot.slane %v2920_v11, 4 }
0x10ad   :  { %v2922_v9 = vadd.f32 %v2921_v25, %v2920_v11 }
0x10af   :  { %v2923_v32 = vrot.slane %v2922_v9, 2 }
0x10b1   :  { %v2924_v33 = vadd.f32 %v2923_v32, %v2922_v9  ;;  %v5426_v9 = vld [vmem:[%s6636_s3 + $0x18] sm:$0xff]   ;;  %v5429_v32 = vld [vmem:[%s6636_s3 + $0x30] sm:$0xff]  }
0x10b3   :  { %v2925_v34 = vrot.slane %v2924_v33, 1 }
0x10b5   :  { %v2926_v35 = vadd.f32 %v2925_v34, %v2924_v33  ;;  %v5428_v34 = vld [vmem:[%s6636_s3 + $0x28] sm:$0xff]  }
0x10b7   :  { %v2927_v36 = vmul.f32 0.03125, %v2926_v35 }
0x10b9   :  { %v2928_v28 = vsub.f32 %v2900_v23, %v2927_v36  ;;  %v2929_v13 = vsub.f32 %v2903_v27, %v2927_v36  ;;  %v2930_v37 = vsub.f32 %v2908_v26, %v2927_v36  ;;  %v2931_v38 = vsub.f32 %v2911_v29, %v2927_v36  ;;  %v5423_v23 = vld [vmem:[%s6636_s3] sm:$0xff]   ;;  %v5430_v36 = vld [vmem:[%s6636_s3 + $0x38] sm:$0xff]  }
0x10ba   :  { %5162 = vmatprep.mubr.msk.bf16.mxu0 %vm495_vm0, %v5423_v23  ;;  %v4561_v23 = vld [vmem:[%s6640_s29 + $0x3] ss:$0 sm:$0xff] }
0x10bb   :  { %v2932_v39 = vmul.f32 %v2928_v28, %v2928_v28  ;;  %v2933_v40 = vmul.f32 %v2929_v13, %v2929_v13  ;;  %v2934_v41 = vmul.f32 %v2930_v37, %v2930_v37  ;;  %v2935_v42 = vmul.f32 %v2931_v38, %v2931_v38 }
0x10bc   :  { %v2955_v61 = vmul.f32 %v4522_v60, %v2928_v28  ;;  %v2956_v2 = vmul.f32 %v4522_v60, %v2929_v13  ;;  %v2957_v3 = vmul.f32 %v4522_v60, %v2930_v37  ;;  %v2958_v5 = vmul.f32 %v4522_v60, %v2931_v38  ;;  %v5438_v60 = vld [vmem:[%s6637_s1 + $0xf8] sm:$0xff]  }
0x10bd   :  { %v2936_v43 = vsel %vm495_vm0, %v2932_v39, 0.0  ;;  %v2937_v44 = vsel %vm495_vm0, %v2933_v40, 0.0  ;;  %v2939_v46 = vsel %vm495_vm0, %v2934_v41, 0.0  ;;  %v2941_v48 = vsel %vm495_vm0, %v2935_v42, 0.0  ;;  %v5431_v39 = vld [vmem:[%s6637_s1 + $0xc0] sm:$0xff]   ;;  %v5432_v40 = vld [vmem:[%s6637_s1 + $0xc8] sm:$0xff]  }
0x10be   :  { %v2938_v45 = vadd.f32 %v2937_v44, %v2936_v43  ;;  %v5433_v41 = vld [vmem:[%s6637_s1 + $0xd0] sm:$0xff]   ;;  %v5434_v42 = vld [vmem:[%s6637_s1 + $0xd8] sm:$0xff]  }
0x10c0   :  { %v2940_v47 = vadd.f32 %v2939_v46, %v2938_v45  ;;  %v5435_v46 = vld [vmem:[%s6637_s1 + $0xe0] sm:$0xff]  }
0x10c2   :  { %v2942_v49 = vadd.f32 %v2941_v48, %v2940_v47 }
0x10c4   :  { %v2943_v50 = vrot.slane %v2942_v49, 4 }
0x10c6   :  { %v2944_v51 = vadd.f32 %v2943_v50, %v2942_v49 }
0x10c8   :  { %v2945_v53 = vrot.slane %v2944_v51, 2 }
0x10ca   :  { %v2946_v55 = vadd.f32 %v2945_v53, %v2944_v51  ;;  %v5436_v51 = vld [vmem:[%s6637_s1 + $0xe8] sm:$0xff]  }
0x10cc   :  { %v2947_v56 = vrot.slane %v2946_v55, 1 }
0x10ce   :  { %v2948_v57 = vadd.f32 %v2947_v56, %v2946_v55 }
0x10d0   :  { %v2949_v58 = vmul.f32 0.03125, %v2948_v57 }
0x10d2   :  { %v2959_v59 = vadd.f32 1e-05, %v2949_v58  ;;  %v5437_v58 = vld [vmem:[%s6637_s1 + $0xf0] sm:$0xff]  }
0x10d4   :  { %5467 = vrsqrt.f32 %v2959_v59 }
0x10de   :  { %v5468_v52 = vpop.eup %5467 }
0x10df   :  { %v2962_v15 = vmul.f32 %v5468_v52, %v2956_v2  ;;  %v2963_v16 = vmul.f32 %v5468_v52, %v2957_v3  ;;  %v2964_v54 = vmul.f32 %v5468_v52, %v2958_v5  ;;  %v2961_v17 = vmul.f32 %v5468_v52, %v2955_v61  ;;  %v5439_v61 = vld [vmem:[%s6638_s9 + $0xc0] sm:$0xff]   ;;  %v5440_v2 = vld [vmem:[%s6638_s9 + $0xc8] sm:$0xff]  }
0x10e0   :  { %v5443_v3 = vld [vmem:[%s6638_s9 + $0xe0] sm:$0xff]  }
0x10e1   :  { %v6279_v18 = vadd.f32 %v4523_v8, %v2962_v15  ;;  %v6281_v19 = vadd.f32 %v4523_v8, %v2961_v17  ;;  %v6283_v10 = vadd.f32 %v4523_v8, %v2963_v16  ;;  %v6285_v12 = vadd.f32 %v4523_v8, %v2964_v54  ;;  %v4560_v17 = vld [vmem:[%s6639_s5 + $0x3] ss:$0 sm:$0xff] }
0x10e3   :  { %v3000_v20 = vpack.c.bf16 %v6279_v18, %v6281_v19  ;;  %v3001_v21 = vpack.c.bf16 %v6285_v12, %v6283_v10 }
0x10e5   :  { %5154 = vmatprep.mubr.msk.bf16.mxu1 %vm495_vm0, %v3000_v20 }
0x10e6   :  { %5155 = vmatmul.mubr.msk.bf16.vlgmr.msra.gmra.mrb[52].mxu1 %vm495_vm0, %v3001_v21 }
0x10e7   :  { %5170 = vmatprep.mubr.msk.bf16.mxu1 %vm495_vm0, %v5425_v4 }
0x11b9   :  { %v6300_v24 = vpop.f32.mrb[52].mxu1 }
0x11ba   :  { %v6302_v26 = vpop.f32.mrb[53].mxu1 }
0x11bb   :  { %v6305_v27 = vpop.f32.mrb[54].mxu1 }
0x11bc   :  { %v3074_v14 = vpack.c.bf16 %v6305_v27, %v6300_v24  ;;  %v6309_v29 = vpop.f32.mrb[55].mxu1 }
0x11bd   :  { %v3073_v30 = vpack.c.bf16 %v6309_v29, %v6302_v26 }
0x11be   :  { %3158 = vrot.lane.b32.xlu1 %v3074_v14, %s6643_s0 }
0x11bf   :  { %3156 = vrot.lane.b32.xlu0 %v3073_v30, %s6643_s0  ;;  %5158 = vmatprep.subr.bf16.mxu0 %v3073_v30 }
0x11c0   :  { %5159 = vmatpush3.bf16.msra.mxu0 %v3073_v30 }
0x11c1   :  { %5160 = vmatprep.subr.bf16.mxu0 %v3074_v14 }
0x11c2   :  { %3306 = vrot.lane.b32.xlu1 %v3073_v30, %s6644_s27 }
0x11c3   :  { %3231 = vrot.lane.b32.xlu0 %v3073_v30, %s6642_s26 }
0x11c4   :  { %5161 = vmatpush3.bf16.msra.mxu0 %v3074_v14 }
0x11c6   :  { %3308 = vrot.lane.b32.xlu1 %v3074_v14, %s6644_s27 }
0x11c7   :  { %3233 = vrot.lane.b32.xlu0 %v3074_v14, %s6642_s26  ;;  %5163 = vmatmul.mubr.msk.bf16.vlgmr.msra.gmra.mrb[56].mxu0 %vm495_vm0, %v5424_v22  ;;  %v3433_v14 = vmul.f32 %v4560_v17, %v6309_v29 }
0x11c8   :  { %5178 = vmatprep.mubr.msk.bf16.mxu0 %vm495_vm0, %v5427_v7 }
0x1230   :  { %v3159_v6 = vpop.permute.xlu1 %3158 }
0x1231   :  { %v3157_v31 = vpop.permute.xlu0 %3156 }
0x1232   :  { %5166 = vmatprep.subr.bf16.mxu1 %v3157_v31 }
0x1233   :  { %5167 = vmatpush3.bf16.msra.mxu1 %v3157_v31  ;;  %v3434_v31 = vmul.f32 %v6300_v24, %v4560_v17 }
0x1234   :  { %5168 = vmatprep.subr.bf16.mxu1 %v3159_v6  ;;  %v3307_v11 = vpop.permute.xlu1 %3306 }
0x1235   :  { %v3232_v25 = vpop.permute.xlu0 %3231 }
0x1236   :  { %5174 = vmatprep.subr.bf16.mxu0 %v3232_v25 }
0x1237   :  { %5169 = vmatpush3.bf16.msra.mxu1 %v3159_v6  ;;  %5175 = vmatpush3.bf16.msra.mxu0 %v3232_v25 }
0x1238   :  { %5182 = vmatprep.subr.bf16.mxu1 %v3307_v11  ;;  %v3309_v35 = vpop.permute.xlu1 %3308 }
0x1239   :  { %v3234_v33 = vpop.permute.xlu0 %3233 }
0x123a   :  { %5171 = vmatmul.mubr.msk.bf16.vlgmr.msra.gmra.mrb[56].mxu1 %vm495_vm0, %v5426_v9  ;;  %5176 = vmatprep.subr.bf16.mxu0 %v3234_v33 }
0x123b   :  { %5177 = vmatpush3.bf16.msra.mxu0 %v3234_v33  ;;  %5183 = vmatpush3.bf16.msra.mxu1 %v3307_v11  ;;  %v3435_v33 = vmul.f32 %v6305_v27, %v4560_v17 }
0x123c   :  { %5184 = vmatprep.subr.bf16.mxu1 %v3309_v35  ;;  %5186 = vmatprep.mubr.msk.bf16.mxu1 %vm495_vm0, %v5429_v32 }
0x123d   :  { %5190 = vmatprep.subr.bf16.mxu0 %v5431_v39 }
0x123e   :  { %5179 = vmatmul.mubr.msk.bf16.vlgmr.msra.gmra.mrb[60].mxu0 %vm495_vm0, %v5428_v34 }
0x123f   :  { %5185 = vmatpush3.bf16.msra.mxu1 %v3309_v35  ;;  %5191 = vmatpush3.bf16.msra.mxu0 %v5431_v39 }
0x1240   :  { %5192 = vmatprep.subr.bf16.mxu0 %v5432_v40  ;;  %5210 = vmatprep.subr.bf16.mxu1 %v5439_v61 }
0x1242   :  { %5187 = vmatmul.mubr.msk.bf16.vlgmr.msra.gmra.mrb[60].mxu1 %vm495_vm0, %v5430_v36 }
0x1243   :  { %5193 = vmatpush3.bf16.msra.mxu0 %v5432_v40  ;;  %5211 = vmatpush3.bf16.msra.mxu1 %v5439_v61 }
0x1244   :  { %5194 = vmatprep.subr.bf16.mxu0 %v5433_v41  ;;  %5212 = vmatprep.subr.bf16.mxu1 %v5440_v2 }
0x1247   :  { %5195 = vmatpush3.bf16.msra.mxu0 %v5433_v41  ;;  %5213 = vmatpush3.bf16.msra.mxu1 %v5440_v2 }
0x1248   :  { %5196 = vmatprep.subr.bf16.mxu0 %v5434_v42 }
0x124b   :  { %5197 = vmatpush3.bf16.msra.mxu0 %v5434_v42 }
0x124c   :  { %5198 = vmatprep.subr.bf16.mxu0 %v5435_v46 }
0x124f   :  { %5199 = vmatpush3.bf16.msra.mxu0 %v5435_v46 }
0x1250   :  { %5200 = vmatprep.subr.bf16.mxu0 %v5436_v51 }
0x1253   :  { %5201 = vmatpush3.bf16.msra.mxu0 %v5436_v51 }
0x1254   :  { %5202 = vmatprep.subr.bf16.mxu0 %v5437_v58 }
0x1257   :  { %5203 = vmatpush3.bf16.msra.mxu0 %v5437_v58 }
0x1258   :  { %5204 = vmatprep.subr.bf16.mxu0 %v5438_v60 }
0x125b   :  { %5205 = vmatpush3.bf16.msra.mxu0 %v5438_v60 }
0x129a   :  { %v6343_v28 = vpop.f32.mrb[56].mxu0 }
0x129b   :  { %v6345_v13 = vpop.f32.mrb[57].mxu0 }
0x129c   :  { %v6347_v37 = vpop.f32.mrb[58].mxu0 }
0x129d   :  { %v6349_v38 = vpop.f32.mrb[59].mxu0 }
0x130d   :  { %v5172_v43 = vpop.f32.mrb[56].mxu1 }
0x130e   :  { %3375 = vrot.lane.b32.xlu0 %v5172_v43, %s6644_s27  ;;  %v3202_v44 = vpop.f32.mrb[57].mxu1 }
0x130f   :  { %v5173_v45 = vpop.f32.mrb[58].mxu1 }
0x1310   :  { %3377 = vrot.lane.b32.xlu1 %v5173_v45, %s6644_s27  ;;  %v3205_v47 = vpop.f32.mrb[59].mxu1 }
0x1311   :  { %v5180_v48 = vpop.f32.mrb[60].mxu0 }
0x1312   :  { %3391 = vrot.lane.b32.xlu0 %v5180_v48, %s6642_s26  ;;  %v3277_v49 = vpop.f32.mrb[61].mxu0 }
0x1313   :  { %v5181_v50 = vpop.f32.mrb[62].mxu0 }
0x1314   :  { %3393 = vrot.lane.b32.xlu1 %v5181_v50, %s6642_s26  ;;  %v3280_v53 = vpop.f32.mrb[63].mxu0 }
0x1315   :  { %v5188_v55 = vpop.f32.mrb[60].mxu1 }
0x1316   :  { %3371 = vrot.lane.b32.xlu0 %v3202_v44, %s6644_s27  ;;  %v3352_v56 = vpop.f32.mrb[61].mxu1 }
0x1317   :  { %v5189_v57 = vpop.f32.mrb[62].mxu1 }
0x1318   :  { %3373 = vrot.lane.b32.xlu1 %v3205_v47, %s6644_s27  ;;  %v3355_v59 = vpop.f32.mrb[63].mxu1 }
0x131a   :  { %3387 = vrot.lane.b32.xlu0 %v3277_v49, %s6642_s26 }
0x131c   :  { %3389 = vrot.lane.b32.xlu1 %v3280_v53, %s6642_s26 }
0x131e   :  { %3403 = vrot.lane.b32.xlu0 %v3352_v56, %s6643_s0  ;;  %v5446_v56 = vld [vmem:[%s6638_s9 + $0xf8] sm:$0xff]  }
0x1320   :  { %3405 = vrot.lane.b32.xlu1 %v3355_v59, %s6643_s0 }
0x1322   :  { %3407 = vrot.lane.b32.xlu0 %v5188_v55, %s6643_s0  ;;  %v5445_v55 = vld [vmem:[%s6638_s9 + $0xf0] sm:$0xff]  }
0x1324   :  { %3409 = vrot.lane.b32.xlu1 %v5189_v57, %s6643_s0  ;;  %v4578_v57 = vld [vmem:[%s6641_s8 + $0x3] ss:$0 sm:$0xff] }
0x1326   :  { %2110 = vrot.lane.b32.xlu0 %v6086_v63, %s6644_s27  ;;  %v5441_v63 = vld [vmem:[%s6638_s9 + $0xd0] sm:$0xff]  }
0x1327   :  { %5214 = vmatprep.subr.bf16.mxu1 %v5441_v63 }
0x1328   :  { %2112 = vrot.lane.b32.xlu1 %v6084_v62, %s6644_s27  ;;  %v5442_v62 = vld [vmem:[%s6638_s9 + $0xd8] sm:$0xff]   ;;  %5215 = vmatpush3.bf16.msra.mxu1 %v5441_v63 }
0x1329   :  { %5216 = vmatprep.subr.bf16.mxu1 %v5442_v62 }
0x132a   :  { %2978 = vrot.lane.b32.xlu0 %v6281_v19, %s6642_s26 }
0x132c   :  { %2980 = vrot.lane.b32.xlu1 %v6279_v18, %s6642_s26  ;;  %5217 = vmatpush3.bf16.msra.mxu1 %v5442_v62 }
0x132d   :  { %5218 = vmatprep.subr.bf16.mxu1 %v5443_v3 }
0x132e   :  { %2114 = vrot.lane.b32.xlu0 %v6088_v0, %s6644_s27  ;;  %v5444_v0 = vld [vmem:[%s6638_s9 + $0xe8] sm:$0xff]  }
0x1330   :  { %2116 = vrot.lane.b32.xlu1 %v6090_v1, %s6644_s27  ;;  %5219 = vmatpush3.bf16.msra.mxu1 %v5443_v3 }
0x1331   :  { %5220 = vmatprep.subr.bf16.mxu1 %v5444_v0 }
0x1332   :  { %2982 = vrot.lane.b32.xlu0 %v6283_v10, %s6642_s26  ;;  %v3432_v10 = vmul.f32 %v4560_v17, %v6302_v26  ;;  %v4603_v17 = vld [vmem:[%s6595_s10 + $0x3] ss:$0 sm:$0xff] }
0x1334   :  { %2984 = vrot.lane.b32.xlu1 %v6285_v12, %s6642_s26  ;;  %5221 = vmatpush3.bf16.msra.mxu1 %v5444_v0 }
0x1335   :  { %5222 = vmatprep.subr.bf16.mxu1 %v5445_v55 }
0x1338   :  { %5223 = vmatpush3.bf16.msra.mxu1 %v5445_v55 }
0x1339   :  { %5224 = vmatprep.subr.bf16.mxu1 %v5446_v56 }
0x133c   :  { %5225 = vmatpush3.bf16.msra.mxu1 %v5446_v56 }
0x1380   :  { %v3376_v1 = vpop.permute.xlu0 %3375 }
0x1381   :  { %v3417_v26 = vsel %vm495_vm0, %v6343_v28, %v3376_v1 }
0x1382   :  { %v3378_v5 = vpop.permute.xlu1 %3377 }
0x1383   :  { %v3418_v29 = vsel %vm495_vm0, %v6347_v37, %v3378_v5 }
0x1384   :  { %v3392_v52 = vpop.permute.xlu0 %3391 }
0x1385   :  { %v3421_v11 = vsel %vm833_vm2, %v3417_v26, %v3392_v52 }
0x1386   :  { %v3394_v8 = vpop.permute.xlu1 %3393 }
0x1387   :  { %v3422_v35 = vsel %vm833_vm2, %v3418_v29, %v3394_v8 }
0x1388   :  { %v3372_v15 = vpop.permute.xlu0 %3371 }
0x1389   :  { %v3415_v19 = vsel %vm495_vm0, %v6345_v13, %v3372_v15 }
0x138a   :  { %v3374_v16 = vpop.permute.xlu1 %3373 }
0x138b   :  { %v3416_v21 = vsel %vm495_vm0, %v6349_v38, %v3374_v16  ;;  %v5447_v16 = vld [vmem:[%s6594_s11 + $0x30] sm:$0xff]  }
0x138c   :  { %v3388_v54 = vpop.permute.xlu0 %3387  ;;  %5230 = vmatprep.subr.bf16.mxu0 %v5447_v16 }
0x138d   :  { %v3419_v12 = vsel %vm833_vm2, %v3415_v19, %v3388_v54  ;;  %v5448_v54 = vld [vmem:[%s6594_s11 + $0x38] sm:$0xff]  }
0x138e   :  { %v3390_v18 = vpop.permute.xlu1 %3389 }
0x138f   :  { %v3420_v30 = vsel %vm833_vm2, %v3416_v21, %v3390_v18 }
0x1390   :  { %v3404_v20 = vpop.permute.xlu0 %3403 }
0x1391   :  { %v3423_v4 = vsel %vm838_vm1, %v3419_v12, %v3404_v20 }
0x1392   :  { %v3436_v22 = vadd.f32 %v3432_v10, %v3423_v4  ;;  %v3406_v7 = vpop.permute.xlu1 %3405 }
0x1393   :  { %v3424_v6 = vsel %vm838_vm1, %v3420_v30, %v3406_v7 }
0x1394   :  { %v3445_v25 = vadd.f32 %v4561_v23, %v3436_v22  ;;  %v3437_v9 = vadd.f32 %v3433_v14, %v3424_v6  ;;  %v3408_v32 = vpop.permute.xlu0 %3407 }
0x1395   :  { %v3425_v34 = vsel %vm838_vm1, %v3421_v11, %v3408_v32 }
0x1396   :  { %v3446_v36 = vadd.f32 %v4561_v23, %v3437_v9  ;;  %v3438_v28 = vadd.f32 %v3434_v31, %v3425_v34  ;;  %v3410_v13 = vpop.permute.xlu1 %3409  ;;  %v3449_v38 = vmax.f32 %v3445_v25, 0.0  ;;  %v4616_v31 = vld [vmem:[%s6597_s12 + $0x3] ss:$0 sm:$0xff] }
0x1397   :  { %v3426_v24 = vsel %vm838_vm1, %v3422_v35, %v3410_v13 }
0x1398   :  { %v3450_v39 = vmax.f32 %v3446_v36, 0.0  ;;  %v3447_v40 = vadd.f32 %v4561_v23, %v3438_v28  ;;  %v3439_v41 = vadd.f32 %v3435_v33, %v3426_v24  ;;  %v2111_v42 = vpop.permute.xlu0 %2110 }
0x1399   :  { %2123 = vst.msk [vmem:[#allocation2] sm:$0xff] %vm2122_vm3, %v2111_v42 }
0x139a   :  { %v3448_v27 = vadd.f32 %v4561_v23, %v3439_v41  ;;  %v2113_v43 = vpop.permute.xlu1 %2112  ;;  %v3470_v37 = vpack.c.bf16 %v3450_v39, %v3449_v38  ;;  %v3451_v44 = vmax.f32 %v3447_v40, 0.0 }
0x139b   :  { %2124 = vst.msk [vmem:[#allocation2 + $0x8] sm:$0xff] %vm2122_vm3, %v2113_v43 }
0x139c   :  { %v3452_v45 = vmax.f32 %v3448_v27, 0.0  ;;  %v2979_v46 = vpop.permute.xlu0 %2978  ;;  %5206 = vmatprep.mubr.bf16.mxu0 %v3470_v37 }
0x139d   :  { %2991 = vst.msk [vmem:[#allocation2] sm:$0xff] %vm2990_vm4, %v2979_v46 }
0x139e   :  { %v3471_v47 = vpack.c.bf16 %v3452_v45, %v3451_v44  ;;  %v2981_v48 = vpop.permute.xlu1 %2980 }
0x139f   :  { %2992 = vst.msk [vmem:[#allocation2 + $0x8] sm:$0xff] %vm2990_vm4, %v2981_v48 }
0x13a0   :  { %v2115_v49 = vpop.permute.xlu0 %2114  ;;  %5207 = vmatmul.mubr.bf16.vlgmr.msra.gmra.mrb[64].mxu0 %v3471_v47 }
0x13a1   :  { %2125 = vst.msk [vmem:[#allocation2 + $0x10] sm:$0xff] %vm2122_vm3, %v2115_v49  ;;  %5231 = vmatpush3.bf16.msra.mxu0 %v5447_v16  ;;  %v5474_v16 = vmov 0.0  }
0x13a2   :  { %v2117_v50 = vpop.permute.xlu1 %2116  ;;  %5232 = vmatprep.subr.bf16.mxu0 %v5448_v54  ;;  %5238 = vmatprep.subr.bf16.mxu1 %v5474_v16 }
0x13a3   :  { %2126 = vst.msk [vmem:[#allocation2 + $0x18] sm:$0xff] %vm2122_vm3, %v2117_v50 }
0x13a4   :  { %v2983_v51 = vpop.permute.xlu0 %2982 }
0x13a5   :  { %2993 = vst.msk [vmem:[#allocation2 + $0x10] sm:$0xff] %vm2990_vm4, %v2983_v51  ;;  %5233 = vmatpush3.bf16.msra.mxu0 %v5448_v54 }
0x13a6   :  { %v2985_v53 = vpop.permute.xlu1 %2984  ;;  %5246 = vmatprep.subr.bf16.mxu0 %v5474_v16 }
0x13a7   :  { %2994 = vst.msk [vmem:[#allocation2 + $0x18] sm:$0xff] %vm2990_vm4, %v2985_v53 }
0x1473   :  { %v5208_v58 = vpop.f32.mrb[64].mxu0 }
0x1474   :  { %v3568_v59 = vadd.f32 %v5208_v58, %v4578_v57  ;;  %v3559_v60 = vpop.f32.mrb[65].mxu0 }
0x1475   :  { %v3560_v61 = vadd.f32 %v4578_v57, %v3559_v60  ;;  %v5209_v2 = vpop.f32.mrb[66].mxu0 }
0x1476   :  { %v3571_v63 = vadd.f32 %v5209_v2, %v4578_v57  ;;  %v3562_v62 = vpop.f32.mrb[67].mxu0  ;;  %v3576_v0 = vmax.f32 %v3568_v59, 0.0 }
0x1477   :  { %v3563_v3 = vadd.f32 %v4578_v57, %v3562_v62  ;;  %v3574_v5 = vmax.f32 %v3560_v61, 0.0 }
0x1478   :  { %v3577_v1 = vmax.f32 %v3571_v63, 0.0 }
0x1479   :  { %v3575_v52 = vmax.f32 %v3563_v3, 0.0 }
0x147a   :  { %v3596_v8 = vpack.c.bf16 %v3577_v1, %v3576_v0 }
0x147b   :  { %v3595_v15 = vpack.c.bf16 %v3575_v52, %v3574_v5 }
0x147d   :  { %5226 = vmatprep.mubr.bf16.mxu1 %v3595_v15  ;;  %v4621_v15 = vld [vmem:[%s6598_s13 + $0x3] ss:$0 sm:$0xff] }
0x147e   :  { %5227 = vmatmul.mubr.bf16.vlgmr.msra.gmra.mrb[64].mxu1 %v3596_v8 }
0x147f   :  { %5242 = vmatprep.mubr.msk.bf16.mxu1 %vm5475_vm5, %v5474_v16 }
0x1551   :  { %v5228_v18 = vpop.f32.mrb[64].mxu1 }
0x1552   :  { %v3693_v19 = vadd.f32 %v5228_v18, %v4603_v17  ;;  %v3684_v10 = vpop.f32.mrb[65].mxu1 }
0x1553   :  { %v3685_v12 = vadd.f32 %v4603_v17, %v3684_v10  ;;  %v5229_v20 = vpop.f32.mrb[66].mxu1 }
0x1554   :  { %v3696_v21 = vadd.f32 %v5229_v20, %v4603_v17  ;;  %v3687_v23 = vpop.f32.mrb[67].mxu1  ;;  %v3701_v14 = vmax.f32 %v3693_v19, 0.0 }
0x1555   :  { %v3688_v4 = vadd.f32 %v4603_v17, %v3687_v23  ;;  %v3699_v22 = vmax.f32 %v3685_v12, 0.0  ;;  %v4622_v12 = vld [vmem:[%s6599_s14 + $0x3] ss:$0 sm:$0xff] }
0x1556   :  { %v3702_v30 = vmax.f32 %v3696_v21, 0.0 }
0x1557   :  { %v3700_v7 = vmax.f32 %v3688_v4, 0.0 }
0x1558   :  { %v3709_v26 = vpack.c.bf16 %v3702_v30, %v3701_v14 }
0x1559   :  { %v3708_v6 = vpack.c.bf16 %v3700_v7, %v3699_v22 }
0x155b   :  { %5234 = vmatprep.mubr.msk.bf16.mxu0 %vm495_vm0, %v3708_v6  ;;  %v5450_v6 = vld [vmem:[%s6600_s15 + $0x8] sm:$0xff]  }
0x155c   :  { %5235 = vmatmul.mubr.msk.bf16.vlgmr.msra.gmra.mrb[68].mxu0 %vm495_vm0, %v3709_v26  ;;  %v5449_v26 = vld [vmem:[%s6600_s15] sm:$0xff]  }
0x155d   :  { %5262 = vmatprep.mubr.msk.bf16.mxu0 %vm5475_vm5, %v5474_v16  ;;  %5247 = vmatpush3.bf16.msra.mxu0 %v5449_v26 }
0x155e   :  { %5248 = vmatprep.subr.bf16.mxu0 %v5474_v16 }
0x1561   :  { %5249 = vmatpush3.bf16.msra.mxu0 %v5450_v6 }
0x1562   :  { %5250 = vmatprep.subr.bf16.mxu0 %v5474_v16 }
0x162f   :  { %v5236_v11 = vpop.f32.mrb[68].mxu0 }
0x1630   :  { %v3767_v25 = vpop.f32.mrb[69].mxu0  ;;  %v3776_v29 = vadd.f32 %v5236_v11, %v4616_v31  ;;  %v5452_v11 = vld [vmem:[%s6600_s15 + $0x18] sm:$0xff]  }
0x1631   :  { %v3768_v9 = vadd.f32 %v4616_v31, %v3767_v25  ;;  %v5237_v32 = vpop.f32.mrb[70].mxu0  ;;  %v5453_v25 = vld [vmem:[%s6600_s15 + $0x20] sm:$0xff]  }
0x1632   :  { %v3770_v33 = vpop.f32.mrb[71].mxu0  ;;  %v3779_v36 = vadd.f32 %v5237_v32, %v4616_v31  ;;  %v3785_v24 = vsel %vm495_vm0, %v3776_v29, 0.0  ;;  %v5455_v32 = vld [vmem:[%s6600_s15 + $0x30] sm:$0xff]  }
0x1633   :  { %v3771_v34 = vadd.f32 %v4616_v31, %v3770_v33  ;;  %v3782_v35 = vsel %vm495_vm0, %v3768_v9, 0.0  ;;  %v5451_v31 = vld [vmem:[%s6600_s15 + $0x10] sm:$0xff]  }
0x1634   :  { %v3787_v39 = vsel %vm495_vm0, %v3779_v36, 0.0  ;;  %5251 = vmatpush3.bf16.msra.mxu0 %v5451_v31 }
0x1635   :  { %v3783_v28 = vsel %vm495_vm0, %v3771_v34, 0.0  ;;  %5252 = vmatprep.subr.bf16.mxu0 %v5474_v16 }
0x1636   :  { %v3784_v13 = vadd.f32 %v3783_v28, %v3782_v35 }
0x1638   :  { %v3786_v38 = vadd.f32 %v3785_v24, %v3784_v13  ;;  %5253 = vmatpush3.bf16.msra.mxu0 %v5452_v11 }
0x1639   :  { %5254 = vmatprep.subr.bf16.mxu0 %v5474_v16 }
0x163a   :  { %v3788_v40 = vadd.f32 %v3787_v39, %v3786_v38 }
0x163c   :  { %v3789_v41 = vrot.slane %v3788_v40, 4  ;;  %5255 = vmatpush3.bf16.msra.mxu0 %v5453_v25 }
0x163d   :  { %5256 = vmatprep.subr.bf16.mxu0 %v5474_v16 }
0x163e   :  { %v3790_v42 = vadd.f32 %v3789_v41, %v3788_v40  ;;  %v3863_v40 = vld [vmem:[%s6601_s2] sm:$0x1]  ;;  %v5456_v41 = vld [vmem:[%s6600_s15 + $0x38] sm:$0xff]  }
0x1640   :  { %v3791_v27 = vrot.slane %v3790_v42, 2 }
0x1642   :  { %v3792_v43 = vadd.f32 %v3791_v27, %v3790_v42 }
0x1644   :  { %v3793_v37 = vrot.slane %v3792_v43, 1 }
0x1646   :  { %v3794_v44 = vadd.f32 %v3793_v37, %v3792_v43 }
0x1648   :  { %v3795_v45 = vmul.f32 0.03125, %v3794_v44 }
0x164a   :  { %v3796_v46 = vsub.f32 %v3768_v9, %v3795_v45  ;;  %v3797_v47 = vsub.f32 %v3771_v34, %v3795_v45  ;;  %v3798_v48 = vsub.f32 %v3776_v29, %v3795_v45  ;;  %v3799_v49 = vsub.f32 %v3779_v36, %v3795_v45  ;;  %v5454_v9 = vld [vmem:[%s6600_s15 + $0x28] sm:$0xff]   ;;  %v5457_v45 = vld [vmem:[%s6602_s17] sm:$0xff]  }
0x164b   :  { %5257 = vmatpush3.bf16.msra.mxu0 %v5454_v9 }
0x164c   :  { %v3800_v50 = vmul.f32 %v3796_v46, %v3796_v46  ;;  %v3801_v51 = vmul.f32 %v3797_v47, %v3797_v47  ;;  %v3802_v53 = vmul.f32 %v3798_v48, %v3798_v48  ;;  %v3803_v55 = vmul.f32 %v3799_v49, %v3799_v49  ;;  %5258 = vmatprep.subr.bf16.mxu0 %v5474_v16 }
0x164d   :  { %v3824_v54 = vmul.f32 %v4621_v15, %v3797_v47  ;;  %v3823_v17 = vmul.f32 %v4621_v15, %v3796_v46  ;;  %v3826_v18 = vmul.f32 %v4621_v15, %v3799_v49  ;;  %v3825_v19 = vmul.f32 %v4621_v15, %v3798_v48  ;;  %v5458_v46 = vld [vmem:[%s6602_s17 + $0x8] sm:$0xff]   ;;  %v4624_v47 = vld [vmem:[%s6603_s16] ss:$0 sm:$0xff] }
0x164e   :  { %v3804_v56 = vsel %vm495_vm0, %v3800_v50, 0.0  ;;  %v3805_v57 = vsel %vm495_vm0, %v3801_v51, 0.0  ;;  %v3807_v59 = vsel %vm495_vm0, %v3802_v53, 0.0  ;;  %v3809_v61 = vsel %vm495_vm0, %v3803_v55, 0.0 }
0x164f   :  { %v3806_v58 = vadd.f32 %v3805_v57, %v3804_v56  ;;  %5259 = vmatpush3.bf16.msra.mxu0 %v5455_v32  ;;  %v5459_v57 = vld [vmem:[%s6604_s19] sm:$0xff]  }
0x1650   :  { %5260 = vmatprep.subr.bf16.mxu0 %v5474_v16 }
0x1651   :  { %v3808_v60 = vadd.f32 %v3807_v59, %v3806_v58  ;;  %v5460_v58 = vld [vmem:[%s6604_s19 + $0x8] sm:$0xff]   ;;  %v4633_v59 = vld [vmem:[%s6605_s18] ss:$0 sm:$0xff] }
0x1653   :  { %v3810_v2 = vadd.f32 %v3809_v61, %v3808_v60  ;;  %5261 = vmatpush3.bf16.msra.mxu0 %v5456_v41 }
0x1655   :  { %v3811_v63 = vrot.slane %v3810_v2, 4 }
0x1657   :  { %v3812_v62 = vadd.f32 %v3811_v63, %v3810_v2 }
0x1659   :  { %v3813_v3 = vrot.slane %v3812_v62, 2 }
0x165b   :  { %v3814_v0 = vadd.f32 %v3813_v3, %v3812_v62 }
0x165d   :  { %v3815_v1 = vrot.slane %v3814_v0, 1 }
0x165f   :  { %v3816_v5 = vadd.f32 %v3815_v1, %v3814_v0  ;;  %v5461_v1 = vld [vmem:[%s6606_s21] sm:$0xff]  }
0x1661   :  { %v3817_v52 = vmul.f32 0.03125, %v3816_v5  ;;  %v5462_v5 = vld [vmem:[%s6606_s21 + $0x8] sm:$0xff]  }
0x1663   :  { %v3827_v8 = vadd.f32 1e-05, %v3817_v52  ;;  %v28_v52 = vstv %s6607_s22 }
0x1664   :  { %29 = vst [vmem:[#allocation3] sm:$0x1] %v28_v52 }
0x1665   :  { %5469 = vrsqrt.f32 %v3827_v8  ;;  %v4637_v8 = vld [vmem:[%s6645_s7] ss:$0 sm:$0xff] }
0x166f   :  { %v5470_v10 = vpop.eup %5469 }
0x1670   :  { %v3830_v20 = vmul.f32 %v5470_v10, %v3824_v54  ;;  %v3829_v21 = vmul.f32 %v5470_v10, %v3823_v17  ;;  %v3832_v23 = vmul.f32 %v5470_v10, %v3826_v18  ;;  %v3831_v4 = vmul.f32 %v5470_v10, %v3825_v19 }
0x1672   :  { %v3839_v14 = vadd.f32 %v4622_v12, %v3830_v20  ;;  %v3838_v30 = vadd.f32 %v4622_v12, %v3829_v21  ;;  %v3841_v22 = vadd.f32 %v4622_v12, %v3832_v23  ;;  %v3840_v7 = vadd.f32 %v4622_v12, %v3831_v4  ;;  %v4641_v12 = vld [vmem:[#allocation3] ss:$0 sm:$0xff] }
0x1674   :  { %3848 = vrot.lane.b32.xlu1 %v3839_v14, %s6643_s0  ;;  %3846 = vrot.lane.b32.xlu0 %v3838_v30, %s6643_s0 }
0x1678   :  { %3852 = vrot.lane.b32.xlu1 %v3841_v22, %s6643_s0  ;;  %3850 = vrot.lane.b32.xlu0 %v3840_v7, %s6643_s0 }
0x16e6   :  { %v3847_v33 = vpop.permute.xlu0 %3846  ;;  %v3849_v29 = vpop.permute.xlu1 %3848 }
0x16e7   :  { %3859 = vst.msk [vmem:[#allocation2] sm:$0xff] %vm3858_vm6, %v3847_v33  ;;  %3860 = vst.msk [vmem:[#allocation2 + $0x8] sm:$0xff] %vm3858_vm6, %v3849_v29 }
0x16ea   :  { %v3851_v34 = vpop.permute.xlu0 %3850  ;;  %v3853_v35 = vpop.permute.xlu1 %3852 }
0x16eb   :  { %3861 = vst.msk [vmem:[#allocation2 + $0x10] sm:$0xff] %vm3858_vm6, %v3851_v34  ;;  %3862 = vst.msk [vmem:[#allocation2 + $0x18] sm:$0xff] %vm3858_vm6, %v3853_v35 }
0x16ee   :  { %v3864_v36 = vld [vmem:[#allocation2] sm:$0xff]  ;;  %v3865_v28 = vld [vmem:[#allocation2 + $0x8] sm:$0xff] }
0x16ef   :  { %v3868_v13 = vpack.c.bf16 %v3865_v28, %v3864_v36 }
0x16f1   :  { %5239 = vmatpush3.bf16.msra.mxu1 %v3868_v13 }
0x16f2   :  { %5240 = vmatprep.subr.bf16.mxu1 %v5474_v16  ;;  %v3866_v24 = vld [vmem:[#allocation2 + $0x10] sm:$0xff]  ;;  %v3867_v38 = vld [vmem:[#allocation2 + $0x18] sm:$0xff] }
0x16f3   :  { %v3869_v39 = vpack.c.bf16 %v3867_v38, %v3866_v24 }
0x16f5   :  { %5241 = vmatpush3.bf16.msra.mxu1 %v3869_v39 }
0x16f6   :  { %5266 = vmatprep.subr.bf16.mxu1 %v5474_v16 }
0x16f8   :  { %5243 = vmatmul.mubr.msk.bf16.vlgmr.msra.gmra.mrb[68].mxu1 %vm495_vm0, %v3863_v40 }
0x16f9   :  { %5270 = vmatprep.mubr.msk.bf16.mxu1 %vm5475_vm5, %v5474_v16  ;;  %5267 = vmatpush3.bf16.msra.mxu1 %v5457_v45 }
0x16fa   :  { %5268 = vmatprep.subr.bf16.mxu1 %v5474_v16 }
0x16fd   :  { %5269 = vmatpush3.bf16.msra.mxu1 %v5458_v46 }
0x16fe   :  { %5274 = vmatprep.subr.bf16.mxu1 %v5474_v16 }
0x17cb   :  { %v3907_v42 = vpop.f32.mrb[68].mxu1 }
0x17cc   :  { %v3929_v27 = vpack.c.bf16 %v3907_v42, %v3907_v42  ;;  %v5244_v43 = vpop.f32.mrb[69].mxu1 }
0x17cd   :  { %v3910_v37 = vpop.f32.mrb[70].mxu1 }
0x17ce   :  { %v5245_v44 = vpop.f32.mrb[71].mxu1  ;;  %5263 = vmatmul.mubr.bf16.vlgmr.msra.gmra.mrb[72].mxu0 %v3929_v27 }
0x18a1   :  { %v4019_v48 = vpop.f32.mrb[72].mxu0 }
0x18a2   :  { %v4020_v49 = vadd.f32 %v4624_v47, %v4019_v48  ;;  %v5264_v50 = vpop.f32.mrb[73].mxu0 }
0x18a3   :  { %v4022_v51 = vpop.f32.mrb[74].mxu0 }
0x18a4   :  { %v4025_v53 = vmax.f32 %v4020_v49, 0.0  ;;  %v5265_v55 = vpop.f32.mrb[75].mxu0 }
0x18a6   :  { %v4030_v56 = vpack.c.bf16 %v4025_v53, %v4025_v53 }
0x18a8   :  { %5271 = vmatmul.mubr.msk.bf16.vlgmr.msra.gmra.mrb[72].mxu1 %vm495_vm0, %v4030_v56 }
0x18a9   :  { %5278 = vmatprep.mubr.msk.bf16.mxu1 %vm5475_vm5, %v5474_v16  ;;  %5275 = vmatpush3.bf16.msra.mxu1 %v5459_v57 }
0x18aa   :  { %5276 = vmatprep.subr.bf16.mxu1 %v5474_v16 }
0x18ad   :  { %5277 = vmatpush3.bf16.msra.mxu1 %v5460_v58 }
0x18ae   :  { %5282 = vmatprep.subr.bf16.mxu1 %v5474_v16 }
0x197b   :  { %v4087_v60 = vpop.f32.mrb[72].mxu1 }
0x197c   :  { %v4088_v61 = vadd.f32 %v4633_v59, %v4087_v60  ;;  %v5272_v2 = vpop.f32.mrb[73].mxu1 }
0x197d   :  { %v4090_v63 = vpop.f32.mrb[74].mxu1 }
0x197e   :  { %v4093_v62 = vmax.f32 %v4088_v61, 0.0  ;;  %v5273_v3 = vpop.f32.mrb[75].mxu1 }
0x1980   :  { %v4098_v0 = vpack.c.bf16 %v4093_v62, %v4093_v62 }
0x1982   :  { %5279 = vmatmul.mubr.msk.bf16.vlgmr.msra.gmra.mrb[76].mxu1 %vm495_vm0, %v4098_v0 }
0x1983   :  { %5286 = vmatprep.mubr.msk.bf16.mxu1 %vm5475_vm5, %v5474_v16  ;;  %5283 = vmatpush3.bf16.msra.mxu1 %v5461_v1 }
0x1984   :  { %5284 = vmatprep.subr.bf16.mxu1 %v5474_v16 }
0x1987   :  { %5285 = vmatpush3.bf16.msra.mxu1 %v5462_v5 }
0x1a55   :  { %v4155_v15 = vpop.f32.mrb[76].mxu1 }
0x1a56   :  { %v4156_v54 = vadd.f32 %v4637_v8, %v4155_v15  ;;  %v5280_v17 = vpop.f32.mrb[77].mxu1 }
0x1a57   :  { %v4158_v18 = vpop.f32.mrb[78].mxu1 }
0x1a58   :  { %v4161_v19 = vmax.f32 %v4156_v54, 0.0  ;;  %v5281_v16 = vpop.f32.mrb[79].mxu1 }
0x1a5a   :  { %v4166_v10 = vpack.c.bf16 %v4161_v19, %v4161_v19 }
0x1a5c   :  { %5287 = vmatmul.mubr.msk.bf16.vlgmr.msra.gmra.mrb[80].mxu1 %vm495_vm0, %v4166_v10 }
0x1b2f   :  { %v4223_v20 = vpop.f32.mrb[80].mxu1 }
0x1b30   :  { %v4224_v21 = vadd.f32 %v4641_v12, %v4223_v20  ;;  %v5288_v23 = vpop.f32.mrb[81].mxu1 }
0x1b31   :  { %v4226_v4 = vpop.f32.mrb[82].mxu1 }
0x1b32   :  { %4230 = vst.msk [vmem:[%s6646_s24] sm:$0x3] %vm4229_vm7, %v4224_v21  ;;  %v5289_v14 = vpop.f32.mrb[83].mxu1 }

</bundles_post_ra>
